<compile_context>
chip_gen: v6e
topology: v6e:2x2x1
jax: 0.10.0
libtpu: 0.0.40
codegen_flags: <defaults>
</compile_context>

<pallas_src>
import functools

import jax
import jax.numpy as jnp
from jax.experimental import pallas as pl
from jax.experimental.pallas import tpu as pltpu

H1, H2, H3 = 1024, 512, 256
OUT_PAD = 128   # lane-dense padded width of the final layer (true output = col 0)

_SINGLE_BUFFER_WEIGHTS = True   # try pl.Buffered(1) on resident weights first


def _leaky_relu(x, slope=0.2):
    # max(x, slope*x) == LeakyReLU(slope) for slope in [0, 1].
    return jnp.maximum(x, slope * x)


def _round_up(n, m):
    return ((n + m - 1) // m) * m


def discriminator_kernel(x_ref,
                         w1_ref, b1_ref,
                         w2_ref, b2_ref,
                         w3_ref, b3_ref,
                         w4_ref, b4_ref,
                         o_ref):
    # x and weights are already bf16; MXU accumulates in f32; elementwise in f32.
    h = jnp.dot(x_ref[...], w1_ref[...],
                preferred_element_type=jnp.float32) + b1_ref[...]
    h = _leaky_relu(h)
    h = jnp.dot(h.astype(jnp.bfloat16), w2_ref[...],
                preferred_element_type=jnp.float32) + b2_ref[...]
    h = _leaky_relu(h)
    h = jnp.dot(h.astype(jnp.bfloat16), w3_ref[...],
                preferred_element_type=jnp.float32) + b3_ref[...]
    h = _leaky_relu(h)
    h = jnp.dot(h.astype(jnp.bfloat16), w4_ref[...],
                preferred_element_type=jnp.float32) + b4_ref[...]
    o_ref[...] = jax.nn.sigmoid(h).astype(o_ref.dtype)


def prepare_params(params):
    """One-time conversion: bf16 weights, final layer padded to OUT_PAD lanes.

    Hoisted out of the per-call path so no weight cast/pad HBM pass happens on
    every forward (was ~2.9 MB read + ~1.5 MB write per call).
    """
    n_pad = OUT_PAD - params["w4"].shape[1]
    return {
        "w1": params["w1"].astype(jnp.bfloat16),                       # [D,1024]
        "w2": params["w2"].astype(jnp.bfloat16),                       # [1024,512]
        "w3": params["w3"].astype(jnp.bfloat16),                       # [512,256]
        "w4": jnp.pad(params["w4"], ((0, 0), (0, n_pad))
                      ).astype(jnp.bfloat16),                          # [256,128]
        "b1": params["b1"].astype(jnp.float32),                        # [1,1024]
        "b2": params["b2"].astype(jnp.float32),                        # [1,512]
        "b3": params["b3"].astype(jnp.float32),                        # [1,256]
        "b4": jnp.pad(params["b4"], ((0, 0), (0, n_pad))
                      ).astype(jnp.float32),                           # [1,128]
    }


@functools.partial(jax.jit, static_argnames=("bm", "single_buffer"))
def _forward(x, prepared, *, bm, single_buffer):
    B, D = x.shape

    # --- batch tiling ------------------------------------------------------
    # Tiny batches: one tile rounded to a multiple of 16 sublanes (bf16 pack).
    # Mid-size batches (>=256 padded rows): at least 2 grid steps so v7x's
    # second TensorCore gets work.  Large batches: bm-row tiles (default 512,
    # multiple of 128 -> fills MXU rows and amortizes per-step overhead).
    b_sub = max(16, _round_up(B, 16))
    if b_sub <= bm:
        if b_sub >= 256:
            bm_eff = _round_up((b_sub + 1) // 2, 128)
            b_total = 2 * bm_eff
        else:
            bm_eff = b_sub
            b_total = b_sub
    else:
        bm_eff = bm
        b_total = _round_up(B, bm)

    if b_total != B:
        x = jnp.pad(x, ((0, b_total - B), (0, 0)))
    x = x.astype(jnp.bfloat16)   # halve input DMA; MXU operand dtype

    w1, b1 = prepared["w1"], prepared["b1"]
    w2, b2 = prepared["w2"], prepared["b2"]
    w3, b3 = prepared["w3"], prepared["b3"]
    w4, b4 = prepared["w4"], prepared["b4"]

    # Weights/biases are resident across the batch grid (constant index map).
    if single_buffer:
        def resident(shape):
            return pl.BlockSpec(shape, lambda i: (0, 0),
                                pipeline_mode=pl.Buffered(1))
    else:
        def resident(shape):
            return pl.BlockSpec(shape, lambda i: (0, 0))

    out = pl.pallas_call(
        discriminator_kernel,
        out_shape=jax.ShapeDtypeStruct((b_total, OUT_PAD), jnp.bfloat16),
        grid_spec=pltpu.PrefetchScalarGridSpec(
            num_scalar_prefetch=0,
            grid=(b_total // bm_eff,),
            in_specs=[
                pl.BlockSpec((bm_eff, D), lambda i: (i, 0)),
                resident(w1.shape), resident(b1.shape),
                resident(w2.shape), resident(b2.shape),
                resident(w3.shape), resident(b3.shape),
                resident(w4.shape), resident(b4.shape),
            ],
            out_specs=pl.BlockSpec((bm_eff, OUT_PAD), lambda i: (i, 0)),
        ),
        compiler_params=pltpu.CompilerParams(
            dimension_semantics=("parallel",),      # shard batch tiles across TCs
            vmem_limit_bytes=32 * 1024 * 1024,      # explicit; actual use ~few MiB
        ),
    )(x, w1, b1, w2, b2, w3, b3, w4, b4)

    # un-pad batch, keep the one real output column, restore f32 for callers
    return out[:B, :1].astype(jnp.float32)


def discriminator_forward(x, prepared, *, bm=512):
    """Public entry point.

    Tries single-buffered resident weights (pl.Buffered(1)); falls back to the
    default double-buffered BlockSpecs on jax builds that reject pipeline_mode
    on pallas_call BlockSpecs.  Both paths are numerically identical.
    """
    global _SINGLE_BUFFER_WEIGHTS
    if _SINGLE_BUFFER_WEIGHTS:
        try:
            return _forward(x, prepared, bm=bm, single_buffer=True)
        except Exception:
            _SINGLE_BUFFER_WEIGHTS = False
    return _forward(x, prepared, bm=bm, single_buffer=False)


def init_params(key, input_dim):
    """PyTorch-Linear-style init U(-1/sqrt(in), 1/sqrt(in)); weights stored [in, out]."""
    dims = [(input_dim, H1), (H1, H2), (H2, H3), (H3, 1)]
    params = {}
    keys = jax.random.split(key, 2 * len(dims))
    for idx, (d_in, d_out) in enumerate(dims):
        bound = 1.0 / (d_in ** 0.5)
        params[f"w{idx + 1}"] = jax.random.uniform(
            keys[2 * idx], (d_in, d_out), minval=-bound, maxval=bound,
            dtype=jnp.float32)
        params[f"b{idx + 1}"] = jax.random.uniform(
            keys[2 * idx + 1], (1, d_out), minval=-bound, maxval=bound,
            dtype=jnp.float32)
    return params


def reference_forward(x, params):
    h = x
    for i in range(1, 4):
        h = h @ params[f"w{i}"] + params[f"b{i}"]
        h = jnp.where(h > 0, h, 0.2 * h)
    h = h @ params["w4"] + params["b4"]
    return jax.nn.sigmoid(h)


if __name__ == "__main__":
    key = jax.random.PRNGKey(0)
    k_x, k_p, k_x2 = jax.random.split(key, 3)

    input_dim = 32
    params = init_params(k_p, input_dim)
    prepared = prepare_params(params)   # one-time bf16 cast + OUT_PAD padding

    # Tiny batch: single 16-row tile, grid=(1,).
    batch = 8
    x = jax.random.normal(k_x, (batch, input_dim), dtype=jnp.float32)
    out = jax.block_until_ready(discriminator_forward(x, prepared))
    ref = reference_forward(x, params)
    assert out.shape == (batch, 1) and out.dtype == jnp.float32
    assert jnp.allclose(out, ref, atol=3e-2, rtol=3e-2), "mismatch (small batch)"

    # Mid-size, non-multiple batch: padded 500 -> 512, split into two 256-row
    # tiles (grid=(2,)) so both v7x TensorCores get work.
    batch2 = 500
    x2 = jax.random.normal(k_x2, (batch2, input_dim), dtype=jnp.float32)
    out2 = jax.block_until_ready(discriminator_forward(x2, prepared))
    ref2 = reference_forward(x2, params)
    assert out2.shape == (batch2, 1)
    assert jnp.allclose(out2, ref2, atol=3e-2, rtol=3e-2), "mismatch (tiled batch)"

    print("KERNEL_OK")
</pallas_src>

<mosaic_0001>
module attributes {stable_mosaic.version = 11 : i64} {
  func.func @discriminator_kernel(%arg0: i32, %arg1: memref<16x32xbf16, #tpu.memory_space<vmem>>, %arg2: memref<32x1024xbf16, #tpu.memory_space<vmem>>, %arg3: memref<1x1024xf32, #tpu.memory_space<vmem>>, %arg4: memref<1024x512xbf16, #tpu.memory_space<vmem>>, %arg5: memref<1x512xf32, #tpu.memory_space<vmem>>, %arg6: memref<512x256xbf16, #tpu.memory_space<vmem>>, %arg7: memref<1x256xf32, #tpu.memory_space<vmem>>, %arg8: memref<256x128xbf16, #tpu.memory_space<vmem>>, %arg9: memref<1x128xf32, #tpu.memory_space<vmem>>, %arg10: memref<16x128xbf16, #tpu.memory_space<vmem>>) attributes {dimension_semantics = [#tpu.dimension_semantics<parallel>], iteration_bounds = array<i64: 1>, scalar_prefetch = 0 : i64, scratch_operands = 0 : i64, tpu.core_type = #tpu.core_type<tc>, window_params = [{transform_indices = @transform_0, window_bounds = array<i64: 16, 32>}, {pipeline_mode = #tpu.pipeline_mode<synchronous>, transform_indices = @transform_1, window_bounds = array<i64: 32, 1024>}, {pipeline_mode = #tpu.pipeline_mode<synchronous>, transform_indices = @transform_2, window_bounds = array<i64: 1, 1024>}, {pipeline_mode = #tpu.pipeline_mode<synchronous>, transform_indices = @transform_3, window_bounds = array<i64: 1024, 512>}, {pipeline_mode = #tpu.pipeline_mode<synchronous>, transform_indices = @transform_4, window_bounds = array<i64: 1, 512>}, {pipeline_mode = #tpu.pipeline_mode<synchronous>, transform_indices = @transform_5, window_bounds = array<i64: 512, 256>}, {pipeline_mode = #tpu.pipeline_mode<synchronous>, transform_indices = @transform_6, window_bounds = array<i64: 1, 256>}, {pipeline_mode = #tpu.pipeline_mode<synchronous>, transform_indices = @transform_7, window_bounds = array<i64: 256, 128>}, {pipeline_mode = #tpu.pipeline_mode<synchronous>, transform_indices = @transform_8, window_bounds = array<i64: 1, 128>}, {transform_indices = @transform_9, window_bounds = array<i64: 16, 128>}]} {
    %c0 = arith.constant 0 : index
    %c0_0 = arith.constant 0 : index
    %0 = vector.load %arg1[%c0, %c0_0] : memref<16x32xbf16, #tpu.memory_space<vmem>>, vector<16x32xbf16>
    %c0_1 = arith.constant 0 : index
    %c0_2 = arith.constant 0 : index
    %1 = vector.load %arg2[%c0_1, %c0_2] : memref<32x1024xbf16, #tpu.memory_space<vmem>>, vector<32x1024xbf16>
    %cst = arith.constant dense<0.000000e+00> : vector<16x1024xf32>
    %2 = tpu.matmul %0, %1, %cst {dimension_numbers = #tpu.dot_dimension_numbers<[1], [0], [0], [1], [0, 0, 1, 1], [], []>} : vector<16x32xbf16>, vector<32x1024xbf16>, vector<16x1024xf32> -> vector<16x1024xf32>
    %c0_3 = arith.constant 0 : index
    %c0_4 = arith.constant 0 : index
    %3 = vector.load %arg3[%c0_3, %c0_4] : memref<1x1024xf32, #tpu.memory_space<vmem>>, vector<1x1024xf32>
    %4 = vector.broadcast %3 : vector<1x1024xf32> to vector<16x1024xf32>
    %5 = arith.addf %2, %4 : vector<16x1024xf32>
    %cst_5 = arith.constant 2.000000e-01 : f32
    %6 = vector.broadcast %cst_5 : f32 to vector<16x1024xf32>
    %7 = arith.mulf %6, %5 : vector<16x1024xf32>
    %8 = arith.maximumf %5, %7 : vector<16x1024xf32>
    %9 = arith.truncf %8 : vector<16x1024xf32> to vector<16x1024xbf16>
    %c0_6 = arith.constant 0 : index
    %c0_7 = arith.constant 0 : index
    %10 = vector.load %arg4[%c0_6, %c0_7] : memref<1024x512xbf16, #tpu.memory_space<vmem>>, vector<1024x512xbf16>
    %cst_8 = arith.constant dense<0.000000e+00> : vector<16x512xf32>
    %11 = tpu.matmul %9, %10, %cst_8 {dimension_numbers = #tpu.dot_dimension_numbers<[1], [0], [0], [1], [0, 0, 1, 1], [], []>} : vector<16x1024xbf16>, vector<1024x512xbf16>, vector<16x512xf32> -> vector<16x512xf32>
    %c0_9 = arith.constant 0 : index
    %c0_10 = arith.constant 0 : index
    %12 = vector.load %arg5[%c0_9, %c0_10] : memref<1x512xf32, #tpu.memory_space<vmem>>, vector<1x512xf32>
    %13 = vector.broadcast %12 : vector<1x512xf32> to vector<16x512xf32>
    %14 = arith.addf %11, %13 : vector<16x512xf32>
    %cst_11 = arith.constant 2.000000e-01 : f32
    %15 = vector.broadcast %cst_11 : f32 to vector<16x512xf32>
    %16 = arith.mulf %15, %14 : vector<16x512xf32>
    %17 = arith.maximumf %14, %16 : vector<16x512xf32>
    %18 = arith.truncf %17 : vector<16x512xf32> to vector<16x512xbf16>
    %c0_12 = arith.constant 0 : index
    %c0_13 = arith.constant 0 : index
    %19 = vector.load %arg6[%c0_12, %c0_13] : memref<512x256xbf16, #tpu.memory_space<vmem>>, vector<512x256xbf16>
    %cst_14 = arith.constant dense<0.000000e+00> : vector<16x256xf32>
    %20 = tpu.matmul %18, %19, %cst_14 {dimension_numbers = #tpu.dot_dimension_numbers<[1], [0], [0], [1], [0, 0, 1, 1], [], []>} : vector<16x512xbf16>, vector<512x256xbf16>, vector<16x256xf32> -> vector<16x256xf32>
    %c0_15 = arith.constant 0 : index
    %c0_16 = arith.constant 0 : index
    %21 = vector.load %arg7[%c0_15, %c0_16] : memref<1x256xf32, #tpu.memory_space<vmem>>, vector<1x256xf32>
    %22 = vector.broadcast %21 : vector<1x256xf32> to vector<16x256xf32>
    %23 = arith.addf %20, %22 : vector<16x256xf32>
    %cst_17 = arith.constant 2.000000e-01 : f32
    %24 = vector.broadcast %cst_17 : f32 to vector<16x256xf32>
    %25 = arith.mulf %24, %23 : vector<16x256xf32>
    %26 = arith.maximumf %23, %25 : vector<16x256xf32>
    %27 = arith.truncf %26 : vector<16x256xf32> to vector<16x256xbf16>
    %c0_18 = arith.constant 0 : index
    %c0_19 = arith.constant 0 : index
    %28 = vector.load %arg8[%c0_18, %c0_19] : memref<256x128xbf16, #tpu.memory_space<vmem>>, vector<256x128xbf16>
    %cst_20 = arith.constant dense<0.000000e+00> : vector<16x128xf32>
    %29 = tpu.matmul %27, %28, %cst_20 {dimension_numbers = #tpu.dot_dimension_numbers<[1], [0], [0], [1], [0, 0, 1, 1], [], []>} : vector<16x256xbf16>, vector<256x128xbf16>, vector<16x128xf32> -> vector<16x128xf32>
    %c0_21 = arith.constant 0 : index
    %c0_22 = arith.constant 0 : index
    %30 = vector.load %arg9[%c0_21, %c0_22] : memref<1x128xf32, #tpu.memory_space<vmem>>, vector<1x128xf32>
    %31 = vector.broadcast %30 : vector<1x128xf32> to vector<16x128xf32>
    %32 = arith.addf %29, %31 : vector<16x128xf32>
    %33 = arith.negf %32 : vector<16x128xf32>
    %34 = math.exp %33 : vector<16x128xf32>
    %cst_23 = arith.constant 1.000000e+00 : f32
    %35 = vector.broadcast %cst_23 : f32 to vector<16x128xf32>
    %36 = arith.addf %35, %34 : vector<16x128xf32>
    %37 = arith.divf %35, %36 : vector<16x128xf32>
    %38 = arith.truncf %37 : vector<16x128xf32> to vector<16x128xbf16>
    %c0_24 = arith.constant 0 : index
    %c0_25 = arith.constant 0 : index
    %39 = vector.load %arg10[%c0_24, %c0_25] : memref<16x128xbf16, #tpu.memory_space<vmem>>, vector<16x128xbf16>
    tpu.vector_store %arg10[%c0_24, %c0_25], %38 {strides = array<i32>} : memref<16x128xbf16, #tpu.memory_space<vmem>>, vector<16x128xbf16>,
    return
  }
  func.func @transform_0(%arg0: i32) -> (i32, i32) {
    %c0_i32 = arith.constant 0 : i32
    %c0_i32_0 = arith.constant 0 : i32
    return %arg0, %c0_i32 : i32, i32
  }
  func.func @transform_1(%arg0: i32) -> (i32, i32) {
    %c0_i32 = arith.constant 0 : i32
    %c0_i32_0 = arith.constant 0 : i32
    %c0_i32_1 = arith.constant 0 : i32
    return %c0_i32, %c0_i32_0 : i32, i32
  }
  func.func @transform_2(%arg0: i32) -> (i32, i32) {
    %c0_i32 = arith.constant 0 : i32
    %c0_i32_0 = arith.constant 0 : i32
    %c0_i32_1 = arith.constant 0 : i32
    return %c0_i32, %c0_i32_0 : i32, i32
  }
  func.func @transform_3(%arg0: i32) -> (i32, i32) {
    %c0_i32 = arith.constant 0 : i32
    %c0_i32_0 = arith.constant 0 : i32
    %c0_i32_1 = arith.constant 0 : i32
    return %c0_i32, %c0_i32_0 : i32, i32
  }
  func.func @transform_4(%arg0: i32) -> (i32, i32) {
    %c0_i32 = arith.constant 0 : i32
    %c0_i32_0 = arith.constant 0 : i32
    %c0_i32_1 = arith.constant 0 : i32
    return %c0_i32, %c0_i32_0 : i32, i32
  }
  func.func @transform_5(%arg0: i32) -> (i32, i32) {
    %c0_i32 = arith.constant 0 : i32
    %c0_i32_0 = arith.constant 0 : i32
    %c0_i32_1 = arith.constant 0 : i32
    return %c0_i32, %c0_i32_0 : i32, i32
  }
  func.func @transform_6(%arg0: i32) -> (i32, i32) {
    %c0_i32 = arith.constant 0 : i32
    %c0_i32_0 = arith.constant 0 : i32
    %c0_i32_1 = arith.constant 0 : i32
    return %c0_i32, %c0_i32_0 : i32, i32
  }
  func.func @transform_7(%arg0: i32) -> (i32, i32) {
    %c0_i32 = arith.constant 0 : i32
    %c0_i32_0 = arith.constant 0 : i32
    %c0_i32_1 = arith.constant 0 : i32
    return %c0_i32, %c0_i32_0 : i32, i32
  }
  func.func @transform_8(%arg0: i32) -> (i32, i32) {
    %c0_i32 = arith.constant 0 : i32
    %c0_i32_0 = arith.constant 0 : i32
    %c0_i32_1 = arith.constant 0 : i32
    return %c0_i32, %c0_i32_0 : i32, i32
  }
  func.func @transform_9(%arg0: i32) -> (i32, i32) {
    %c0_i32 = arith.constant 0 : i32
    %c0_i32_0 = arith.constant 0 : i32
    return %arg0, %c0_i32 : i32, i32
  }
}

module attributes {stable_mosaic.version = 11 : i64} {
  func.func @discriminator_kernel(%arg0: i32, %arg1: memref<16x32xbf16, #tpu.memory_space<vmem>>, %arg2: memref<32x1024xbf16, #tpu.memory_space<vmem>>, %arg3: memref<1x1024xf32, #tpu.memory_space<vmem>>, %arg4: memref<1024x512xbf16, #tpu.memory_space<vmem>>, %arg5: memref<1x512xf32, #tpu.memory_space<vmem>>, %arg6: memref<512x256xbf16, #tpu.memory_space<vmem>>, %arg7: memref<1x256xf32, #tpu.memory_space<vmem>>, %arg8: memref<256x128xbf16, #tpu.memory_space<vmem>>, %arg9: memref<1x128xf32, #tpu.memory_space<vmem>>, %arg10: memref<16x128xbf16, #tpu.memory_space<vmem>>) attributes {dimension_semantics = [#tpu.dimension_semantics<parallel>], iteration_bounds = array<i64: 1>, scalar_prefetch = 0 : i64, scratch_operands = 0 : i64, tpu.core_type = #tpu.core_type<tc>, window_params = [{transform_indices = @transform_0, window_bounds = array<i64: 16, 32>}, {pipeline_mode = #tpu.pipeline_mode<synchronous>, transform_indices = @transform_1, window_bounds = array<i64: 32, 1024>}, {pipeline_mode = #tpu.pipeline_mode<synchronous>, transform_indices = @transform_2, window_bounds = array<i64: 1, 1024>}, {pipeline_mode = #tpu.pipeline_mode<synchronous>, transform_indices = @transform_3, window_bounds = array<i64: 1024, 512>}, {pipeline_mode = #tpu.pipeline_mode<synchronous>, transform_indices = @transform_4, window_bounds = array<i64: 1, 512>}, {pipeline_mode = #tpu.pipeline_mode<synchronous>, transform_indices = @transform_5, window_bounds = array<i64: 512, 256>}, {pipeline_mode = #tpu.pipeline_mode<synchronous>, transform_indices = @transform_6, window_bounds = array<i64: 1, 256>}, {pipeline_mode = #tpu.pipeline_mode<synchronous>, transform_indices = @transform_7, window_bounds = array<i64: 256, 128>}, {pipeline_mode = #tpu.pipeline_mode<synchronous>, transform_indices = @transform_8, window_bounds = array<i64: 1, 128>}, {transform_indices = @transform_9, window_bounds = array<i64: 16, 128>}]} {
    %c0 = arith.constant 0 : index
    %c0_0 = arith.constant 0 : index
    %0 = vector.load %arg1[%c0, %c0_0] : memref<16x32xbf16, #tpu.memory_space<vmem>>, vector<16x32xbf16>
    %c0_1 = arith.constant 0 : index
    %c0_2 = arith.constant 0 : index
    %1 = vector.load %arg2[%c0_1, %c0_2] : memref<32x1024xbf16, #tpu.memory_space<vmem>>, vector<32x1024xbf16>
    %cst = arith.constant dense<0.000000e+00> : vector<16x1024xf32>
    %2 = tpu.matmul %0, %1, %cst {dimension_numbers = #tpu.dot_dimension_numbers<[1], [0], [0], [1], [0, 0, 1, 1], [], []>} : vector<16x32xbf16>, vector<32x1024xbf16>, vector<16x1024xf32> -> vector<16x1024xf32>
    %c0_3 = arith.constant 0 : index
    %c0_4 = arith.constant 0 : index
    %3 = vector.load %arg3[%c0_3, %c0_4] : memref<1x1024xf32, #tpu.memory_space<vmem>>, vector<1x1024xf32>
    %4 = vector.broadcast %3 : vector<1x1024xf32> to vector<16x1024xf32>
    %5 = arith.addf %2, %4 : vector<16x1024xf32>
    %cst_5 = arith.constant 2.000000e-01 : f32
    %6 = vector.broadcast %cst_5 : f32 to vector<16x1024xf32>
    %7 = arith.mulf %6, %5 : vector<16x1024xf32>
    %8 = arith.maximumf %5, %7 : vector<16x1024xf32>
    %9 = arith.truncf %8 : vector<16x1024xf32> to vector<16x1024xbf16>
    %c0_6 = arith.constant 0 : index
    %c0_7 = arith.constant 0 : index
    %10 = vector.load %arg4[%c0_6, %c0_7] : memref<1024x512xbf16, #tpu.memory_space<vmem>>, vector<1024x512xbf16>
    %cst_8 = arith.constant dense<0.000000e+00> : vector<16x512xf32>
    %11 = tpu.matmul %9, %10, %cst_8 {dimension_numbers = #tpu.dot_dimension_numbers<[1], [0], [0], [1], [0, 0, 1, 1], [], []>} : vector<16x1024xbf16>, vector<1024x512xbf16>, vector<16x512xf32> -> vector<16x512xf32>
    %c0_9 = arith.constant 0 : index
    %c0_10 = arith.constant 0 : index
    %12 = vector.load %arg5[%c0_9, %c0_10] : memref<1x512xf32, #tpu.memory_space<vmem>>, vector<1x512xf32>
    %13 = vector.broadcast %12 : vector<1x512xf32> to vector<16x512xf32>
    %14 = arith.addf %11, %13 : vector<16x512xf32>
    %cst_11 = arith.constant 2.000000e-01 : f32
    %15 = vector.broadcast %cst_11 : f32 to vector<16x512xf32>
    %16 = arith.mulf %15, %14 : vector<16x512xf32>
    %17 = arith.maximumf %14, %16 : vector<16x512xf32>
    %18 = arith.truncf %17 : vector<16x512xf32> to vector<16x512xbf16>
    %c0_12 = arith.constant 0 : index
    %c0_13 = arith.constant 0 : index
    %19 = vector.load %arg6[%c0_12, %c0_13] : memref<512x256xbf16, #tpu.memory_space<vmem>>, vector<512x256xbf16>
    %cst_14 = arith.constant dense<0.000000e+00> : vector<16x256xf32>
    %20 = tpu.matmul %18, %19, %cst_14 {dimension_numbers = #tpu.dot_dimension_numbers<[1], [0], [0], [1], [0, 0, 1, 1], [], []>} : vector<16x512xbf16>, vector<512x256xbf16>, vector<16x256xf32> -> vector<16x256xf32>
    %c0_15 = arith.constant 0 : index
    %c0_16 = arith.constant 0 : index
    %21 = vector.load %arg7[%c0_15, %c0_16] : memref<1x256xf32, #tpu.memory_space<vmem>>, vector<1x256xf32>
    %22 = vector.broadcast %21 : vector<1x256xf32> to vector<16x256xf32>
    %23 = arith.addf %20, %22 : vector<16x256xf32>
    %cst_17 = arith.constant 2.000000e-01 : f32
    %24 = vector.broadcast %cst_17 : f32 to vector<16x256xf32>
    %25 = arith.mulf %24, %23 : vector<16x256xf32>
    %26 = arith.maximumf %23, %25 : vector<16x256xf32>
    %27 = arith.truncf %26 : vector<16x256xf32> to vector<16x256xbf16>
    %c0_18 = arith.constant 0 : index
    %c0_19 = arith.constant 0 : index
    %28 = vector.load %arg8[%c0_18, %c0_19] : memref<256x128xbf16, #tpu.memory_space<vmem>>, vector<256x128xbf16>
    %cst_20 = arith.constant dense<0.000000e+00> : vector<16x128xf32>
    %29 = tpu.matmul %27, %28, %cst_20 {dimension_numbers = #tpu.dot_dimension_numbers<[1], [0], [0], [1], [0, 0, 1, 1], [], []>} : vector<16x256xbf16>, vector<256x128xbf16>, vector<16x128xf32> -> vector<16x128xf32>
    %c0_21 = arith.constant 0 : index
    %c0_22 = arith.constant 0 : index
    %30 = vector.load %arg9[%c0_21, %c0_22] : memref<1x128xf32, #tpu.memory_space<vmem>>, vector<1x128xf32>
    %31 = vector.broadcast %30 : vector<1x128xf32> to vector<16x128xf32>
    %32 = arith.addf %29, %31 : vector<16x128xf32>
    %33 = arith.negf %32 : vector<16x128xf32>
    %34 = math.exp %33 : vector<16x128xf32>
    %cst_23 = arith.constant 1.000000e+00 : f32
    %35 = vector.broadcast %cst_23 : f32 to vector<16x128xf32>
    %36 = arith.addf %35, %34 : vector<16x128xf32>
    %37 = arith.divf %35, %36 : vector<16x128xf32>
    %38 = arith.truncf %37 : vector<16x128xf32> to vector<16x128xbf16>
    %c0_24 = arith.constant 0 : index
    %c0_25 = arith.constant 0 : index
    %39 = vector.load %arg10[%c0_24, %c0_25] : memref<16x128xbf16, #tpu.memory_space<vmem>>, vector<16x128xbf16>
    tpu.vector_store %arg10[%c0_24, %c0_25], %38 {strides = array<i32>} : memref<16x128xbf16, #tpu.memory_space<vmem>>, vector<16x128xbf16>,
    return
  }
  func.func @transform_0(%arg0: i32) -> (i32, i32) {
    %c0_i32 = arith.constant 0 : i32
    %c0_i32_0 = arith.constant 0 : i32
    return %arg0, %c0_i32 : i32, i32
  }
  func.func @transform_1(%arg0: i32) -> (i32, i32) {
    %c0_i32 = arith.constant 0 : i32
    %c0_i32_0 = arith.constant 0 : i32
    %c0_i32_1 = arith.constant 0 : i32
    return %c0_i32, %c0_i32_0 : i32, i32
  }
  func.func @transform_2(%arg0: i32) -> (i32, i32) {
    %c0_i32 = arith.constant 0 : i32
    %c0_i32_0 = arith.constant 0 : i32
    %c0_i32_1 = arith.constant 0 : i32
    return %c0_i32, %c0_i32_0 : i32, i32
  }
  func.func @transform_3(%arg0: i32) -> (i32, i32) {
    %c0_i32 = arith.constant 0 : i32
    %c0_i32_0 = arith.constant 0 : i32
    %c0_i32_1 = arith.constant 0 : i32
    return %c0_i32, %c0_i32_0 : i32, i32
  }
  func.func @transform_4(%arg0: i32) -> (i32, i32) {
    %c0_i32 = arith.constant 0 : i32
    %c0_i32_0 = arith.constant 0 : i32
    %c0_i32_1 = arith.constant 0 : i32
    return %c0_i32, %c0_i32_0 : i32, i32
  }
  func.func @transform_5(%arg0: i32) -> (i32, i32) {
    %c0_i32 = arith.constant 0 : i32
    %c0_i32_0 = arith.constant 0 : i32
    %c0_i32_1 = arith.constant 0 : i32
    return %c0_i32, %c0_i32_0 : i32, i32
  }
  func.func @transform_6(%arg0: i32) -> (i32, i32) {
    %c0_i32 = arith.constant 0 : i32
    %c0_i32_0 = arith.constant 0 : i32
    %c0_i32_1 = arith.constant 0 : i32
    return %c0_i32, %c0_i32_0 : i32, i32
  }
  func.func @transform_7(%arg0: i32) -> (i32, i32) {
    %c0_i32 = arith.constant 0 : i32
    %c0_i32_0 = arith.constant 0 : i32
    %c0_i32_1 = arith.constant 0 : i32
    return %c0_i32, %c0_i32_0 : i32, i32
  }
  func.func @transform_8(%arg0: i32) -> (i32, i32) {
    %c0_i32 = arith.constant 0 : i32
    %c0_i32_0 = arith.constant 0 : i32
    %c0_i32_1 = arith.constant 0 : i32
    return %c0_i32, %c0_i32_0 : i32, i32
  }
  func.func @transform_9(%arg0: i32) -> (i32, i32) {
    %c0_i32 = arith.constant 0 : i32
    %c0_i32_0 = arith.constant 0 : i32
    return %arg0, %c0_i32 : i32, i32
  }
}

</mosaic_0001>

<bundles_post_ra>
// kernel: _forward.1
= control target key start
LH: loop header
LB: loop body
LE: loop exit
PB: predicated region body
PF: predicated region fallthrough
CT: control target
= control target key end

     0   :  { %14 = vsyncpa [#allocation3], 0  ;;  %s4258_s0 = inlined_call_operand.vmem [shape: bf16[16,32], index: 0, kind: input, shape index: {}]   ;;  %s4259_s1 = inlined_call_operand.hbm [shape: bf16[32,1024], index: 1, kind: input, shape index: {}]   ;;  %s4260_s2 = inlined_call_operand.vmem [shape: f32[1,1024], index: 2, kind: input, shape index: {}]   ;;  %s4261_s3 = inlined_call_operand.hbm [shape: bf16[1024,512], index: 3, kind: input, shape index: {}]   ;;  %s4262_s4 = inlined_call_operand.vmem [shape: f32[1,512], index: 4, kind: input, shape index: {}]   ;;  %s4263_s5 = inlined_call_operand.hbm [shape: bf16[512,256], index: 5, kind: input, shape index: {}]   ;;  %s4264_s6 = inlined_call_operand.vmem [shape: f32[1,256], index: 6, kind: input, shape index: {}]   ;;  %s4265_s7 = inlined_call_operand.hbm [shape: bf16[256,128], index: 7, kind: input, shape index: {}]   ;;  %s4266_s8 = inlined_call_operand.vmem [shape: f32[1,128], index: 8, kind: input, shape index: {}]   ;;  %s4267_s9 = inlined_call_operand.vmem [shape: bf16[16,128], index: 9, kind: output, shape index: {}]  }
   0x1   :  { %15 = vsyncpa [#allocation5], 0 }
   0x2   :  { %16 = vsyncpa [#allocation8], 0  ;;  %s4063_s30 = smov [#allocation4]  }
   0x3   :  { %s38_s10 = sshll.u32 %s4063_s30, 4  ;;  %s39_s10 = int_to_ptr.vmem [resolvable:$true] %s38_s10 }
   0x4   :  { %s3985_s11 = scalar_lea.vmem %s39_s10, 32768  ;;  %p3990_p1 = scmp.lt.s32.totalorder %s39_s10, %s39_s10 }
   0x5   :  { %p3986_p0 = scmp.ne.s32.totalorder %s39_s10, %s3985_s11  ;;  %p3991_p2 = scmp.lt.s32.totalorder %s3985_s11, %s3985_s11 }
   0x7   :  { %p3992_p3 = por %p3991_p2, %p3990_p1 }
   0x9   :  { %p3993_p4 = pnand %p3992_p3, %p3986_p0 }
   0xb   :  { %3996 = shalt.err (!%p3993_p4)
}
   0xc   :  { %s4064_s12 = smov 256   ;;  %s4065_s13 = smov 16  }
   0xd   :  { %44 = dma.hbm_to_vmem [thread:$0]  %s4261_s3, 32768, %s39_s10, [#allocation5], %s4064_s12, %s4064_s12, %s4065_s13  }
   0xe   :  { %s4066_s16 = smov [#allocation2]  }
   0xf   :  { %s24_s17 = sshll.u32 %s4066_s16, 4  ;;  %s25_s17 = int_to_ptr.vmem [resolvable:$true] %s24_s17 }
  0x10   :  { %s4005_s18 = scalar_lea.vmem %s25_s17, 2048  ;;  %p4010_p6 = scmp.lt.s32.totalorder %s25_s17, %s25_s17 }
  0x11   :  { %p4006_p5 = scmp.ne.s32.totalorder %s25_s17, %s4005_s18  ;;  %p4011_p7 = scmp.lt.s32.totalorder %s4005_s18, %s4005_s18 }
  0x13   :  { %p4012_p8 = por %p4011_p7, %p4010_p6 }
  0x15   :  { %p4013_p9 = pnand %p4012_p8, %p4006_p5 }
  0x17   :  { %4016 = shalt.err (!%p4013_p9)
}
  0x18   :  { %s4067_s19 = smov 512   ;;  %s4068_s20 = smov 32  }
  0x19   :  { %30 = dma.hbm_to_vmem [thread:$0]  %s4259_s1, 2048, %s25_s17, [#allocation3], %s4067_s19, %s4067_s19, %s4068_s20  }
  0x1a   :  { %s4069_s23 = smov [#allocation6]  }
  0x1b   :  { %s52_s24 = sshll.u32 %s4069_s23, 4  ;;  %s53_s24 = int_to_ptr.vmem [resolvable:$true] %s52_s24 }
  0x1c   :  { %s4025_s3 = scalar_lea.vmem %s53_s24, 8192  ;;  %p4030_p11 = scmp.lt.s32.totalorder %s53_s24, %s53_s24 }
  0x1d   :  { %p4026_p10 = scmp.ne.s32.totalorder %s53_s24, %s4025_s3  ;;  %p4031_p12 = scmp.lt.s32.totalorder %s4025_s3, %s4025_s3 }
  0x1f   :  { %p4032_p13 = por %p4031_p12, %p4030_p11 }
  0x21   :  { %p4033_p0 = pnand %p4032_p13, %p4026_p10 }
  0x23   :  { %4036 = shalt.err (!%p4033_p0)
}
  0x24   :  { %s4070_s25 = smov 128   ;;  %s4071_s26 = smov 8  }
  0x25   :  { %58 = dma.hbm_to_vmem [thread:$0]  %s4263_s5, 8192, %s53_s24, [#allocation5], %s4070_s25, %s4070_s25, %s4071_s26  }
  0x26   :  { %s4072_s29 = smov [#allocation7]  }
  0x27   :  { %s66_s30 = sshll.u32 %s4072_s29, 4  ;;  %s67_s30 = int_to_ptr.vmem [resolvable:$true] %s66_s30 }
  0x28   :  { %s4045_s1 = scalar_lea.vmem %s67_s30, 2048  ;;  %p4050_p2 = scmp.lt.s32.totalorder %s67_s30, %s67_s30 }
  0x29   :  { %p4046_p1 = scmp.ne.s32.totalorder %s67_s30, %s4045_s1  ;;  %p4051_p3 = scmp.lt.s32.totalorder %s4045_s1, %s4045_s1 }
  0x2b   :  { %p4052_p4 = por %p4051_p3, %p4050_p2 }
  0x2d   :  { %p4053_p5 = pnand %p4052_p4, %p4046_p1 }
  0x2f   :  { %4056 = shalt.err (!%p4053_p5)
}
  0x30   :  { %s4073_s10 = smov 64   ;;  %s4074_s11 = smov 4  }
  0x31   :  { %72 = dma.hbm_to_vmem [thread:$0]  %s4265_s7, 2048, %s67_s30, [#allocation8], %s4073_s10, %s4073_s10, %s4074_s11  }
  0x32   :  { %4057 = dma.done.wait [#allocation3], 2048  }
  0x33   :  { %4058 = vsyncadd [#allocation3], 4294965248 }
  0x34   :  { %4059 = dma.done.wait [#allocation5], 40960  }
  0x35   :  { %4060 = vsyncadd [#allocation5], 4294926336 }
  0x36   :  { %4061 = dma.done.wait [#allocation8], 2048  }
  0x37   :  { %4062 = vsyncadd [#allocation8], 4294965248  ;;  %v4075_v0 = vmov 0   ;;  %v98_v1 = vld [vmem:[#allocation2 + $0x40] sm:$0xff]  ;;  %v99_v8 = vld [vmem:[#allocation2 + $0x48] sm:$0xff]  ;;  %vm233_vm0 = vcmask 261120  }
  0x38   :  { %269 = vmatprep.mubr.bf16.mxu1 %v4075_v0  ;;  %v102_v2 = vld [vmem:[#allocation2 + $0x60] sm:$0xff]  ;;  %v103_v9 = vld [vmem:[#allocation2 + $0x68] sm:$0xff]  ;;  %v100_v18 = vld [vmem:[#allocation2 + $0x50] sm:$0xff] }
  0x39   :  { %v90_v3 = vld [vmem:[#allocation2] sm:$0xff]  ;;  %v3078_v4 = vcombine.high %v98_v1, %v102_v2  ;;  %v3077_v5 = vcombine.low %v98_v1, %v102_v2  ;;  %v3080_v12 = vcombine.high %v99_v8, %v103_v9  ;;  %v91_v13 = vld [vmem:[#allocation2 + $0x8] sm:$0xff]  ;;  %v3079_v17 = vcombine.low %v99_v8, %v103_v9  ;;  %v104_v21 = vld [vmem:[#allocation2 + $0x70] sm:$0xff] }
  0x3a   :  { %v94_v6 = vld [vmem:[#allocation2 + $0x20] sm:$0xff]  ;;  %v95_v14 = vld [vmem:[#allocation2 + $0x28] sm:$0xff]  ;;  %v3082_v25 = vcombine.high %v100_v18, %v104_v21  ;;  %v92_v26 = vld [vmem:[#allocation2 + $0x10] sm:$0xff]  ;;  %v3081_v30 = vcombine.low %v100_v18, %v104_v21 }
  0x3b   :  { %v3070_v7 = vcombine.high %v90_v3, %v94_v6  ;;  %249 = vmatprep.subr.bf16.mxu1 %v3078_v4  ;;  %v3069_v10 = vcombine.low %v90_v3, %v94_v6  ;;  %v4142_v11 = vld [vmem:[%s4258_s0] sm:$0xff]   ;;  %v3072_v20 = vcombine.high %v91_v13, %v95_v14  ;;  %v3071_v24 = vcombine.low %v91_v13, %v95_v14  ;;  %v96_v27 = vld [vmem:[#allocation2 + $0x30] sm:$0xff]  ;;  %v101_v31 = vld [vmem:[#allocation2 + $0x58] sm:$0xff] }
  0x3c   :  { %250 = vmatpush1.bf16.msra.mxu1 %v3077_v5  ;;  %v3473_v15 = vld [vmem:[#allocation4 + $0xe4] ss:$16 sps:$4 sm:$0xff]   ;;  %v3475_v16 = vld [vmem:[#allocation4 + $0xe0] ss:$16 sps:$4 sm:$0xff]   ;;  %v3074_v32 = vcombine.high %v92_v26, %v96_v27  ;;  %v105_v33 = vld [vmem:[#allocation2 + $0x78] sm:$0xff]  ;;  %v3073_v36 = vcombine.low %v92_v26, %v96_v27 }
  0x3d   :  { %251 = vmatprep.subr.bf16.mxu1 %v3070_v7  ;;  %v3476_v19 = vld [vmem:[#allocation4 + $0xc4] ss:$16 sps:$4 sm:$0xff]   ;;  %2007 = vmatprep.subr.bf16.mxu0 %v3473_v15  ;;  %v3478_v22 = vld [vmem:[#allocation4 + $0xc0] ss:$16 sps:$4 sm:$0xff]   ;;  %v3084_v37 = vcombine.high %v101_v31, %v105_v33  ;;  %v93_v38 = vld [vmem:[#allocation2 + $0x18] sm:$0xff]  ;;  %v3083_v42 = vcombine.low %v101_v31, %v105_v33 }
  0x3e   :  { %2008 = vmatpush1.bf16.msra.mxu0 %v3475_v16  ;;  %v3479_v23 = vld [vmem:[#allocation4 + $0xa4] ss:$16 sps:$4 sm:$0xff]   ;;  %v3484_v28 = vld [vmem:[#allocation4 + $0xa0] ss:$16 sps:$4 sm:$0xff]   ;;  %v97_v39 = vld [vmem:[#allocation2 + $0x38] sm:$0xff] }
  0x3f   :  { %2009 = vmatprep.subr.bf16.mxu0 %v3476_v19  ;;  %v3485_v29 = vld [vmem:[#allocation4 + $0x84] ss:$16 sps:$4 sm:$0xff]   ;;  %v3490_v34 = vld [vmem:[#allocation4 + $0x80] ss:$16 sps:$4 sm:$0xff]   ;;  %v3076_v43 = vcombine.high %v93_v38, %v97_v39  ;;  %v3075_v46 = vcombine.low %v93_v38, %v97_v39 }
  0x40   :  { %252 = vmatpush1.bf16.msra.mxu1 %v3069_v10  ;;  %v3491_v35 = vld [vmem:[#allocation4 + $0x64] ss:$16 sps:$4 sm:$0xff]   ;;  %v3496_v40 = vld [vmem:[#allocation4 + $0x60] ss:$16 sps:$4 sm:$0xff]  }
  0x41   :  { %292 = vmatprep.subr.bf16.mxu1 %v3080_v12  ;;  %v3497_v41 = vld [vmem:[#allocation4 + $0x44] ss:$16 sps:$4 sm:$0xff]   ;;  %v3502_v44 = vld [vmem:[#allocation4 + $0x40] ss:$16 sps:$4 sm:$0xff]  }
  0x42   :  { %2010 = vmatpush1.bf16.msra.mxu0 %v3478_v22  ;;  %v3503_v45 = vld [vmem:[#allocation4 + $0x24] ss:$16 sps:$4 sm:$0xff]   ;;  %v3508_v48 = vld [vmem:[#allocation4 + $0x20] ss:$16 sps:$4 sm:$0xff]  }
  0x43   :  { %3085 = vmatmul.mubr.msk.bf16.vlgmr.msra.gmra.mxu1 %vm233_vm0, %v4142_v11  ;;  %2011 = vmatprep.subr.bf16.mxu0 %v3479_v23  ;;  %v3483_v47 = vld [vmem:[#allocation4 + $0x2e4] ss:$16 sps:$4 sm:$0xff]   ;;  %v3481_v50 = vld [vmem:[#allocation4 + $0x2e0] ss:$16 sps:$4 sm:$0xff]  }
  0x44   :  { %293 = vmatpush1.bf16.msra.mxu1 %v3079_v17  ;;  %312 = vmatprep.mubr.bf16.mxu1 %v4075_v0  ;;  %v3509_v49 = vld [vmem:[#allocation4 + $0x4] ss:$16 sps:$4 sm:$0xff]   ;;  %v3514_v52 = vld [vmem:[#allocation4] ss:$16 sps:$4 sm:$0xff]  }
  0x45   :  { %294 = vmatprep.subr.bf16.mxu1 %v3072_v20  ;;  %v3489_v51 = vld [vmem:[#allocation4 + $0x2c4] ss:$16 sps:$4 sm:$0xff]   ;;  %v3487_v54 = vld [vmem:[#allocation4 + $0x2c0] ss:$16 sps:$4 sm:$0xff]  }
  0x46   :  { %2012 = vmatpush1.bf16.msra.mxu0 %v3484_v28  ;;  %v3515_v53 = vld [vmem:[#allocation4 + $0x1e4] ss:$16 sps:$4 sm:$0xff]   ;;  %v3520_v56 = vld [vmem:[#allocation4 + $0x1e0] ss:$16 sps:$4 sm:$0xff]  }
  0x47   :  { %2013 = vmatprep.subr.bf16.mxu0 %v3485_v29  ;;  %v3495_v55 = vld [vmem:[#allocation4 + $0x2a4] ss:$16 sps:$4 sm:$0xff]   ;;  %v3493_v57 = vld [vmem:[#allocation4 + $0x2a0] ss:$16 sps:$4 sm:$0xff]  }
  0x48   :  { %295 = vmatpush1.bf16.msra.mxu1 %v3071_v24  ;;  %v3521_v58 = vld [vmem:[#allocation4 + $0x1c4] ss:$16 sps:$4 sm:$0xff]   ;;  %v3526_v60 = vld [vmem:[#allocation4 + $0x1c0] ss:$16 sps:$4 sm:$0xff]  }
  0x49   :  { %335 = vmatprep.subr.bf16.mxu1 %v3082_v25  ;;  %v3501_v59 = vld [vmem:[#allocation4 + $0x284] ss:$16 sps:$4 sm:$0xff]   ;;  %v3499_v62 = vld [vmem:[#allocation4 + $0x280] ss:$16 sps:$4 sm:$0xff]  }
  0x4a   :  { %2014 = vmatpush1.bf16.msra.mxu0 %v3490_v34  ;;  %v3527_v61 = vld [vmem:[#allocation4 + $0x1a4] ss:$16 sps:$4 sm:$0xff]   ;;  %v3505_v2 = vld [vmem:[#allocation4 + $0x260] ss:$16 sps:$4 sm:$0xff]  }
  0x4b   :  { %3086 = vmatmul.mubr.msk.bf16.vlgmr.msra.gmra.mxu1 %vm233_vm0, %v4142_v11  ;;  %2015 = vmatprep.subr.bf16.mxu0 %v3491_v35  ;;  %v3507_v63 = vld [vmem:[#allocation4 + $0x264] ss:$16 sps:$4 sm:$0xff]   ;;  %v3538_v4 = vld [vmem:[#allocation4 + $0x180] ss:$16 sps:$4 sm:$0xff]  }
  0x4c   :  { %336 = vmatpush1.bf16.msra.mxu1 %v3081_v30  ;;  %355 = vmatprep.mubr.bf16.mxu1 %v4075_v0  ;;  %v3533_v1 = vld [vmem:[#allocation4 + $0x184] ss:$16 sps:$4 sm:$0xff]   ;;  %v3511_v6 = vld [vmem:[#allocation4 + $0x240] ss:$16 sps:$4 sm:$0xff]  }
  0x4d   :  { %337 = vmatprep.subr.bf16.mxu1 %v3074_v32  ;;  %v3513_v3 = vld [vmem:[#allocation4 + $0x244] ss:$16 sps:$4 sm:$0xff]   ;;  %v3517_v8 = vld [vmem:[#allocation4 + $0x220] ss:$16 sps:$4 sm:$0xff]  }
  0x4e   :  { %2016 = vmatpush1.bf16.msra.mxu0 %v3496_v40  ;;  %v3539_v5 = vld [vmem:[#allocation4 + $0x164] ss:$16 sps:$4 sm:$0xff]   ;;  %v3523_v10 = vld [vmem:[#allocation4 + $0x200] ss:$16 sps:$4 sm:$0xff]  }
  0x4f   :  { %2017 = vmatprep.subr.bf16.mxu0 %v3497_v41  ;;  %v3519_v7 = vld [vmem:[#allocation4 + $0x224] ss:$16 sps:$4 sm:$0xff]   ;;  %v3529_v12 = vld [vmem:[#allocation4 + $0x3e0] ss:$16 sps:$4 sm:$0xff]  }
  0x50   :  { %338 = vmatpush1.bf16.msra.mxu1 %v3073_v36  ;;  %v3525_v9 = vld [vmem:[#allocation4 + $0x204] ss:$16 sps:$4 sm:$0xff]   ;;  %v3535_v14 = vld [vmem:[#allocation4 + $0x3c0] ss:$16 sps:$4 sm:$0xff]   ;;  %v108_v36 = vlaneseq }
  0x51   :  { %378 = vmatprep.subr.bf16.mxu1 %v3084_v37  ;;  %v3537_v13 = vld [vmem:[#allocation4 + $0x3c4] ss:$16 sps:$4 sm:$0xff]   ;;  %v3541_v16 = vld [vmem:[#allocation4 + $0x3a0] ss:$16 sps:$4 sm:$0xff]  }
  0x52   :  { %2018 = vmatpush1.bf16.msra.mxu0 %v3502_v44  ;;  %v3543_v15 = vld [vmem:[#allocation4 + $0x3a4] ss:$16 sps:$4 sm:$0xff]   ;;  %v3544_v17 = vld [vmem:[#allocation4 + $0x160] ss:$16 sps:$4 sm:$0xff]   ;;  %v4155_v37 = vshrl.u32 %v108_v36, 7 }
  0x53   :  { %3087 = vmatmul.mubr.msk.bf16.vlgmr.msra.gmra.mxu1 %vm233_vm0, %v4142_v11  ;;  %2019 = vmatprep.subr.bf16.mxu0 %v3503_v45  ;;  %v3545_v18 = vld [vmem:[#allocation4 + $0x144] ss:$16 sps:$4 sm:$0xff]   ;;  %v3547_v20 = vld [vmem:[#allocation4 + $0x380] ss:$16 sps:$4 sm:$0xff]  }
  0x54   :  { %379 = vmatpush1.bf16.msra.mxu1 %v3083_v42  ;;  %398 = vmatprep.mubr.bf16.mxu1 %v4075_v0  ;;  %v3532_v0 = vld [vmem:[#allocation4 + $0x1a0] ss:$16 sps:$4 sm:$0xff]   ;;  %v3549_v19 = vld [vmem:[#allocation4 + $0x384] ss:$16 sps:$4 sm:$0xff]   ;;  %v4158_v38 = vsub.s32 1, %v4155_v37  ;;  %v4161_v39 = vsub.s32 0, %v4155_v37 }
  0x55   :  { %380 = vmatprep.subr.bf16.mxu1 %v3076_v43  ;;  %v3550_v21 = vld [vmem:[#allocation4 + $0x140] ss:$16 sps:$4 sm:$0xff]   ;;  %v3551_v22 = vld [vmem:[#allocation4 + $0x124] ss:$16 sps:$4 sm:$0xff]  }
  0x56   :  { %2020 = vmatpush1.bf16.msra.mxu0 %v3508_v48  ;;  %v3555_v23 = vld [vmem:[#allocation4 + $0x364] ss:$16 sps:$4 sm:$0xff]   ;;  %v3553_v24 = vld [vmem:[#allocation4 + $0x360] ss:$16 sps:$4 sm:$0xff]  }
  0x57   :  { %2021 = vmatprep.subr.bf16.mxu0 %v3509_v49  ;;  %v3556_v25 = vld [vmem:[#allocation4 + $0x120] ss:$16 sps:$4 sm:$0xff]   ;;  %v3557_v26 = vld [vmem:[#allocation4 + $0x104] ss:$16 sps:$4 sm:$0xff]   ;;  %v118_v49 = vsub.s32 2, %v4155_v37 }
  0x58   :  { %381 = vmatpush1.bf16.msra.mxu1 %v3075_v46  ;;  %v3561_v27 = vld [vmem:[#allocation4 + $0x344] ss:$16 sps:$4 sm:$0xff]   ;;  %v3559_v28 = vld [vmem:[#allocation4 + $0x340] ss:$16 sps:$4 sm:$0xff]   ;;  %v122_v46 = vsub.s32 3, %v4155_v37 }
  0x59   :  { %2050 = vmatprep.subr.bf16.mxu1 %v3483_v47  ;;  %v3562_v29 = vld [vmem:[#allocation4 + $0x100] ss:$16 sps:$4 sm:$0xff]   ;;  %v3565_v30 = vld [vmem:[#allocation4 + $0x324] ss:$16 sps:$4 sm:$0xff]  }
  0x5a   :  { %2022 = vmatpush1.bf16.msra.mxu0 %v3514_v52  ;;  %v3568_v31 = vld [vmem:[#allocation4 + $0x4e4] ss:$16 sps:$4 sm:$0xff]   ;;  %v3563_v32 = vld [vmem:[#allocation4 + $0x320] ss:$16 sps:$4 sm:$0xff]  }
  0x5b   :  { %3088 = vmatmul.mubr.msk.bf16.vlgmr.msra.gmra.mxu1 %vm233_vm0, %v4142_v11  ;;  %2023 = vmatprep.subr.bf16.mxu0 %v3515_v53  ;;  %v3531_v11 = vld [vmem:[#allocation4 + $0x3e4] ss:$16 sps:$4 sm:$0xff]   ;;  %v3569_v34 = vld [vmem:[#allocation4 + $0x300] ss:$16 sps:$4 sm:$0xff]  }
  0x5c   :  { %2051 = vmatpush1.bf16.msra.mxu1 %v3481_v50  ;;  %v3571_v33 = vld [vmem:[#allocation4 + $0x304] ss:$16 sps:$4 sm:$0xff]  }
  0x5d   :  { %2052 = vmatprep.subr.bf16.mxu1 %v3489_v51  ;;  %v3580_v35 = vld [vmem:[#allocation4 + $0x6e4] ss:$16 sps:$4 sm:$0xff]  }
  0x5e   :  { %2024 = vmatpush2.bf16.msra.mxu0 %v3520_v56  ;;  %v4166_v40 = vld [vmem:[%s4260_s2] sm:$0xff] }
  0x5f   :  { %2025 = vmatprep.subr.bf16.mxu0 %v3521_v58  ;;  %v115_v41 = vrot.slane %v4166_v40, %v4158_v38  ;;  %v111_v42 = vrot.slane %v4166_v40, %v4161_v39 }
  0x60   :  { %2053 = vmatpush1.bf16.msra.mxu1 %v3487_v54 }
  0x61   :  { %2054 = vmatprep.subr.bf16.mxu1 %v3495_v55  ;;  %v123_v55 = vrot.slane %v4166_v40, %v122_v46 }
  0x62   :  { %2026 = vmatpush2.bf16.msra.mxu0 %v3526_v60 }
  0x63   :  { %2027 = vmatprep.subr.bf16.mxu0 %v3527_v61 }
  0x64   :  { %2055 = vmatpush1.bf16.msra.mxu1 %v3493_v57  ;;  %v119_v57 = vrot.slane %v4166_v40, %v118_v49 }
  0x65   :  { %2056 = vmatprep.subr.bf16.mxu1 %v3501_v59 }
  0x66   :  { %2028 = vmatpush2.bf16.msra.mxu0 %v3532_v0 }
  0x67   :  { %2029 = vmatprep.subr.bf16.mxu0 %v3533_v1  ;;  %v130_v1 = vsub.s32 5, %v4155_v37 }
  0x68   :  { %2057 = vmatpush1.bf16.msra.mxu1 %v3499_v62 }
  0x69   :  { %2058 = vmatprep.subr.bf16.mxu1 %v3507_v63 }
  0x6a   :  { %2030 = vmatpush2.bf16.msra.mxu0 %v3538_v4 }
  0x6b   :  { %2031 = vmatprep.subr.bf16.mxu0 %v3539_v5 }
  0x6c   :  { %2059 = vmatpush1.bf16.msra.mxu1 %v3505_v2 }
  0x6d   :  { %2060 = vmatprep.subr.bf16.mxu1 %v3513_v3 }
  0x6e   :  { %2032 = vmatpush2.bf16.msra.mxu0 %v3544_v17 }
  0x6f   :  { %2033 = vmatprep.subr.bf16.mxu0 %v3545_v18  ;;  %v3572_v18 = vld [vmem:[#allocation4 + $0x4c0] ss:$16 sps:$4 sm:$0xff]  }
  0x70   :  { %2061 = vmatpush1.bf16.msra.mxu1 %v3511_v6 }
  0x71   :  { %2062 = vmatprep.subr.bf16.mxu1 %v3519_v7  ;;  %v3566_v7 = vld [vmem:[#allocation4 + $0x4e0] ss:$16 sps:$4 sm:$0xff]  }
  0x72   :  { %2034 = vmatpush2.bf16.msra.mxu0 %v3550_v21 }
  0x73   :  { %2035 = vmatprep.subr.bf16.mxu0 %v3551_v22 }
  0x74   :  { %2063 = vmatpush1.bf16.msra.mxu1 %v3517_v8 }
  0x75   :  { %2064 = vmatprep.subr.bf16.mxu1 %v3525_v9 }
  0x76   :  { %2036 = vmatpush2.bf16.msra.mxu0 %v3556_v25  ;;  %v138_v25 = vsub.s32 7, %v4155_v37 }
  0x77   :  { %2037 = vmatprep.subr.bf16.mxu0 %v3557_v26 }
  0x78   :  { %2065 = vmatpush1.bf16.msra.mxu1 %v3523_v10  ;;  %v3574_v10 = vld [vmem:[#allocation4 + $0x4c4] ss:$16 sps:$4 sm:$0xff]  }
  0x79   :  { %2066 = vmatprep.subr.bf16.mxu1 %v3531_v11 }
  0x7a   :  { %2038 = vmatpush2.bf16.msra.mxu0 %v3562_v29  ;;  %v3575_v29 = vld [vmem:[#allocation4 + $0x4a0] ss:$16 sps:$4 sm:$0xff]  }
  0x7b   :  { %2093 = vmatprep.subr.bf16.mxu0 %v3568_v31 }
  0x7c   :  { %2067 = vmatpush2.bf16.msra.mxu1 %v3529_v12 }
  0x7d   :  { %2068 = vmatprep.subr.bf16.mxu1 %v3537_v13 }
  0x80   :  { %2069 = vmatpush2.bf16.msra.mxu1 %v3535_v14  ;;  %v131_v14 = vrot.slane %v4166_v40, %v130_v1 }
  0x81   :  { %2070 = vmatprep.subr.bf16.mxu1 %v3543_v15 }
  0x84   :  { %2071 = vmatpush2.bf16.msra.mxu1 %v3541_v16 }
  0x85   :  { %2072 = vmatprep.subr.bf16.mxu1 %v3549_v19 }
  0x88   :  { %2073 = vmatpush2.bf16.msra.mxu1 %v3547_v20  ;;  %v3577_v20 = vld [vmem:[#allocation4 + $0x4a4] ss:$16 sps:$4 sm:$0xff]  }
  0x89   :  { %2074 = vmatprep.subr.bf16.mxu1 %v3555_v23 }
  0x8c   :  { %2075 = vmatpush2.bf16.msra.mxu1 %v3553_v24 }
  0x8d   :  { %2076 = vmatprep.subr.bf16.mxu1 %v3561_v27 }
  0x90   :  { %2077 = vmatpush2.bf16.msra.mxu1 %v3559_v28 }
  0x91   :  { %2078 = vmatprep.subr.bf16.mxu1 %v3565_v30  ;;  %v3578_v30 = vld [vmem:[#allocation4 + $0x6e0] ss:$16 sps:$4 sm:$0xff]  }
  0x94   :  { %2079 = vmatpush2.bf16.msra.mxu1 %v3563_v32 }
  0x95   :  { %2080 = vmatprep.subr.bf16.mxu1 %v3571_v33  ;;  %v3583_v33 = vld [vmem:[#allocation4 + $0x484] ss:$16 sps:$4 sm:$0xff]  }
  0x98   :  { %2081 = vmatpush2.bf16.msra.mxu1 %v3569_v34  ;;  %v3586_v34 = vld [vmem:[#allocation4 + $0x6c4] ss:$16 sps:$4 sm:$0xff]  }
  0x99   :  { %2136 = vmatprep.subr.bf16.mxu1 %v3580_v35 }
 0x103   :  { %v271_v43 = vpop.f32.mrf.mxu1 }
 0x104   :  { %v272_v47 = vadd.f32 %v271_v43, %v111_v42  ;;  %v3581_v43 = vld [vmem:[#allocation4 + $0x480] ss:$16 sps:$4 sm:$0xff]  }
 0x105   :  { %v273_v44 = vpop.f32.mrf.mxu1 }
 0x106   :  { %v274_v45 = vadd.f32 %v273_v44, %v115_v41  ;;  %v409_v56 = vmul.f32 0.2, %v272_v47  ;;  %v3584_v44 = vld [vmem:[#allocation4 + $0x6c0] ss:$16 sps:$4 sm:$0xff]  }
 0x107   :  { %v275_v48 = vpop.f32.mrf.mxu1 }
 0x108   :  { %v276_v50 = vadd.f32 %v275_v48, %v111_v42  ;;  %v410_v52 = vmul.f32 0.2, %v274_v45  ;;  %v425_v2 = vmax.f32 %v272_v47, %v409_v56  ;;  %v3589_v48 = vld [vmem:[#allocation4 + $0x464] ss:$16 sps:$4 sm:$0xff]   ;;  %v3590_v56 = vld [vmem:[#allocation4 + $0x6a0] ss:$16 sps:$4 sm:$0xff]  }
 0x109   :  { %v277_v51 = vpop.f32.mrf.mxu1 }
 0x10a   :  { %v417_v53 = vmul.f32 0.2, %v276_v50  ;;  %v278_v54 = vadd.f32 %v277_v51, %v115_v41  ;;  %v426_v62 = vmax.f32 %v274_v45, %v410_v52  ;;  %v139_v41 = vrot.slane %v4166_v40, %v138_v25  ;;  %v3628_v25 = vld [vmem:[#allocation4 + $0x7e4] ss:$16 sps:$4 sm:$0xff]  }
 0x10b   :  { %v314_v58 = vpop.f32.mrf.mxu1 }
 0x10c   :  { %v418_v59 = vmul.f32 0.2, %v278_v54  ;;  %v433_v60 = vmax.f32 %v276_v50, %v417_v53  ;;  %v315_v3 = vadd.f32 %v314_v58, %v119_v57  ;;  %v3592_v50 = vld [vmem:[#allocation4 + $0x6a4] ss:$16 sps:$4 sm:$0xff]  }
 0x10d   :  { %v316_v61 = vpop.f32.mrf.mxu1 }
 0x10e   :  { %v434_v63 = vmax.f32 %v278_v54, %v418_v59  ;;  %v317_v0 = vadd.f32 %v316_v61, %v123_v55  ;;  %v4183_v9 = vpack.c.bf16 %v433_v60, %v425_v2  ;;  %v411_v15 = vmul.f32 0.2, %v315_v3  ;;  %v3595_v59 = vld [vmem:[#allocation4 + $0x444] ss:$16 sps:$4 sm:$0xff]  }
 0x10f   :  { %v318_v4 = vpop.f32.mrf.mxu1  ;;  %v3598_v60 = vld [vmem:[#allocation4 + $0x684] ss:$16 sps:$4 sm:$0xff]  }
 0x110   :  { %v319_v5 = vadd.f32 %v318_v4, %v119_v57  ;;  %v4181_v6 = vpack.c.bf16 %v434_v63, %v426_v62  ;;  %v412_v11 = vmul.f32 0.2, %v317_v0  ;;  %v427_v26 = vmax.f32 %v315_v3, %v411_v15  ;;  %v3593_v63 = vld [vmem:[#allocation4 + $0x440] ss:$16 sps:$4 sm:$0xff]   ;;  %v3601_v3 = vld [vmem:[#allocation4 + $0x424] ss:$16 sps:$4 sm:$0xff]  }
 0x111   :  { %v320_v8 = vpop.f32.mrf.mxu1  ;;  %v3604_v4 = vld [vmem:[#allocation4 + $0x664] ss:$16 sps:$4 sm:$0xff]  }
 0x112   :  { %v419_v12 = vmul.f32 0.2, %v319_v5  ;;  %v321_v13 = vadd.f32 %v320_v8, %v123_v55  ;;  %2039 = vmatprep.mubr.bf16.mxu0 %v4181_v6  ;;  %v428_v22 = vmax.f32 %v317_v0, %v412_v11  ;;  %v3587_v55 = vld [vmem:[#allocation4 + $0x460] ss:$16 sps:$4 sm:$0xff]   ;;  %v3607_v11 = vld [vmem:[#allocation4 + $0x404] ss:$16 sps:$4 sm:$0xff]  }
 0x113   :  { %2040 = vmatmul.mubr.bf16.vlgmr.msra.gmra.mxu0 %v4183_v9  ;;  %v4188_v16 = vpop.f32.mrf.mxu1  ;;  %v3596_v0 = vld [vmem:[#allocation4 + $0x680] ss:$16 sps:$4 sm:$0xff]   ;;  %v3613_v15 = vld [vmem:[#allocation4 + $0x5e4] ss:$16 sps:$4 sm:$0xff]  }
 0x114   :  { %v420_v17 = vmul.f32 0.2, %v321_v13  ;;  %2094 = vmatpush1.bf16.msra.mxu0 %v3566_v7  ;;  %v435_v19 = vmax.f32 %v319_v5, %v419_v12  ;;  %v3599_v7 = vld [vmem:[#allocation4 + $0x420] ss:$16 sps:$4 sm:$0xff]   ;;  %v3610_v12 = vld [vmem:[#allocation4 + $0x644] ss:$16 sps:$4 sm:$0xff]  }
 0x115   :  { %2095 = vmatprep.subr.bf16.mxu0 %v3574_v10  ;;  %v359_v21 = vpop.f32.mrf.mxu1  ;;  %v3602_v8 = vld [vmem:[#allocation4 + $0x660] ss:$16 sps:$4 sm:$0xff]  }
 0x116   :  { %v436_v23 = vmax.f32 %v321_v13, %v420_v17  ;;  %v360_v24 = vadd.f32 %v359_v21, %v131_v14  ;;  %v4195_v32 = vpack.c.bf16 %v435_v19, %v427_v26  ;;  %v3605_v13 = vld [vmem:[#allocation4 + $0x400] ss:$16 sps:$4 sm:$0xff]   ;;  %v3616_v17 = vld [vmem:[#allocation4 + $0x624] ss:$16 sps:$4 sm:$0xff]  }
 0x117   :  { %v4191_v27 = vpop.f32.mrf.mxu1  ;;  %v3614_v19 = vld [vmem:[#allocation4 + $0x620] ss:$16 sps:$4 sm:$0xff]   ;;  %v3622_v21 = vld [vmem:[#allocation4 + $0x604] ss:$16 sps:$4 sm:$0xff]  }
 0x118   :  { %2096 = vmatpush1.bf16.msra.mxu0 %v3572_v18  ;;  %v4193_v28 = vpack.c.bf16 %v436_v23, %v428_v22  ;;  %v414_v31 = vmul.f32 0.2, %v360_v24  ;;  %v3611_v18 = vld [vmem:[#allocation4 + $0x5e0] ss:$16 sps:$4 sm:$0xff]  }
 0x119   :  { %2097 = vmatprep.subr.bf16.mxu0 %v3577_v20  ;;  %v363_v35 = vpop.f32.mrf.mxu1  ;;  %v3619_v20 = vld [vmem:[#allocation4 + $0x5c4] ss:$16 sps:$4 sm:$0xff]   ;;  %v3617_v22 = vld [vmem:[#allocation4 + $0x5c0] ss:$16 sps:$4 sm:$0xff]  }
 0x11a   :  { %2082 = vmatprep.mubr.bf16.mxu1 %v4193_v28  ;;  %v364_v36 = vadd.f32 %v363_v35, %v131_v14  ;;  %v430_v45 = vmax.f32 %v360_v24, %v414_v31  ;;  %v3608_v14 = vld [vmem:[#allocation4 + $0x640] ss:$16 sps:$4 sm:$0xff]   ;;  %v3625_v24 = vld [vmem:[#allocation4 + $0x5a4] ss:$16 sps:$4 sm:$0xff]  }
 0x11b   :  { %2083 = vmatmul.mubr.bf16.vlgmr.msra.gmra.mxu1 %v4195_v32  ;;  %v4200_v42 = vpop.f32.mrf.mxu1  ;;  %v3620_v23 = vld [vmem:[#allocation4 + $0x600] ss:$16 sps:$4 sm:$0xff]   ;;  %v3634_v31 = vld [vmem:[#allocation4 + $0x7c4] ss:$16 sps:$4 sm:$0xff]  }
 0x11c   :  { %2098 = vmatpush1.bf16.msra.mxu0 %v3575_v29  ;;  %2137 = vmatpush1.bf16.msra.mxu1 %v3578_v30  ;;  %v422_v47 = vmul.f32 0.2, %v364_v36  ;;  %v3623_v26 = vld [vmem:[#allocation4 + $0x5a0] ss:$16 sps:$4 sm:$0xff]   ;;  %v3631_v30 = vld [vmem:[#allocation4 + $0x584] ss:$16 sps:$4 sm:$0xff]  }
 0x11d   :  { %2099 = vmatprep.subr.bf16.mxu0 %v3583_v33  ;;  %2138 = vmatprep.subr.bf16.mxu1 %v3586_v34  ;;  %v402_v51 = vpop.f32.mrf.mxu1  ;;  %v3626_v29 = vld [vmem:[#allocation4 + $0x7e0] ss:$16 sps:$4 sm:$0xff]   ;;  %v126_v33 = vsub.s32 4, %v4155_v37 }
 0x11e   :  { %v438_v52 = vmax.f32 %v364_v36, %v422_v47  ;;  %v403_v53 = vadd.f32 %v402_v51, %v139_v41  ;;  %v3629_v34 = vld [vmem:[#allocation4 + $0x580] ss:$16 sps:$4 sm:$0xff]   ;;  %v3637_v36 = vld [vmem:[#allocation4 + $0x564] ss:$16 sps:$4 sm:$0xff]  }
 0x11f   :  { %v4202_v54 = vpop.f32.mrf.mxu1  ;;  %v3632_v35 = vld [vmem:[#allocation4 + $0x7c0] ss:$16 sps:$4 sm:$0xff]   ;;  %v3643_v47 = vld [vmem:[#allocation4 + $0x544] ss:$16 sps:$4 sm:$0xff]  }
 0x120   :  { %2100 = vmatpush1.bf16.msra.mxu0 %v3581_v43  ;;  %2139 = vmatpush1.bf16.msra.mxu1 %v3584_v44  ;;  %v416_v57 = vmul.f32 0.2, %v403_v53  ;;  %v4204_v58 = vpack.c.bf16 %v438_v52, %v430_v45  ;;  %v127_v43 = vrot.slane %v4166_v40, %v126_v33  ;;  %v3635_v44 = vld [vmem:[#allocation4 + $0x560] ss:$16 sps:$4 sm:$0xff]   ;;  %v3683_v33 = vld [vmem:[#allocation4 + $0x68] ss:$16 sps:$4 sm:$0xff]  }
 0x121   :  { %2101 = vmatprep.subr.bf16.mxu0 %v3589_v48  ;;  %2140 = vmatprep.subr.bf16.mxu1 %v3592_v50  ;;  %v406_v61 = vpop.f32.mrf.mxu1  ;;  %v3638_v45 = vld [vmem:[#allocation4 + $0x7a0] ss:$16 sps:$4 sm:$0xff]   ;;  %v3646_v48 = vld [vmem:[#allocation4 + $0x784] ss:$16 sps:$4 sm:$0xff]  }
 0x122   :  { %v407_v62 = vadd.f32 %v406_v61, %v139_v41  ;;  %2125 = vmatprep.mubr.bf16.mxu0 %v4204_v58  ;;  %v432_v1 = vmax.f32 %v403_v53, %v416_v57  ;;  %v3640_v41 = vld [vmem:[#allocation4 + $0x7a4] ss:$16 sps:$4 sm:$0xff]   ;;  %v358_v50 = vadd.f32 %v4188_v16, %v127_v43  ;;  %v3641_v51 = vld [vmem:[#allocation4 + $0x540] ss:$16 sps:$4 sm:$0xff]   ;;  %v362_v53 = vadd.f32 %v4191_v27, %v127_v43  ;;  %v3692_v43 = vld [vmem:[#allocation4 + $0x288] ss:$16 sps:$4 sm:$0xff]  }
 0x123   :  { %v3644_v52 = vld [vmem:[#allocation4 + $0x780] ss:$16 sps:$4 sm:$0xff]   ;;  %v3652_v57 = vld [vmem:[#allocation4 + $0x764] ss:$16 sps:$4 sm:$0xff]  }
 0x124   :  { %2102 = vmatpush1.bf16.msra.mxu0 %v3587_v55  ;;  %2141 = vmatpush1.bf16.msra.mxu1 %v3590_v56  ;;  %v424_v2 = vmul.f32 0.2, %v407_v62  ;;  %v134_v55 = vsub.s32 6, %v4155_v37  ;;  %v3649_v56 = vld [vmem:[#allocation4 + $0x524] ss:$16 sps:$4 sm:$0xff]  }
 0x125   :  { %2103 = vmatprep.subr.bf16.mxu0 %v3595_v59  ;;  %2142 = vmatprep.subr.bf16.mxu1 %v3598_v60  ;;  %v413_v59 = vmul.f32 0.2, %v358_v50  ;;  %v3647_v60 = vld [vmem:[#allocation4 + $0x520] ss:$16 sps:$4 sm:$0xff]  }
 0x126   :  { %v440_v5 = vmax.f32 %v407_v62, %v424_v2  ;;  %v3650_v61 = vld [vmem:[#allocation4 + $0x760] ss:$16 sps:$4 sm:$0xff]   ;;  %v421_v62 = vmul.f32 0.2, %v362_v53  ;;  %v135_v16 = vrot.slane %v4166_v40, %v134_v55  ;;  %v3712_v55 = vld [vmem:[#allocation4 + $0x22c] ss:$16 sps:$4 sm:$0xff]  }
 0x127   :  { %v3653_v27 = vld [vmem:[#allocation4 + $0x500] ss:$16 sps:$4 sm:$0xff]  }
 0x128   :  { %2104 = vmatpush1.bf16.msra.mxu0 %v3593_v63  ;;  %2143 = vmatpush1.bf16.msra.mxu1 %v3596_v0  ;;  %v4207_v10 = vpack.c.bf16 %v440_v5, %v432_v1  ;;  %v3655_v63 = vld [vmem:[#allocation4 + $0x504] ss:$16 sps:$4 sm:$0xff]   ;;  %v429_v1 = vmax.f32 %v358_v50, %v413_v59  ;;  %v3656_v2 = vld [vmem:[#allocation4 + $0x740] ss:$16 sps:$4 sm:$0xff]   ;;  %v405_v5 = vadd.f32 %v4202_v54, %v135_v16  ;;  %v3668_v54 = vld [vmem:[#allocation4 + $0xc8] ss:$16 sps:$4 sm:$0xff]  }
 0x129   :  { %2105 = vmatprep.subr.bf16.mxu0 %v3601_v3  ;;  %2144 = vmatprep.subr.bf16.mxu1 %v3604_v4  ;;  %v3658_v0 = vld [vmem:[#allocation4 + $0x744] ss:$16 sps:$4 sm:$0xff]   ;;  %v437_v3 = vmax.f32 %v362_v53, %v421_v62  ;;  %v401_v4 = vadd.f32 %v4200_v42, %v135_v16  ;;  %v3659_v40 = vld [vmem:[#allocation4 + $0x720] ss:$16 sps:$4 sm:$0xff]   ;;  %v3706_v50 = vld [vmem:[#allocation4 + $0x24c] ss:$16 sps:$4 sm:$0xff]  }
 0x12a   :  { %2168 = vmatprep.mubr.bf16.mxu1 %v4207_v10  ;;  %v3665_v42 = vld [vmem:[#allocation4 + $0x700] ss:$16 sps:$4 sm:$0xff]   ;;  %v3709_v53 = vld [vmem:[#allocation4 + $0x1ec] ss:$16 sps:$4 sm:$0xff]   ;;  %v3716_v62 = vld [vmem:[#allocation4 + $0x208] ss:$16 sps:$4 sm:$0xff]  }
 0x12b   :  { %v3715_v59 = vld [vmem:[#allocation4 + $0x1cc] ss:$16 sps:$4 sm:$0xff]  }
 0x12c   :  { %2106 = vmatpush1.bf16.msra.mxu0 %v3599_v7  ;;  %2145 = vmatpush1.bf16.msra.mxu1 %v3602_v8  ;;  %v3661_v7 = vld [vmem:[#allocation4 + $0x724] ss:$16 sps:$4 sm:$0xff]   ;;  %v3664_v8 = vld [vmem:[#allocation4 + $0xec] ss:$16 sps:$4 sm:$0xff]  }
 0x12d   :  { %2107 = vmatprep.subr.bf16.mxu0 %v3607_v11  ;;  %2146 = vmatprep.subr.bf16.mxu1 %v3610_v12  ;;  %v3662_v11 = vld [vmem:[#allocation4 + $0xe8] ss:$16 sps:$4 sm:$0xff]   ;;  %v4218_v12 = vpack.c.bf16 %v437_v3, %v429_v1  ;;  %v3721_v16 = vld [vmem:[#allocation4 + $0x1ac] ss:$16 sps:$4 sm:$0xff]  }
 0x12e   :  { %v3722_v1 = vld [vmem:[#allocation4 + $0x3e8] ss:$16 sps:$4 sm:$0xff]  }
 0x12f   :  { %v3725_v3 = vld [vmem:[#allocation4 + $0x188] ss:$16 sps:$4 sm:$0xff]  }
 0x130   :  { %2108 = vmatpush1.bf16.msra.mxu0 %v3605_v13  ;;  %2147 = vmatpush1.bf16.msra.mxu1 %v3608_v14  ;;  %v415_v13 = vmul.f32 0.2, %v401_v4  ;;  %v423_v14 = vmul.f32 0.2, %v405_v5 }
 0x131   :  { %2109 = vmatprep.subr.bf16.mxu0 %v3613_v15  ;;  %2148 = vmatprep.subr.bf16.mxu1 %v3616_v17  ;;  %v3667_v15 = vld [vmem:[#allocation4 + $0x704] ss:$16 sps:$4 sm:$0xff]   ;;  %v3670_v17 = vld [vmem:[#allocation4 + $0xcc] ss:$16 sps:$4 sm:$0xff]  }
 0x134   :  { %2110 = vmatpush2.bf16.msra.mxu0 %v3611_v18  ;;  %2149 = vmatpush1.bf16.msra.mxu1 %v3614_v19  ;;  %v431_v18 = vmax.f32 %v401_v4, %v415_v13  ;;  %v439_v19 = vmax.f32 %v405_v5, %v423_v14  ;;  %v3728_v4 = vld [vmem:[#allocation4 + $0x3c8] ss:$16 sps:$4 sm:$0xff]   ;;  %v3733_v5 = vld [vmem:[#allocation4 + $0x16c] ss:$16 sps:$4 sm:$0xff]  }
 0x135   :  { %2111 = vmatprep.subr.bf16.mxu0 %v3619_v20  ;;  %2150 = vmatprep.subr.bf16.mxu1 %v3622_v21  ;;  %v3673_v20 = vld [vmem:[#allocation4 + $0xac] ss:$16 sps:$4 sm:$0xff]   ;;  %v3737_v14 = vld [vmem:[#allocation4 + $0x148] ss:$16 sps:$4 sm:$0xff]  }
 0x136   :  { %v3676_v21 = vld [vmem:[#allocation4 + $0x2ec] ss:$16 sps:$4 sm:$0xff]  }
 0x137   :  { %v3742_v13 = vld [vmem:[#allocation4 + $0x38c] ss:$16 sps:$4 sm:$0xff]  }
 0x138   :  { %2112 = vmatpush2.bf16.msra.mxu0 %v3617_v22  ;;  %2151 = vmatpush1.bf16.msra.mxu1 %v3620_v23  ;;  %v3671_v22 = vld [vmem:[#allocation4 + $0xa8] ss:$16 sps:$4 sm:$0xff]  }
 0x139   :  { %2113 = vmatprep.subr.bf16.mxu0 %v3625_v24  ;;  %2152 = vmatprep.subr.bf16.mxu1 %v3628_v25  ;;  %v3674_v23 = vld [vmem:[#allocation4 + $0x2e8] ss:$16 sps:$4 sm:$0xff]   ;;  %v4222_v24 = vpack.c.bf16 %v439_v19, %v431_v18  ;;  %v3679_v25 = vld [vmem:[#allocation4 + $0x8c] ss:$16 sps:$4 sm:$0xff]  }
 0x13a   :  { %v3746_v18 = vld [vmem:[#allocation4 + $0x368] ss:$16 sps:$4 sm:$0xff]   ;;  %v3751_v19 = vld [vmem:[#allocation4 + $0x10c] ss:$16 sps:$4 sm:$0xff]  }
 0x13c   :  { %2114 = vmatpush2.bf16.msra.mxu0 %v3623_v26  ;;  %2153 = vmatpush2.bf16.msra.mxu1 %v3626_v29  ;;  %v3682_v26 = vld [vmem:[#allocation4 + $0x2cc] ss:$16 sps:$4 sm:$0xff]   ;;  %v3677_v29 = vld [vmem:[#allocation4 + $0x88] ss:$16 sps:$4 sm:$0xff]  }
 0x13d   :  { %2115 = vmatprep.subr.bf16.mxu0 %v3631_v30  ;;  %2154 = vmatprep.subr.bf16.mxu1 %v3634_v31  ;;  %v3685_v30 = vld [vmem:[#allocation4 + $0x6c] ss:$16 sps:$4 sm:$0xff]  }
 0x13e   :  { %v3688_v31 = vld [vmem:[#allocation4 + $0x2ac] ss:$16 sps:$4 sm:$0xff]  }
 0x140   :  { %2116 = vmatpush2.bf16.msra.mxu0 %v3629_v34  ;;  %2155 = vmatpush2.bf16.msra.mxu1 %v3632_v35  ;;  %v3686_v34 = vld [vmem:[#allocation4 + $0x2a8] ss:$16 sps:$4 sm:$0xff]   ;;  %v3691_v35 = vld [vmem:[#allocation4 + $0x4c] ss:$16 sps:$4 sm:$0xff]  }
 0x141   :  { %2117 = vmatprep.subr.bf16.mxu0 %v3637_v36  ;;  %2156 = vmatprep.subr.bf16.mxu1 %v3640_v41  ;;  %v3694_v36 = vld [vmem:[#allocation4 + $0x28c] ss:$16 sps:$4 sm:$0xff]   ;;  %v3689_v41 = vld [vmem:[#allocation4 + $0x48] ss:$16 sps:$4 sm:$0xff]  }
 0x144   :  { %2118 = vmatpush2.bf16.msra.mxu0 %v3635_v44  ;;  %2157 = vmatpush2.bf16.msra.mxu1 %v3638_v45  ;;  %v3697_v44 = vld [vmem:[#allocation4 + $0x2c] ss:$16 sps:$4 sm:$0xff]   ;;  %v3695_v45 = vld [vmem:[#allocation4 + $0x28] ss:$16 sps:$4 sm:$0xff]  }
 0x145   :  { %2119 = vmatprep.subr.bf16.mxu0 %v3643_v47  ;;  %2158 = vmatprep.subr.bf16.mxu1 %v3646_v48  ;;  %v3698_v47 = vld [vmem:[#allocation4 + $0x268] ss:$16 sps:$4 sm:$0xff]   ;;  %v3703_v48 = vld [vmem:[#allocation4 + $0xc] ss:$16 sps:$4 sm:$0xff]  }
 0x148   :  { %2120 = vmatpush2.bf16.msra.mxu0 %v3641_v51  ;;  %2159 = vmatpush2.bf16.msra.mxu1 %v3644_v52  ;;  %v3701_v51 = vld [vmem:[#allocation4 + $0x8] ss:$16 sps:$4 sm:$0xff]  }
 0x149   :  { %2121 = vmatprep.subr.bf16.mxu0 %v3649_v56  ;;  %2160 = vmatprep.subr.bf16.mxu1 %v3652_v57  ;;  %v3704_v52 = vld [vmem:[#allocation4 + $0x248] ss:$16 sps:$4 sm:$0xff]  }
 0x14a   :  { %v3707_v56 = vld [vmem:[#allocation4 + $0x1e8] ss:$16 sps:$4 sm:$0xff]  }
 0x14b   :  { %v3710_v57 = vld [vmem:[#allocation4 + $0x228] ss:$16 sps:$4 sm:$0xff]  }
 0x14c   :  { %2122 = vmatpush2.bf16.msra.mxu0 %v3647_v60  ;;  %2161 = vmatpush2.bf16.msra.mxu1 %v3650_v61  ;;  %v3718_v60 = vld [vmem:[#allocation4 + $0x20c] ss:$16 sps:$4 sm:$0xff]   ;;  %v3713_v61 = vld [vmem:[#allocation4 + $0x1c8] ss:$16 sps:$4 sm:$0xff]  }
 0x14d   :  { %2123 = vmatprep.subr.bf16.mxu0 %v3655_v63  ;;  %2162 = vmatprep.subr.bf16.mxu1 %v3658_v0  ;;  %v3724_v63 = vld [vmem:[#allocation4 + $0x3ec] ss:$16 sps:$4 sm:$0xff]   ;;  %v3719_v0 = vld [vmem:[#allocation4 + $0x1a8] ss:$16 sps:$4 sm:$0xff]  }
 0x150   :  { %2124 = vmatpush2.bf16.msra.mxu0 %v3653_v27  ;;  %2163 = vmatpush2.bf16.msra.mxu1 %v3656_v2  ;;  %v3727_v27 = vld [vmem:[#allocation4 + $0x18c] ss:$16 sps:$4 sm:$0xff]  }
 0x151   :  { %2164 = vmatprep.subr.bf16.mxu1 %v3661_v7  ;;  %2179 = vmatprep.subr.bf16.mxu0 %v3664_v8  ;;  %v3730_v2 = vld [vmem:[#allocation4 + $0x3cc] ss:$16 sps:$4 sm:$0xff]   ;;  %v3731_v8 = vld [vmem:[#allocation4 + $0x168] ss:$16 sps:$4 sm:$0xff]  }
 0x152   :  { %v3736_v7 = vld [vmem:[#allocation4 + $0x3ac] ss:$16 sps:$4 sm:$0xff]  }
 0x153   :  { %2126 = vmatmul.mubr.bf16.vlgmr.msra.gmra.mxu0 %v4218_v12 }
 0x154   :  { %2165 = vmatpush2.bf16.msra.mxu1 %v3659_v40  ;;  %2180 = vmatpush1.bf16.msra.mxu0 %v3662_v11  ;;  %v3734_v40 = vld [vmem:[#allocation4 + $0x3a8] ss:$16 sps:$4 sm:$0xff]   ;;  %v3739_v11 = vld [vmem:[#allocation4 + $0x14c] ss:$16 sps:$4 sm:$0xff]  }
 0x155   :  { %2211 = vmatprep.mubr.bf16.mxu0 %v4181_v6  ;;  %2166 = vmatprep.subr.bf16.mxu1 %v3667_v15  ;;  %v3680_v6 = vld [vmem:[#allocation4 + $0x2c8] ss:$16 sps:$4 sm:$0xff]  }
 0x156   :  { %2181 = vmatprep.subr.bf16.mxu0 %v3670_v17  ;;  %v3740_v15 = vld [vmem:[#allocation4 + $0x388] ss:$16 sps:$4 sm:$0xff]   ;;  %v3745_v17 = vld [vmem:[#allocation4 + $0x12c] ss:$16 sps:$4 sm:$0xff]  }
 0x158   :  { %2167 = vmatpush2.bf16.msra.mxu1 %v3665_v42  ;;  %2182 = vmatpush1.bf16.msra.mxu0 %v3668_v54  ;;  %v3748_v42 = vld [vmem:[#allocation4 + $0x36c] ss:$16 sps:$4 sm:$0xff]   ;;  %v3743_v54 = vld [vmem:[#allocation4 + $0x128] ss:$16 sps:$4 sm:$0xff]  }
 0x159   :  { %2183 = vmatprep.subr.bf16.mxu0 %v3673_v20  ;;  %2222 = vmatprep.subr.bf16.mxu1 %v3676_v21  ;;  %v3754_v20 = vld [vmem:[#allocation4 + $0x34c] ss:$16 sps:$4 sm:$0xff]   ;;  %v3749_v21 = vld [vmem:[#allocation4 + $0x108] ss:$16 sps:$4 sm:$0xff]  }
 0x15b   :  { %2169 = vmatmul.mubr.bf16.vlgmr.msra.gmra.mxu1 %v4222_v24 }
 0x15c   :  { %2184 = vmatpush1.bf16.msra.mxu0 %v3671_v22  ;;  %2223 = vmatpush1.bf16.msra.mxu1 %v3674_v23  ;;  %v3752_v22 = vld [vmem:[#allocation4 + $0x348] ss:$16 sps:$4 sm:$0xff]   ;;  %v3757_v23 = vld [vmem:[#allocation4 + $0x32c] ss:$16 sps:$4 sm:$0xff]  }
 0x15d   :  { %2254 = vmatprep.mubr.bf16.mxu1 %v4193_v28  ;;  %2185 = vmatprep.subr.bf16.mxu0 %v3679_v25  ;;  %v3700_v28 = vld [vmem:[#allocation4 + $0x26c] ss:$16 sps:$4 sm:$0xff]  }
 0x15e   :  { %2224 = vmatprep.subr.bf16.mxu1 %v3682_v26  ;;  %v3760_v25 = vld [vmem:[#allocation4 + $0x4ec] ss:$16 sps:$4 sm:$0xff]   ;;  %v3755_v26 = vld [vmem:[#allocation4 + $0x328] ss:$16 sps:$4 sm:$0xff]  }
 0x160   :  { %2186 = vmatpush1.bf16.msra.mxu0 %v3677_v29  ;;  %2225 = vmatpush1.bf16.msra.mxu1 %v3680_v6  ;;  %v3758_v29 = vld [vmem:[#allocation4 + $0x4e8] ss:$16 sps:$4 sm:$0xff]   ;;  %v3763_v6 = vld [vmem:[#allocation4 + $0x30c] ss:$16 sps:$4 sm:$0xff]  }
 0x161   :  { %2187 = vmatprep.subr.bf16.mxu0 %v3685_v30  ;;  %2226 = vmatprep.subr.bf16.mxu1 %v3688_v31  ;;  %v3766_v30 = vld [vmem:[#allocation4 + $0x4cc] ss:$16 sps:$4 sm:$0xff]   ;;  %v3761_v31 = vld [vmem:[#allocation4 + $0x308] ss:$16 sps:$4 sm:$0xff]  }
 0x164   :  { %2188 = vmatpush1.bf16.msra.mxu0 %v3683_v33  ;;  %2227 = vmatpush1.bf16.msra.mxu1 %v3686_v34  ;;  %v3764_v33 = vld [vmem:[#allocation4 + $0x4c8] ss:$16 sps:$4 sm:$0xff]   ;;  %v3769_v34 = vld [vmem:[#allocation4 + $0x4ac] ss:$16 sps:$4 sm:$0xff]  }
 0x165   :  { %2189 = vmatprep.subr.bf16.mxu0 %v3691_v35  ;;  %2228 = vmatprep.subr.bf16.mxu1 %v3694_v36  ;;  %v3772_v35 = vld [vmem:[#allocation4 + $0x6ec] ss:$16 sps:$4 sm:$0xff]   ;;  %v3767_v36 = vld [vmem:[#allocation4 + $0x4a8] ss:$16 sps:$4 sm:$0xff]  }
 0x168   :  { %2190 = vmatpush1.bf16.msra.mxu0 %v3689_v41  ;;  %2229 = vmatpush1.bf16.msra.mxu1 %v3692_v43  ;;  %v3770_v41 = vld [vmem:[#allocation4 + $0x6e8] ss:$16 sps:$4 sm:$0xff]   ;;  %v3775_v43 = vld [vmem:[#allocation4 + $0x48c] ss:$16 sps:$4 sm:$0xff]  }
 0x169   :  { %2191 = vmatprep.subr.bf16.mxu0 %v3697_v44  ;;  %2230 = vmatprep.subr.bf16.mxu1 %v3700_v28  ;;  %v3778_v44 = vld [vmem:[#allocation4 + $0x6cc] ss:$16 sps:$4 sm:$0xff]   ;;  %v3776_v28 = vld [vmem:[#allocation4 + $0x6c8] ss:$16 sps:$4 sm:$0xff]  }
 0x16c   :  { %2192 = vmatpush1.bf16.msra.mxu0 %v3695_v45  ;;  %2231 = vmatpush1.bf16.msra.mxu1 %v3698_v47  ;;  %v3784_v45 = vld [vmem:[#allocation4 + $0x6ac] ss:$16 sps:$4 sm:$0xff]   ;;  %v3779_v47 = vld [vmem:[#allocation4 + $0x468] ss:$16 sps:$4 sm:$0xff]  }
 0x16d   :  { %2193 = vmatprep.subr.bf16.mxu0 %v3703_v48  ;;  %2232 = vmatprep.subr.bf16.mxu1 %v3706_v50  ;;  %v3782_v48 = vld [vmem:[#allocation4 + $0x6a8] ss:$16 sps:$4 sm:$0xff]   ;;  %v3787_v50 = vld [vmem:[#allocation4 + $0x44c] ss:$16 sps:$4 sm:$0xff]  }
 0x170   :  { %2194 = vmatpush1.bf16.msra.mxu0 %v3701_v51  ;;  %2233 = vmatpush1.bf16.msra.mxu1 %v3704_v52  ;;  %v3790_v51 = vld [vmem:[#allocation4 + $0x68c] ss:$16 sps:$4 sm:$0xff]   ;;  %v3788_v52 = vld [vmem:[#allocation4 + $0x688] ss:$16 sps:$4 sm:$0xff]  }
 0x171   :  { %2195 = vmatprep.subr.bf16.mxu0 %v3709_v53  ;;  %2234 = vmatprep.subr.bf16.mxu1 %v3712_v55  ;;  %v3793_v53 = vld [vmem:[#allocation4 + $0x42c] ss:$16 sps:$4 sm:$0xff]   ;;  %v3791_v55 = vld [vmem:[#allocation4 + $0x428] ss:$16 sps:$4 sm:$0xff]  }
 0x174   :  { %2196 = vmatpush2.bf16.msra.mxu0 %v3707_v56  ;;  %2235 = vmatpush1.bf16.msra.mxu1 %v3710_v57  ;;  %v3794_v56 = vld [vmem:[#allocation4 + $0x668] ss:$16 sps:$4 sm:$0xff]   ;;  %v3799_v57 = vld [vmem:[#allocation4 + $0x40c] ss:$16 sps:$4 sm:$0xff]  }
 0x175   :  { %2197 = vmatprep.subr.bf16.mxu0 %v3715_v59  ;;  %2236 = vmatprep.subr.bf16.mxu1 %v3718_v60  ;;  %v3802_v59 = vld [vmem:[#allocation4 + $0x64c] ss:$16 sps:$4 sm:$0xff]   ;;  %v3797_v60 = vld [vmem:[#allocation4 + $0x408] ss:$16 sps:$4 sm:$0xff]  }
 0x178   :  { %2198 = vmatpush2.bf16.msra.mxu0 %v3713_v61  ;;  %2237 = vmatpush1.bf16.msra.mxu1 %v3716_v62  ;;  %v3800_v61 = vld [vmem:[#allocation4 + $0x648] ss:$16 sps:$4 sm:$0xff]   ;;  %v3805_v62 = vld [vmem:[#allocation4 + $0x5ec] ss:$16 sps:$4 sm:$0xff]  }
 0x179   :  { %2199 = vmatprep.subr.bf16.mxu0 %v3721_v16  ;;  %2238 = vmatprep.subr.bf16.mxu1 %v3724_v63  ;;  %v3808_v16 = vld [vmem:[#allocation4 + $0x62c] ss:$16 sps:$4 sm:$0xff]   ;;  %v3803_v63 = vld [vmem:[#allocation4 + $0x5e8] ss:$16 sps:$4 sm:$0xff]  }
 0x17c   :  { %2200 = vmatpush2.bf16.msra.mxu0 %v3719_v0  ;;  %2239 = vmatpush2.bf16.msra.mxu1 %v3722_v1  ;;  %v3806_v0 = vld [vmem:[#allocation4 + $0x628] ss:$16 sps:$4 sm:$0xff]   ;;  %v3811_v1 = vld [vmem:[#allocation4 + $0x5cc] ss:$16 sps:$4 sm:$0xff]  }
 0x17d   :  { %2201 = vmatprep.subr.bf16.mxu0 %v3727_v27  ;;  %2240 = vmatprep.subr.bf16.mxu1 %v3730_v2  ;;  %v3814_v27 = vld [vmem:[#allocation4 + $0x60c] ss:$16 sps:$4 sm:$0xff]   ;;  %v3809_v2 = vld [vmem:[#allocation4 + $0x5c8] ss:$16 sps:$4 sm:$0xff]  }
 0x180   :  { %2202 = vmatpush2.bf16.msra.mxu0 %v3725_v3  ;;  %2241 = vmatpush2.bf16.msra.mxu1 %v3728_v4  ;;  %v3812_v3 = vld [vmem:[#allocation4 + $0x608] ss:$16 sps:$4 sm:$0xff]   ;;  %v3817_v4 = vld [vmem:[#allocation4 + $0x5ac] ss:$16 sps:$4 sm:$0xff]  }
 0x181   :  { %2203 = vmatprep.subr.bf16.mxu0 %v3733_v5  ;;  %2242 = vmatprep.subr.bf16.mxu1 %v3736_v7  ;;  %v3820_v5 = vld [vmem:[#allocation4 + $0x7ec] ss:$16 sps:$4 sm:$0xff]   ;;  %v3815_v7 = vld [vmem:[#allocation4 + $0x5a8] ss:$16 sps:$4 sm:$0xff]  }
 0x184   :  { %2204 = vmatpush2.bf16.msra.mxu0 %v3731_v8  ;;  %2243 = vmatpush2.bf16.msra.mxu1 %v3734_v40  ;;  %v3818_v8 = vld [vmem:[#allocation4 + $0x7e8] ss:$16 sps:$4 sm:$0xff]   ;;  %v3823_v40 = vld [vmem:[#allocation4 + $0x58c] ss:$16 sps:$4 sm:$0xff]  }
 0x185   :  { %2205 = vmatprep.subr.bf16.mxu0 %v3739_v11  ;;  %2244 = vmatprep.subr.bf16.mxu1 %v3742_v13  ;;  %v3826_v11 = vld [vmem:[#allocation4 + $0x7cc] ss:$16 sps:$4 sm:$0xff]   ;;  %v3821_v13 = vld [vmem:[#allocation4 + $0x588] ss:$16 sps:$4 sm:$0xff]  }
 0x188   :  { %2206 = vmatpush2.bf16.msra.mxu0 %v3737_v14  ;;  %2245 = vmatpush2.bf16.msra.mxu1 %v3740_v15  ;;  %v3824_v14 = vld [vmem:[#allocation4 + $0x7c8] ss:$16 sps:$4 sm:$0xff]   ;;  %v3829_v15 = vld [vmem:[#allocation4 + $0x56c] ss:$16 sps:$4 sm:$0xff]  }
 0x189   :  { %2207 = vmatprep.subr.bf16.mxu0 %v3745_v17  ;;  %2246 = vmatprep.subr.bf16.mxu1 %v3748_v42  ;;  %v3832_v17 = vld [vmem:[#allocation4 + $0x7ac] ss:$16 sps:$4 sm:$0xff]   ;;  %v3827_v42 = vld [vmem:[#allocation4 + $0x568] ss:$16 sps:$4 sm:$0xff]  }
 0x18c   :  { %2208 = vmatpush2.bf16.msra.mxu0 %v3743_v54  ;;  %2247 = vmatpush2.bf16.msra.mxu1 %v3746_v18  ;;  %v3830_v54 = vld [vmem:[#allocation4 + $0x7a8] ss:$16 sps:$4 sm:$0xff]   ;;  %v3835_v18 = vld [vmem:[#allocation4 + $0x54c] ss:$16 sps:$4 sm:$0xff]  }
 0x18d   :  { %2209 = vmatprep.subr.bf16.mxu0 %v3751_v19  ;;  %2248 = vmatprep.subr.bf16.mxu1 %v3754_v20  ;;  %v3838_v19 = vld [vmem:[#allocation4 + $0x78c] ss:$16 sps:$4 sm:$0xff]   ;;  %v3833_v20 = vld [vmem:[#allocation4 + $0x548] ss:$16 sps:$4 sm:$0xff]  }
 0x190   :  { %2210 = vmatpush2.bf16.msra.mxu0 %v3749_v21  ;;  %2249 = vmatpush2.bf16.msra.mxu1 %v3752_v22  ;;  %v3836_v21 = vld [vmem:[#allocation4 + $0x788] ss:$16 sps:$4 sm:$0xff]   ;;  %v3841_v22 = vld [vmem:[#allocation4 + $0x52c] ss:$16 sps:$4 sm:$0xff]  }
 0x191   :  { %2250 = vmatprep.subr.bf16.mxu1 %v3757_v23  ;;  %2265 = vmatprep.subr.bf16.mxu0 %v3760_v25  ;;  %v3844_v23 = vld [vmem:[#allocation4 + $0x76c] ss:$16 sps:$4 sm:$0xff]   ;;  %v3839_v25 = vld [vmem:[#allocation4 + $0x528] ss:$16 sps:$4 sm:$0xff]  }
 0x193   :  { %2212 = vmatmul.mubr.bf16.vlgmr.msra.gmra.mxu0 %v4183_v9  ;;  %v3773_v9 = vld [vmem:[#allocation4 + $0x488] ss:$16 sps:$4 sm:$0xff]  }
 0x194   :  { %2251 = vmatpush2.bf16.msra.mxu1 %v3755_v26  ;;  %2266 = vmatpush1.bf16.msra.mxu0 %v3758_v29  ;;  %v3842_v26 = vld [vmem:[#allocation4 + $0x768] ss:$16 sps:$4 sm:$0xff]   ;;  %v3847_v29 = vld [vmem:[#allocation4 + $0x50c] ss:$16 sps:$4 sm:$0xff]  }
 0x195   :  { %2297 = vmatprep.mubr.bf16.mxu0 %v4204_v58  ;;  %2252 = vmatprep.subr.bf16.mxu1 %v3763_v6  ;;  %v3781_v58 = vld [vmem:[#allocation4 + $0x46c] ss:$16 sps:$4 sm:$0xff]  }
 0x196   :  { %2267 = vmatprep.subr.bf16.mxu0 %v3766_v30  ;;  %v3850_v6 = vld [vmem:[#allocation4 + $0x74c] ss:$16 sps:$4 sm:$0xff]   ;;  %v3845_v30 = vld [vmem:[#allocation4 + $0x508] ss:$16 sps:$4 sm:$0xff]  }
 0x198   :  { %2253 = vmatpush2.bf16.msra.mxu1 %v3761_v31  ;;  %2268 = vmatpush1.bf16.msra.mxu0 %v3764_v33  ;;  %v3848_v31 = vld [vmem:[#allocation4 + $0x748] ss:$16 sps:$4 sm:$0xff]   ;;  %v3853_v33 = vld [vmem:[#allocation4 + $0x72c] ss:$16 sps:$4 sm:$0xff]  }
 0x199   :  { %2269 = vmatprep.subr.bf16.mxu0 %v3769_v34  ;;  %2308 = vmatprep.subr.bf16.mxu1 %v3772_v35  ;;  %v3859_v34 = vld [vmem:[#allocation6 + $0x74] ss:$8 sps:$4 sm:$0xff]   ;;  %v3851_v35 = vld [vmem:[#allocation4 + $0x728] ss:$16 sps:$4 sm:$0xff]  }
 0x19b   :  { %2255 = vmatmul.mubr.bf16.vlgmr.msra.gmra.mxu1 %v4195_v32  ;;  %v3785_v32 = vld [vmem:[#allocation4 + $0x448] ss:$16 sps:$4 sm:$0xff]  }
 0x19c   :  { %2270 = vmatpush1.bf16.msra.mxu0 %v3767_v36  ;;  %2309 = vmatpush1.bf16.msra.mxu1 %v3770_v41  ;;  %v3857_v36 = vld [vmem:[#allocation6 + $0x70] ss:$8 sps:$4 sm:$0xff]   ;;  %v3856_v41 = vld [vmem:[#allocation4 + $0x70c] ss:$16 sps:$4 sm:$0xff]  }
 0x19d   :  { %2340 = vmatprep.mubr.bf16.mxu1 %v4207_v10  ;;  %2271 = vmatprep.subr.bf16.mxu0 %v3775_v43  ;;  %v3796_v10 = vld [vmem:[#allocation4 + $0x66c] ss:$16 sps:$4 sm:$0xff]  }
 0x19e   :  { %2310 = vmatprep.subr.bf16.mxu1 %v3778_v44  ;;  %v3862_v43 = vld [vmem:[#allocation6 + $0x64] ss:$8 sps:$4 sm:$0xff]   ;;  %v3854_v44 = vld [vmem:[#allocation4 + $0x708] ss:$16 sps:$4 sm:$0xff]  }
 0x1a0   :  { %2272 = vmatpush1.bf16.msra.mxu0 %v3773_v9  ;;  %2311 = vmatpush1.bf16.msra.mxu1 %v3776_v28  ;;  %v3860_v9 = vld [vmem:[#allocation6 + $0x60] ss:$8 sps:$4 sm:$0xff]   ;;  %v3865_v28 = vld [vmem:[#allocation6 + $0x54] ss:$8 sps:$4 sm:$0xff]  }
 0x1a1   :  { %2273 = vmatprep.subr.bf16.mxu0 %v3781_v58  ;;  %2312 = vmatprep.subr.bf16.mxu1 %v3784_v45  ;;  %v3863_v58 = vld [vmem:[#allocation6 + $0x50] ss:$8 sps:$4 sm:$0xff]   ;;  %v3868_v45 = vld [vmem:[#allocation6 + $0x44] ss:$8 sps:$4 sm:$0xff]  }
 0x1a4   :  { %2274 = vmatpush1.bf16.msra.mxu0 %v3779_v47  ;;  %2313 = vmatpush1.bf16.msra.mxu1 %v3782_v48  ;;  %v3866_v47 = vld [vmem:[#allocation6 + $0x40] ss:$8 sps:$4 sm:$0xff]   ;;  %v3871_v48 = vld [vmem:[#allocation6 + $0x34] ss:$8 sps:$4 sm:$0xff]  }
 0x1a5   :  { %2275 = vmatprep.subr.bf16.mxu0 %v3787_v50  ;;  %2314 = vmatprep.subr.bf16.mxu1 %v3790_v51  ;;  %v3874_v50 = vld [vmem:[#allocation6 + $0x24] ss:$8 sps:$4 sm:$0xff]   ;;  %v3905_v51 = vld [vmem:[#allocation6 + $0x170] ss:$8 sps:$4 sm:$0xff]  }
 0x1a8   :  { %2276 = vmatpush1.bf16.msra.mxu0 %v3785_v32  ;;  %2315 = vmatpush1.bf16.msra.mxu1 %v3788_v52  ;;  %v3907_v32 = vld [vmem:[#allocation6 + $0x174] ss:$8 sps:$4 sm:$0xff]   ;;  %v3910_v52 = vld [vmem:[#allocation6 + $0x164] ss:$8 sps:$4 sm:$0xff]  }
 0x1a9   :  { %2277 = vmatprep.subr.bf16.mxu0 %v3793_v53  ;;  %2316 = vmatprep.subr.bf16.mxu1 %v3796_v10  ;;  %v3872_v53 = vld [vmem:[#allocation6 + $0x20] ss:$8 sps:$4 sm:$0xff]   ;;  %v3877_v10 = vld [vmem:[#allocation6 + $0x14] ss:$8 sps:$4 sm:$0xff]  }
 0x1ac   :  { %2278 = vmatpush1.bf16.msra.mxu0 %v3791_v55  ;;  %2317 = vmatpush1.bf16.msra.mxu1 %v3794_v56  ;;  %v3908_v55 = vld [vmem:[#allocation6 + $0x160] ss:$8 sps:$4 sm:$0xff]   ;;  %v3875_v56 = vld [vmem:[#allocation6 + $0x10] ss:$8 sps:$4 sm:$0xff]  }
 0x1ad   :  { %2279 = vmatprep.subr.bf16.mxu0 %v3799_v57  ;;  %2318 = vmatprep.subr.bf16.mxu1 %v3802_v59  ;;  %v3880_v57 = vld [vmem:[#allocation6 + $0x4] ss:$8 sps:$4 sm:$0xff]   ;;  %v3911_v59 = vld [vmem:[#allocation6 + $0x150] ss:$8 sps:$4 sm:$0xff]  }
 0x1b0   :  { %2280 = vmatpush1.bf16.msra.mxu0 %v3797_v60  ;;  %2319 = vmatpush1.bf16.msra.mxu1 %v3800_v61  ;;  %v3916_v60 = vld [vmem:[#allocation6 + $0x144] ss:$8 sps:$4 sm:$0xff]   ;;  %v3878_v61 = vld [vmem:[#allocation6] ss:$8 sps:$4 sm:$0xff]  }
 0x1b1   :  { %2281 = vmatprep.subr.bf16.mxu0 %v3805_v62  ;;  %2320 = vmatprep.subr.bf16.mxu1 %v3808_v16  ;;  %v3883_v62 = vld [vmem:[#allocation6 + $0xf4] ss:$8 sps:$4 sm:$0xff]   ;;  %v3914_v16 = vld [vmem:[#allocation6 + $0x140] ss:$8 sps:$4 sm:$0xff]  }
 0x1b4   :  { %2282 = vmatpush2.bf16.msra.mxu0 %v3803_v63  ;;  %2321 = vmatpush1.bf16.msra.mxu1 %v3806_v0  ;;  %v3919_v63 = vld [vmem:[#allocation6 + $0x134] ss:$8 sps:$4 sm:$0xff]   ;;  %v3881_v0 = vld [vmem:[#allocation6 + $0xf0] ss:$8 sps:$4 sm:$0xff]  }
 0x1b5   :  { %2283 = vmatprep.subr.bf16.mxu0 %v3811_v1  ;;  %2322 = vmatprep.subr.bf16.mxu1 %v3814_v27  ;;  %v3886_v1 = vld [vmem:[#allocation6 + $0xe4] ss:$8 sps:$4 sm:$0xff]   ;;  %v3917_v27 = vld [vmem:[#allocation6 + $0x130] ss:$8 sps:$4 sm:$0xff]  }
 0x1b8   :  { %2284 = vmatpush2.bf16.msra.mxu0 %v3809_v2  ;;  %2323 = vmatpush1.bf16.msra.mxu1 %v3812_v3  ;;  %v3922_v2 = vld [vmem:[#allocation6 + $0x124] ss:$8 sps:$4 sm:$0xff]   ;;  %v3884_v3 = vld [vmem:[#allocation6 + $0xe0] ss:$8 sps:$4 sm:$0xff]  }
 0x1b9   :  { %2285 = vmatprep.subr.bf16.mxu0 %v3817_v4  ;;  %2324 = vmatprep.subr.bf16.mxu1 %v3820_v5  ;;  %v3889_v4 = vld [vmem:[#allocation6 + $0xd4] ss:$8 sps:$4 sm:$0xff]   ;;  %v3920_v5 = vld [vmem:[#allocation6 + $0x120] ss:$8 sps:$4 sm:$0xff]  }
 0x1bc   :  { %2286 = vmatpush2.bf16.msra.mxu0 %v3815_v7  ;;  %2325 = vmatpush2.bf16.msra.mxu1 %v3818_v8  ;;  %v3925_v7 = vld [vmem:[#allocation6 + $0x114] ss:$8 sps:$4 sm:$0xff]   ;;  %v3887_v8 = vld [vmem:[#allocation6 + $0xd0] ss:$8 sps:$4 sm:$0xff]  }
 0x1bd   :  { %2287 = vmatprep.subr.bf16.mxu0 %v3823_v40  ;;  %2326 = vmatprep.subr.bf16.mxu1 %v3826_v11  ;;  %v3892_v40 = vld [vmem:[#allocation6 + $0xc4] ss:$8 sps:$4 sm:$0xff]   ;;  %v3923_v11 = vld [vmem:[#allocation6 + $0x110] ss:$8 sps:$4 sm:$0xff]  }
 0x1c0   :  { %2288 = vmatpush2.bf16.msra.mxu0 %v3821_v13  ;;  %2327 = vmatpush2.bf16.msra.mxu1 %v3824_v14  ;;  %v3928_v13 = vld [vmem:[#allocation6 + $0x104] ss:$8 sps:$4 sm:$0xff]   ;;  %v3890_v14 = vld [vmem:[#allocation6 + $0xc0] ss:$8 sps:$4 sm:$0xff]  }
 0x1c1   :  { %2289 = vmatprep.subr.bf16.mxu0 %v3829_v15  ;;  %2328 = vmatprep.subr.bf16.mxu1 %v3832_v17  ;;  %v3895_v15 = vld [vmem:[#allocation6 + $0xb4] ss:$8 sps:$4 sm:$0xff]   ;;  %v3926_v17 = vld [vmem:[#allocation6 + $0x100] ss:$8 sps:$4 sm:$0xff]  }
 0x1c4   :  { %2290 = vmatpush2.bf16.msra.mxu0 %v3827_v42  ;;  %2329 = vmatpush2.bf16.msra.mxu1 %v3830_v54  ;;  %v3931_v42 = vld [vmem:[#allocation6 + $0x1f4] ss:$8 sps:$4 sm:$0xff]   ;;  %v3893_v54 = vld [vmem:[#allocation6 + $0xb0] ss:$8 sps:$4 sm:$0xff]  }
 0x1c5   :  { %2291 = vmatprep.subr.bf16.mxu0 %v3835_v18  ;;  %2330 = vmatprep.subr.bf16.mxu1 %v3838_v19  ;;  %v3898_v18 = vld [vmem:[#allocation6 + $0xa4] ss:$8 sps:$4 sm:$0xff]   ;;  %v3929_v19 = vld [vmem:[#allocation6 + $0x1f0] ss:$8 sps:$4 sm:$0xff]  }
 0x1c8   :  { %2292 = vmatpush2.bf16.msra.mxu0 %v3833_v20  ;;  %2331 = vmatpush2.bf16.msra.mxu1 %v3836_v21  ;;  %v3934_v20 = vld [vmem:[#allocation6 + $0x1e4] ss:$8 sps:$4 sm:$0xff]   ;;  %v3896_v21 = vld [vmem:[#allocation6 + $0xa0] ss:$8 sps:$4 sm:$0xff]  }
 0x1c9   :  { %2293 = vmatprep.subr.bf16.mxu0 %v3841_v22  ;;  %2332 = vmatprep.subr.bf16.mxu1 %v3844_v23  ;;  %v3901_v23 = vld [vmem:[#allocation6 + $0x94] ss:$8 sps:$4 sm:$0xff]  }
 0x1cc   :  { %2294 = vmatpush2.bf16.msra.mxu0 %v3839_v25  ;;  %2333 = vmatpush2.bf16.msra.mxu1 %v3842_v26  ;;  %v3932_v25 = vld [vmem:[#allocation6 + $0x1e0] ss:$8 sps:$4 sm:$0xff]   ;;  %v3899_v26 = vld [vmem:[#allocation6 + $0x90] ss:$8 sps:$4 sm:$0xff]  }
 0x1cd   :  { %2295 = vmatprep.subr.bf16.mxu0 %v3847_v29  ;;  %2334 = vmatprep.subr.bf16.mxu1 %v3850_v6  ;;  %v3904_v6 = vld [vmem:[#allocation6 + $0x84] ss:$8 sps:$4 sm:$0xff]  }
 0x1d0   :  { %2296 = vmatpush2.bf16.msra.mxu0 %v3845_v30  ;;  %2335 = vmatpush2.bf16.msra.mxu1 %v3848_v31  ;;  %v3902_v30 = vld [vmem:[#allocation6 + $0x80] ss:$8 sps:$4 sm:$0xff]  }
 0x1d1   :  { %2336 = vmatprep.subr.bf16.mxu1 %v3853_v33  ;;  %2767 = vmatprep.subr.bf16.mxu0 %v3859_v34 }
 0x1d3   :  { %2298 = vmatmul.mubr.bf16.vlgmr.msra.gmra.mxu0 %v4218_v12  ;;  %v3869_v12 = vld [vmem:[#allocation6 + $0x30] ss:$8 sps:$4 sm:$0xff]   ;;  %v2041_v22 = vpop.f32.mrf.mxu0 }
 0x1d4   :  { %2337 = vmatpush2.bf16.msra.mxu1 %v3851_v35  ;;  %2768 = vmatpush1.bf16.msra.mxu0 %v3857_v36  ;;  %v4235_v36 = vld [vmem:[%s4262_s4] sm:$0xf] }
 0x1d5   :  { %2338 = vmatprep.subr.bf16.mxu1 %v3856_v41  ;;  %2769 = vmatprep.subr.bf16.mxu0 %v3862_v43  ;;  %v2043_v29 = vpop.f32.mrf.mxu0  ;;  %v3937_v41 = vld [vmem:[#allocation6 + $0x1d4] ss:$8 sps:$4 sm:$0xff]  }
 0x1d7   :  { %v2045_v31 = vpop.f32.mrf.mxu0 }
 0x1d8   :  { %2339 = vmatpush2.bf16.msra.mxu1 %v3854_v44  ;;  %2770 = vmatpush1.bf16.msra.mxu0 %v3860_v9  ;;  %v3935_v44 = vld [vmem:[#allocation6 + $0x1d0] ss:$8 sps:$4 sm:$0xff]   ;;  %v714_v9 = vrot.slane %v4235_v36, %v4158_v38 }
 0x1d9   :  { %2771 = vmatprep.subr.bf16.mxu0 %v3865_v28  ;;  %2810 = vmatprep.subr.bf16.mxu1 %v3907_v32  ;;  %v2047_v34 = vpop.f32.mrf.mxu0  ;;  %v710_v28 = vrot.slane %v4235_v36, %v4161_v39 }
 0x1db   :  { %2341 = vmatmul.mubr.bf16.vlgmr.msra.gmra.mxu1 %v4222_v24  ;;  %v3913_v24 = vld [vmem:[#allocation6 + $0x154] ss:$8 sps:$4 sm:$0xff]   ;;  %v2084_v33 = vpop.f32.mrf.mxu1 }
 0x1dc   :  { %2772 = vmatpush1.bf16.msra.mxu0 %v3863_v58  ;;  %2811 = vmatpush1.bf16.msra.mxu1 %v3905_v51 }
 0x1dd   :  { %2773 = vmatprep.subr.bf16.mxu0 %v3868_v45  ;;  %2812 = vmatprep.subr.bf16.mxu1 %v3910_v52  ;;  %v2086_v35 = vpop.f32.mrf.mxu1  ;;  %v2046_v52 = vadd.f32 %v2045_v31, %v710_v28  ;;  %v3957_v31 = vld [vmem:[#allocation7 + $0x68] sm:$0xff]  }
 0x1df   :  { %v2088_v58 = vpop.f32.mrf.mxu1 }
 0x1e0   :  { %2774 = vmatpush1.bf16.msra.mxu0 %v3866_v47  ;;  %2813 = vmatpush1.bf16.msra.mxu1 %v3908_v55  ;;  %v3940_v47 = vld [vmem:[#allocation6 + $0x1c4] ss:$8 sps:$4 sm:$0xff]  }
 0x1e1   :  { %2775 = vmatprep.subr.bf16.mxu0 %v3871_v48  ;;  %2814 = vmatprep.subr.bf16.mxu1 %v3913_v24  ;;  %v3938_v48 = vld [vmem:[#allocation6 + $0x1c0] ss:$8 sps:$4 sm:$0xff]   ;;  %v2090_v51 = vpop.f32.mrf.mxu1 }
 0x1e4   :  { %2776 = vmatpush1.bf16.msra.mxu0 %v3869_v12  ;;  %2815 = vmatpush1.bf16.msra.mxu1 %v3911_v59  ;;  %v2044_v12 = vadd.f32 %v2043_v29, %v714_v9  ;;  %v2089_v59 = vadd.f32 %v2088_v58, %v2046_v52  ;;  %v3954_v29 = vld [vmem:[#allocation7 + $0x38] sm:$0xff]  }
 0x1e5   :  { %2777 = vmatprep.subr.bf16.mxu0 %v3874_v50  ;;  %2816 = vmatprep.subr.bf16.mxu1 %v3916_v60  ;;  %v2042_v50 = vadd.f32 %v2041_v22, %v710_v28 }
 0x1e7   :  { %v2085_v55 = vadd.f32 %v2084_v33, %v2042_v50  ;;  %v3958_v33 = vld [vmem:[#allocation7 + $0x28] sm:$0xff]  }
 0x1e8   :  { %2778 = vmatpush1.bf16.msra.mxu0 %v3872_v53  ;;  %2817 = vmatpush1.bf16.msra.mxu1 %v3914_v16  ;;  %v2087_v53 = vadd.f32 %v2086_v35, %v2044_v12  ;;  %v3960_v35 = vld [vmem:[#allocation7 + $0x20] sm:$0xff]  }
 0x1e9   :  { %2779 = vmatprep.subr.bf16.mxu0 %v3877_v10  ;;  %2818 = vmatprep.subr.bf16.mxu1 %v3919_v63  ;;  %v3943_v10 = vld [vmem:[#allocation6 + $0x1b4] ss:$8 sps:$4 sm:$0xff]  }
 0x1ec   :  { %2780 = vmatpush1.bf16.msra.mxu0 %v3875_v56  ;;  %2819 = vmatpush1.bf16.msra.mxu1 %v3917_v27  ;;  %v3941_v56 = vld [vmem:[#allocation6 + $0x1b0] ss:$8 sps:$4 sm:$0xff]   ;;  %v3946_v27 = vld [vmem:[#allocation6 + $0x1a4] ss:$8 sps:$4 sm:$0xff]  }
 0x1ed   :  { %2781 = vmatprep.subr.bf16.mxu0 %v3880_v57  ;;  %2820 = vmatprep.subr.bf16.mxu1 %v3922_v2  ;;  %v2048_v57 = vadd.f32 %v2047_v34, %v714_v9  ;;  %v3959_v34 = vld [vmem:[#allocation7 + $0x60] sm:$0xff]  }
 0x1ef   :  { %v2091_v63 = vadd.f32 %v2090_v51, %v2048_v57 }
 0x1f0   :  { %2782 = vmatpush1.bf16.msra.mxu0 %v3878_v61  ;;  %2821 = vmatpush1.bf16.msra.mxu1 %v3920_v5 }
 0x1f1   :  { %2783 = vmatprep.subr.bf16.mxu0 %v3883_v62  ;;  %2822 = vmatprep.subr.bf16.mxu1 %v3925_v7 }
 0x1f4   :  { %2784 = vmatpush2.bf16.msra.mxu0 %v3881_v0  ;;  %2823 = vmatpush1.bf16.msra.mxu1 %v3923_v11 }
 0x1f5   :  { %2785 = vmatprep.subr.bf16.mxu0 %v3886_v1  ;;  %2824 = vmatprep.subr.bf16.mxu1 %v3928_v13 }
 0x1f8   :  { %2786 = vmatpush2.bf16.msra.mxu0 %v3884_v3  ;;  %2825 = vmatpush1.bf16.msra.mxu1 %v3926_v17  ;;  %v3947_v17 = vld [vmem:[#allocation6 + $0x190] ss:$8 sps:$4 sm:$0xff]  }
 0x1f9   :  { %2787 = vmatprep.subr.bf16.mxu0 %v3889_v4  ;;  %2826 = vmatprep.subr.bf16.mxu1 %v3931_v42  ;;  %v3944_v4 = vld [vmem:[#allocation6 + $0x1a0] ss:$8 sps:$4 sm:$0xff]  }
 0x1fc   :  { %2788 = vmatpush2.bf16.msra.mxu0 %v3887_v8  ;;  %2827 = vmatpush2.bf16.msra.mxu1 %v3929_v19 }
 0x1fd   :  { %2789 = vmatprep.subr.bf16.mxu0 %v3892_v40  ;;  %2828 = vmatprep.subr.bf16.mxu1 %v3934_v20  ;;  %v3950_v20 = vld [vmem:[#allocation6 + $0x180] ss:$8 sps:$4 sm:$0xff]  }
 0x200   :  { %2790 = vmatpush2.bf16.msra.mxu0 %v3890_v14  ;;  %2829 = vmatpush2.bf16.msra.mxu1 %v3932_v25  ;;  %v3949_v14 = vld [vmem:[#allocation6 + $0x194] ss:$8 sps:$4 sm:$0xff]  }
 0x201   :  { %2791 = vmatprep.subr.bf16.mxu0 %v3895_v15  ;;  %2830 = vmatprep.subr.bf16.mxu1 %v3937_v41 }
 0x204   :  { %2792 = vmatpush2.bf16.msra.mxu0 %v3893_v54  ;;  %2831 = vmatpush2.bf16.msra.mxu1 %v3935_v44 }
 0x205   :  { %2793 = vmatprep.subr.bf16.mxu0 %v3898_v18  ;;  %2832 = vmatprep.subr.bf16.mxu1 %v3940_v47  ;;  %v722_v47 = vrot.slane %v4235_v36, %v122_v46 }
 0x208   :  { %2794 = vmatpush2.bf16.msra.mxu0 %v3896_v21  ;;  %2833 = vmatpush2.bf16.msra.mxu1 %v3938_v48  ;;  %v3952_v21 = vld [vmem:[#allocation6 + $0x184] ss:$8 sps:$4 sm:$0xff]   ;;  %v718_v48 = vrot.slane %v4235_v36, %v118_v49 }
 0x209   :  { %2795 = vmatprep.subr.bf16.mxu0 %v3901_v23  ;;  %2834 = vmatprep.subr.bf16.mxu1 %v3943_v10 }
 0x20c   :  { %2796 = vmatpush2.bf16.msra.mxu0 %v3899_v26  ;;  %2835 = vmatpush2.bf16.msra.mxu1 %v3941_v56  ;;  %v3953_v26 = vld [vmem:[#allocation7 + $0x78] sm:$0xff]  }
 0x20d   :  { %2797 = vmatprep.subr.bf16.mxu0 %v3904_v6  ;;  %2836 = vmatprep.subr.bf16.mxu1 %v3946_v27  ;;  %v3955_v6 = vld [vmem:[#allocation7 + $0x70] sm:$0xff]  }
 0x210   :  { %2798 = vmatpush2.bf16.msra.mxu0 %v3902_v30  ;;  %2837 = vmatpush2.bf16.msra.mxu1 %v3944_v4  ;;  %v3956_v30 = vld [vmem:[#allocation7 + $0x30] sm:$0xff]  }
 0x211   :  { %2838 = vmatprep.subr.bf16.mxu1 %v3949_v14  ;;  %3437 = vmatprep.subr.bf16.mxu0 %v3953_v26  ;;  %v2435_v26 = vld [vmem:[%s4264_s6] sm:$0x3] }
 0x213   :  { %v2127_v43 = vpop.f32.mrf.mxu0 }
 0x214   :  { %v2128_v61 = vadd.f32 %v2127_v43, %v2085_v55  ;;  %2839 = vmatpush2.bf16.msra.mxu1 %v3947_v17  ;;  %v3961_v17 = vld [vmem:[#allocation7 + $0x58] sm:$0xff]  }
 0x215   :  { %v2129_v45 = vpop.f32.mrf.mxu0  ;;  %2840 = vmatprep.subr.bf16.mxu1 %v3952_v21  ;;  %v3967_v21 = vld [vmem:[#allocation7 + $0x40] sm:$0xff]  }
 0x216   :  { %v2130_v60 = vadd.f32 %v2129_v45, %v2087_v53 }
 0x217   :  { %v2131_v32 = vpop.f32.mrf.mxu0 }
 0x218   :  { %v2132_v0 = vadd.f32 %v2131_v32, %v2089_v59  ;;  %2841 = vmatpush2.bf16.msra.mxu1 %v3950_v20  ;;  %v3966_v20 = vld [vmem:[#allocation7 + $0x8] sm:$0xff]  }
 0x219   :  { %v2133_v62 = vpop.f32.mrf.mxu0 }
 0x21a   :  { %v2134_v5 = vadd.f32 %v2133_v62, %v2091_v63 }
 0x21b   :  { %v2170_v24 = vpop.f32.mrf.mxu1 }
 0x21c   :  { %v2171_v2 = vadd.f32 %v2170_v24, %v2128_v61 }
 0x21d   :  { %v2172_v16 = vpop.f32.mrf.mxu1 }
 0x21e   :  { %v2173_v1 = vadd.f32 %v2172_v16, %v2130_v60  ;;  %v2351_v15 = vmul.f32 0.2, %v2171_v2 }
 0x21f   :  { %v2174_v3 = vpop.f32.mrf.mxu1 }
 0x220   :  { %v2175_v7 = vadd.f32 %v2174_v3, %v2132_v0  ;;  %v2352_v40 = vmul.f32 0.2, %v2173_v1  ;;  %v2359_v22 = vmax.f32 %v2171_v2, %v2351_v15 }
 0x221   :  { %v2176_v8 = vpop.f32.mrf.mxu1 }
 0x222   :  { %v2355_v11 = vmul.f32 0.2, %v2175_v7  ;;  %v2177_v13 = vadd.f32 %v2176_v8, %v2134_v5  ;;  %v2360_v18 = vmax.f32 %v2173_v1, %v2352_v40 }
 0x224   :  { %v2356_v42 = vmul.f32 0.2, %v2177_v13  ;;  %v2363_v54 = vmax.f32 %v2175_v7, %v2355_v11 }
 0x226   :  { %v2364_v19 = vmax.f32 %v2177_v13, %v2356_v42  ;;  %v2367_v25 = vpack.c.bf16 %v2363_v54, %v2359_v22  ;;  %v3962_v42 = vld [vmem:[#allocation7 + $0x18] sm:$0xff]   ;;  %v3963_v54 = vld [vmem:[#allocation7 + $0x50] sm:$0xff]   ;;  %v3968_v22 = vld [vmem:[#allocation7] sm:$0xff]  }
 0x228   :  { %v2368_v23 = vpack.c.bf16 %v2364_v19, %v2360_v18  ;;  %v3964_v18 = vld [vmem:[#allocation7 + $0x10] sm:$0xff]   ;;  %v3965_v19 = vld [vmem:[#allocation7 + $0x48] sm:$0xff]  }
 0x22a   :  { %2799 = vmatprep.mubr.bf16.mxu0 %v2368_v23 }
 0x22b   :  { %2800 = vmatmul.mubr.bf16.vlgmr.msra.gmra.mxu0 %v2367_v25 }
 0x22c   :  { %3438 = vmatpush3.bf16.msra.mxu0 %v3954_v29  ;;  %v2444_v29 = vrot.slane %v2435_v26, %v4158_v38 }
 0x22d   :  { %3439 = vmatprep.subr.bf16.mxu0 %v3955_v6  ;;  %v2440_v6 = vrot.slane %v2435_v26, %v4161_v39 }
 0x230   :  { %3440 = vmatpush3.bf16.msra.mxu0 %v3956_v30 }
 0x231   :  { %3441 = vmatprep.subr.bf16.mxu0 %v3957_v31 }
 0x234   :  { %3442 = vmatpush3.bf16.msra.mxu0 %v3958_v33 }
 0x235   :  { %3443 = vmatprep.subr.bf16.mxu0 %v3959_v34 }
 0x238   :  { %3444 = vmatpush3.bf16.msra.mxu0 %v3960_v35 }
 0x239   :  { %3445 = vmatprep.subr.bf16.mxu0 %v3961_v17 }
 0x23c   :  { %3446 = vmatpush3.bf16.msra.mxu0 %v3962_v42 }
 0x23d   :  { %3447 = vmatprep.subr.bf16.mxu0 %v3963_v54 }
 0x240   :  { %3448 = vmatpush3.bf16.msra.mxu0 %v3964_v18 }
 0x241   :  { %3449 = vmatprep.subr.bf16.mxu0 %v3965_v19 }
 0x244   :  { %3450 = vmatpush3.bf16.msra.mxu0 %v3966_v20 }
 0x245   :  { %3451 = vmatprep.subr.bf16.mxu0 %v3967_v21 }
 0x248   :  { %3452 = vmatpush3.bf16.msra.mxu0 %v3968_v22 }
 0x253   :  { %v2213_v41 = vpop.f32.mrf.mxu0 }
 0x254   :  { %v2214_v32 = vadd.f32 %v2213_v41, %v718_v48 }
 0x255   :  { %v2215_v43 = vpop.f32.mrf.mxu0 }
 0x256   :  { %v2216_v51 = vadd.f32 %v2215_v43, %v722_v47 }
 0x257   :  { %v2217_v44 = vpop.f32.mrf.mxu0 }
 0x258   :  { %v2218_v10 = vadd.f32 %v2217_v44, %v718_v48 }
 0x259   :  { %v2219_v28 = vpop.f32.mrf.mxu0 }
 0x25a   :  { %v2220_v57 = vadd.f32 %v2219_v28, %v722_v47 }
 0x25b   :  { %v2256_v9 = vpop.f32.mrf.mxu1 }
 0x25c   :  { %v2257_v24 = vadd.f32 %v2256_v9, %v2214_v32 }
 0x25d   :  { %v2258_v58 = vpop.f32.mrf.mxu1 }
 0x25e   :  { %v2259_v55 = vadd.f32 %v2258_v58, %v2216_v51 }
 0x25f   :  { %v2260_v12 = vpop.f32.mrf.mxu1 }
 0x260   :  { %v2261_v59 = vadd.f32 %v2260_v12, %v2218_v10 }
 0x261   :  { %v2262_v52 = vpop.f32.mrf.mxu1 }
 0x262   :  { %v2263_v16 = vadd.f32 %v2262_v52, %v2220_v57 }
 0x293   :  { %v2299_v45 = vpop.f32.mrf.mxu0 }
 0x294   :  { %v2300_v61 = vadd.f32 %v2299_v45, %v2257_v24 }
 0x295   :  { %v2301_v50 = vpop.f32.mrf.mxu0 }
 0x296   :  { %v2302_v60 = vadd.f32 %v2301_v50, %v2259_v55 }
 0x297   :  { %v2303_v53 = vpop.f32.mrf.mxu0 }
 0x298   :  { %v2304_v37 = vadd.f32 %v2303_v53, %v2261_v59 }
 0x299   :  { %v2305_v62 = vpop.f32.mrf.mxu0 }
 0x29a   :  { %v2306_v0 = vadd.f32 %v2305_v62, %v2263_v16 }
 0x29b   :  { %v2342_v56 = vpop.f32.mrf.mxu1 }
 0x29c   :  { %v2343_v49 = vadd.f32 %v2342_v56, %v2300_v61  ;;  %v3409_v56 = vld [vmem:[%s4266_s8] ss:$0 sm:$0xff] }
 0x29d   :  { %v2344_v46 = vpop.f32.mrf.mxu1 }
 0x29e   :  { %v2345_v63 = vadd.f32 %v2344_v46, %v2302_v60  ;;  %v2353_v5 = vmul.f32 0.2, %v2343_v49 }
 0x29f   :  { %v2346_v36 = vpop.f32.mrf.mxu1 }
 0x2a0   :  { %v2347_v1 = vadd.f32 %v2346_v36, %v2304_v37  ;;  %v2354_v2 = vmul.f32 0.2, %v2345_v63  ;;  %v2361_v13 = vmax.f32 %v2343_v49, %v2353_v5 }
 0x2a1   :  { %v2348_v27 = vpop.f32.mrf.mxu1 }
 0x2a2   :  { %v2357_v3 = vmul.f32 0.2, %v2347_v1  ;;  %v2349_v4 = vadd.f32 %v2348_v27, %v2306_v0  ;;  %v2362_v40 = vmax.f32 %v2345_v63, %v2354_v2 }
 0x2a4   :  { %v2358_v7 = vmul.f32 0.2, %v2349_v4  ;;  %v2365_v8 = vmax.f32 %v2347_v1, %v2357_v3 }
 0x2a6   :  { %v2366_v11 = vmax.f32 %v2349_v4, %v2358_v7  ;;  %v2369_v15 = vpack.c.bf16 %v2365_v8, %v2361_v13 }
 0x2a8   :  { %v2370_v14 = vpack.c.bf16 %v2366_v11, %v2362_v40 }
 0x2aa   :  { %2842 = vmatprep.mubr.bf16.mxu1 %v2370_v14 }
 0x2ab   :  { %2843 = vmatmul.mubr.bf16.vlgmr.msra.gmra.mxu1 %v2369_v15 }
 0x2eb   :  { %v2801_v23 = vpop.f32.mrf.mxu0 }
 0x2ec   :  { %v2802_v34 = vadd.f32 %v2801_v23, %v2440_v6 }
 0x2ed   :  { %v2803_v25 = vpop.f32.mrf.mxu0 }
 0x2ee   :  { %v2804_v33 = vadd.f32 %v2803_v25, %v2444_v29 }
 0x2ef   :  { %v2805_v30 = vpop.f32.mrf.mxu0 }
 0x2f0   :  { %v2806_v43 = vadd.f32 %v2805_v30, %v2440_v6 }
 0x2f1   :  { %v2807_v35 = vpop.f32.mrf.mxu0 }
 0x2f2   :  { %v2808_v58 = vadd.f32 %v2807_v35, %v2444_v29 }
 0x36b   :  { %v2844_v31 = vpop.f32.mrf.mxu1 }
 0x36c   :  { %v2845_v9 = vadd.f32 %v2844_v31, %v2802_v34 }
 0x36d   :  { %v2846_v41 = vpop.f32.mrf.mxu1 }
 0x36e   :  { %v2847_v44 = vadd.f32 %v2846_v41, %v2804_v33  ;;  %v2853_v51 = vmul.f32 0.2, %v2845_v9 }
 0x36f   :  { %v2848_v28 = vpop.f32.mrf.mxu1 }
 0x370   :  { %v2849_v45 = vadd.f32 %v2848_v28, %v2806_v43  ;;  %v2854_v48 = vmul.f32 0.2, %v2847_v44  ;;  %v2857_v53 = vmax.f32 %v2845_v9, %v2853_v51 }
 0x371   :  { %v2850_v47 = vpop.f32.mrf.mxu1 }
 0x372   :  { %v2855_v12 = vmul.f32 0.2, %v2849_v45  ;;  %v2851_v50 = vadd.f32 %v2850_v47, %v2808_v58  ;;  %v2858_v39 = vmax.f32 %v2847_v44, %v2854_v48 }
 0x374   :  { %v2856_v38 = vmul.f32 0.2, %v2851_v50  ;;  %v2859_v32 = vmax.f32 %v2849_v45, %v2855_v12 }
 0x376   :  { %v2860_v52 = vmax.f32 %v2851_v50, %v2856_v38  ;;  %v2861_v55 = vpack.c.bf16 %v2859_v32, %v2857_v53 }
 0x378   :  { %v2862_v10 = vpack.c.bf16 %v2860_v52, %v2858_v39 }
 0x37a   :  { %3030 = vmatprep.mubr.bf16.mxu0 %v2862_v10 }
 0x37b   :  { %3031 = vmatmul.mubr.bf16.vlgmr.msra.gmra.mxu0 %v2861_v55 }
 0x43b   :  { %v3453_v24 = vpop.f32.mrf.mxu0 }
 0x43d   :  { %v3454_v57 = vpop.f32.mrf.mxu0 }
 0x43e   :  { %v3455_v59 = vadd.f32 %v3454_v57, %v3453_v24 }
 0x43f   :  { %v3456_v60 = vpop.f32.mrf.mxu0 }
 0x440   :  { %v3033_v61 = vadd.f32 %v3455_v59, %v3409_v56 }
 0x441   :  { %v3457_v62 = vpop.f32.mrf.mxu0 }
 0x442   :  { %v3426_v46 = vmul.f32 -1.442695, %v3033_v61  ;;  %v3458_v16 = vadd.f32 %v3457_v62, %v3456_v60 }
 0x444   :  { %3969 = vpow2.f32 %v3426_v46  ;;  %v3036_v37 = vadd.f32 %v3458_v16, %v3409_v56 }
 0x446   :  { %v3427_v63 = vmul.f32 -1.442695, %v3036_v37 }
 0x448   :  { %3971 = vpow2.f32 %v3427_v63 }
 0x451   :  { %v3970_v49 = vpop.eup %3969 }
 0x452   :  { %v3045_v36 = vadd.f32 1.0, %v3970_v49 }
 0x454   :  { %3973 = vrcp.f32 %v3045_v36 }
 0x455   :  { %v3972_v0 = vpop.eup %3971 }
 0x456   :  { %v3046_v1 = vadd.f32 1.0, %v3972_v0 }
 0x458   :  { %3975 = vrcp.f32 %v3046_v1 }
 0x461   :  { %v3974_v27 = vpop.eup %3973 }
 0x465   :  { %v3976_v2 = vpop.eup %3975 }
 0x466   :  { %v3435_v3 = vpack.c.bf16 %v3976_v2, %v3974_v27 }
 0x468   :  { %3436 = vst [vmem:[%s4267_s9] sm:$0xff] %v3435_v3  }
 0x469   :  { %3065 = vsyncpa [#allocation3], 1 }
 0x46a   :  { %3066 = vsyncpa [#allocation5], 1 }
 0x46b   :  { %3067 = vsyncpa [#allocation8], 1 }

// kernel: _forward.1
= control target key start
LH: loop header
LB: loop body
LE: loop exit
PB: predicated region body
PF: predicated region fallthrough
CT: control target
= control target key end

     0   :  { %14 = vsyncpa [#allocation3], 0  ;;  %s4258_s0 = inlined_call_operand.vmem [shape: bf16[16,32], index: 0, kind: input, shape index: {}]   ;;  %s4259_s1 = inlined_call_operand.hbm [shape: bf16[32,1024], index: 1, kind: input, shape index: {}]   ;;  %s4260_s2 = inlined_call_operand.vmem [shape: f32[1,1024], index: 2, kind: input, shape index: {}]   ;;  %s4261_s3 = inlined_call_operand.hbm [shape: bf16[1024,512], index: 3, kind: input, shape index: {}]   ;;  %s4262_s4 = inlined_call_operand.vmem [shape: f32[1,512], index: 4, kind: input, shape index: {}]   ;;  %s4263_s5 = inlined_call_operand.hbm [shape: bf16[512,256], index: 5, kind: input, shape index: {}]   ;;  %s4264_s6 = inlined_call_operand.vmem [shape: f32[1,256], index: 6, kind: input, shape index: {}]   ;;  %s4265_s7 = inlined_call_operand.hbm [shape: bf16[256,128], index: 7, kind: input, shape index: {}]   ;;  %s4266_s8 = inlined_call_operand.vmem [shape: f32[1,128], index: 8, kind: input, shape index: {}]   ;;  %s4267_s9 = inlined_call_operand.vmem [shape: bf16[16,128], index: 9, kind: output, shape index: {}]  }
   0x1   :  { %15 = vsyncpa [#allocation5], 0 }
   0x2   :  { %16 = vsyncpa [#allocation8], 0  ;;  %s4063_s30 = smov [#allocation4]  }
   0x3   :  { %s38_s10 = sshll.u32 %s4063_s30, 4  ;;  %s39_s10 = int_to_ptr.vmem [resolvable:$true] %s38_s10 }
   0x4   :  { %s3985_s11 = scalar_lea.vmem %s39_s10, 32768  ;;  %p3990_p1 = scmp.lt.s32.totalorder %s39_s10, %s39_s10 }
   0x5   :  { %p3986_p0 = scmp.ne.s32.totalorder %s39_s10, %s3985_s11  ;;  %p3991_p2 = scmp.lt.s32.totalorder %s3985_s11, %s3985_s11 }
   0x7   :  { %p3992_p3 = por %p3991_p2, %p3990_p1 }
   0x9   :  { %p3993_p4 = pnand %p3992_p3, %p3986_p0 }
   0xb   :  { %3996 = shalt.err (!%p3993_p4)
}
   0xc   :  { %s4064_s12 = smov 256   ;;  %s4065_s13 = smov 16  }
   0xd   :  { %44 = dma.hbm_to_vmem [thread:$0]  %s4261_s3, 32768, %s39_s10, [#allocation5], %s4064_s12, %s4064_s12, %s4065_s13  }
   0xe   :  { %s4066_s16 = smov [#allocation2]  }
   0xf   :  { %s24_s17 = sshll.u32 %s4066_s16, 4  ;;  %s25_s17 = int_to_ptr.vmem [resolvable:$true] %s24_s17 }
  0x10   :  { %s4005_s18 = scalar_lea.vmem %s25_s17, 2048  ;;  %p4010_p6 = scmp.lt.s32.totalorder %s25_s17, %s25_s17 }
  0x11   :  { %p4006_p5 = scmp.ne.s32.totalorder %s25_s17, %s4005_s18  ;;  %p4011_p7 = scmp.lt.s32.totalorder %s4005_s18, %s4005_s18 }
  0x13   :  { %p4012_p8 = por %p4011_p7, %p4010_p6 }
  0x15   :  { %p4013_p9 = pnand %p4012_p8, %p4006_p5 }
  0x17   :  { %4016 = shalt.err (!%p4013_p9)
}
  0x18   :  { %s4067_s19 = smov 512   ;;  %s4068_s20 = smov 32  }
  0x19   :  { %30 = dma.hbm_to_vmem [thread:$0]  %s4259_s1, 2048, %s25_s17, [#allocation3], %s4067_s19, %s4067_s19, %s4068_s20  }
  0x1a   :  { %s4069_s23 = smov [#allocation6]  }
  0x1b   :  { %s52_s24 = sshll.u32 %s4069_s23, 4  ;;  %s53_s24 = int_to_ptr.vmem [resolvable:$true] %s52_s24 }
  0x1c   :  { %s4025_s3 = scalar_lea.vmem %s53_s24, 8192  ;;  %p4030_p11 = scmp.lt.s32.totalorder %s53_s24, %s53_s24 }
  0x1d   :  { %p4026_p10 = scmp.ne.s32.totalorder %s53_s24, %s4025_s3  ;;  %p4031_p12 = scmp.lt.s32.totalorder %s4025_s3, %s4025_s3 }
  0x1f   :  { %p4032_p13 = por %p4031_p12, %p4030_p11 }
  0x21   :  { %p4033_p0 = pnand %p4032_p13, %p4026_p10 }
  0x23   :  { %4036 = shalt.err (!%p4033_p0)
}
  0x24   :  { %s4070_s25 = smov 128   ;;  %s4071_s26 = smov 8  }
  0x25   :  { %58 = dma.hbm_to_vmem [thread:$0]  %s4263_s5, 8192, %s53_s24, [#allocation5], %s4070_s25, %s4070_s25, %s4071_s26  }
  0x26   :  { %s4072_s29 = smov [#allocation7]  }
  0x27   :  { %s66_s30 = sshll.u32 %s4072_s29, 4  ;;  %s67_s30 = int_to_ptr.vmem [resolvable:$true] %s66_s30 }
  0x28   :  { %s4045_s1 = scalar_lea.vmem %s67_s30, 2048  ;;  %p4050_p2 = scmp.lt.s32.totalorder %s67_s30, %s67_s30 }
  0x29   :  { %p4046_p1 = scmp.ne.s32.totalorder %s67_s30, %s4045_s1  ;;  %p4051_p3 = scmp.lt.s32.totalorder %s4045_s1, %s4045_s1 }
  0x2b   :  { %p4052_p4 = por %p4051_p3, %p4050_p2 }
  0x2d   :  { %p4053_p5 = pnand %p4052_p4, %p4046_p1 }
  0x2f   :  { %4056 = shalt.err (!%p4053_p5)
}
  0x30   :  { %s4073_s10 = smov 64   ;;  %s4074_s11 = smov 4  }
  0x31   :  { %72 = dma.hbm_to_vmem [thread:$0]  %s4265_s7, 2048, %s67_s30, [#allocation8], %s4073_s10, %s4073_s10, %s4074_s11  }
  0x32   :  { %4057 = dma.done.wait [#allocation3], 2048  }
  0x33   :  { %4058 = vsyncadd [#allocation3], 4294965248 }
  0x34   :  { %4059 = dma.done.wait [#allocation5], 40960  }
  0x35   :  { %4060 = vsyncadd [#allocation5], 4294926336 }
  0x36   :  { %4061 = dma.done.wait [#allocation8], 2048  }
  0x37   :  { %4062 = vsyncadd [#allocation8], 4294965248  ;;  %v4075_v0 = vmov 0   ;;  %v98_v1 = vld [vmem:[#allocation2 + $0x40] sm:$0xff]  ;;  %v99_v8 = vld [vmem:[#allocation2 + $0x48] sm:$0xff]  ;;  %vm233_vm0 = vcmask 261120  }
  0x38   :  { %269 = vmatprep.mubr.bf16.mxu1 %v4075_v0  ;;  %v102_v2 = vld [vmem:[#allocation2 + $0x60] sm:$0xff]  ;;  %v103_v9 = vld [vmem:[#allocation2 + $0x68] sm:$0xff]  ;;  %v100_v18 = vld [vmem:[#allocation2 + $0x50] sm:$0xff] }
  0x39   :  { %v90_v3 = vld [vmem:[#allocation2] sm:$0xff]  ;;  %v3078_v4 = vcombine.high %v98_v1, %v102_v2  ;;  %v3077_v5 = vcombine.low %v98_v1, %v102_v2  ;;  %v3080_v12 = vcombine.high %v99_v8, %v103_v9  ;;  %v91_v13 = vld [vmem:[#allocation2 + $0x8] sm:$0xff]  ;;  %v3079_v17 = vcombine.low %v99_v8, %v103_v9  ;;  %v104_v21 = vld [vmem:[#allocation2 + $0x70] sm:$0xff] }
  0x3a   :  { %v94_v6 = vld [vmem:[#allocation2 + $0x20] sm:$0xff]  ;;  %v95_v14 = vld [vmem:[#allocation2 + $0x28] sm:$0xff]  ;;  %v3082_v25 = vcombine.high %v100_v18, %v104_v21  ;;  %v92_v26 = vld [vmem:[#allocation2 + $0x10] sm:$0xff]  ;;  %v3081_v30 = vcombine.low %v100_v18, %v104_v21 }
  0x3b   :  { %v3070_v7 = vcombine.high %v90_v3, %v94_v6  ;;  %249 = vmatprep.subr.bf16.mxu1 %v3078_v4  ;;  %v3069_v10 = vcombine.low %v90_v3, %v94_v6  ;;  %v4142_v11 = vld [vmem:[%s4258_s0] sm:$0xff]   ;;  %v3072_v20 = vcombine.high %v91_v13, %v95_v14  ;;  %v3071_v24 = vcombine.low %v91_v13, %v95_v14  ;;  %v96_v27 = vld [vmem:[#allocation2 + $0x30] sm:$0xff]  ;;  %v101_v31 = vld [vmem:[#allocation2 + $0x58] sm:$0xff] }
  0x3c   :  { %250 = vmatpush1.bf16.msra.mxu1 %v3077_v5  ;;  %v3473_v15 = vld [vmem:[#allocation4 + $0xe4] ss:$16 sps:$4 sm:$0xff]   ;;  %v3475_v16 = vld [vmem:[#allocation4 + $0xe0] ss:$16 sps:$4 sm:$0xff]   ;;  %v3074_v32 = vcombine.high %v92_v26, %v96_v27  ;;  %v105_v33 = vld [vmem:[#allocation2 + $0x78] sm:$0xff]  ;;  %v3073_v36 = vcombine.low %v92_v26, %v96_v27 }
  0x3d   :  { %251 = vmatprep.subr.bf16.mxu1 %v3070_v7  ;;  %v3476_v19 = vld [vmem:[#allocation4 + $0xc4] ss:$16 sps:$4 sm:$0xff]   ;;  %2007 = vmatprep.subr.bf16.mxu0 %v3473_v15  ;;  %v3478_v22 = vld [vmem:[#allocation4 + $0xc0] ss:$16 sps:$4 sm:$0xff]   ;;  %v3084_v37 = vcombine.high %v101_v31, %v105_v33  ;;  %v93_v38 = vld [vmem:[#allocation2 + $0x18] sm:$0xff]  ;;  %v3083_v42 = vcombine.low %v101_v31, %v105_v33 }
  0x3e   :  { %2008 = vmatpush1.bf16.msra.mxu0 %v3475_v16  ;;  %v3479_v23 = vld [vmem:[#allocation4 + $0xa4] ss:$16 sps:$4 sm:$0xff]   ;;  %v3484_v28 = vld [vmem:[#allocation4 + $0xa0] ss:$16 sps:$4 sm:$0xff]   ;;  %v97_v39 = vld [vmem:[#allocation2 + $0x38] sm:$0xff] }
  0x3f   :  { %2009 = vmatprep.subr.bf16.mxu0 %v3476_v19  ;;  %v3485_v29 = vld [vmem:[#allocation4 + $0x84] ss:$16 sps:$4 sm:$0xff]   ;;  %v3490_v34 = vld [vmem:[#allocation4 + $0x80] ss:$16 sps:$4 sm:$0xff]   ;;  %v3076_v43 = vcombine.high %v93_v38, %v97_v39  ;;  %v3075_v46 = vcombine.low %v93_v38, %v97_v39 }
  0x40   :  { %252 = vmatpush1.bf16.msra.mxu1 %v3069_v10  ;;  %v3491_v35 = vld [vmem:[#allocation4 + $0x64] ss:$16 sps:$4 sm:$0xff]   ;;  %v3496_v40 = vld [vmem:[#allocation4 + $0x60] ss:$16 sps:$4 sm:$0xff]  }
  0x41   :  { %292 = vmatprep.subr.bf16.mxu1 %v3080_v12  ;;  %v3497_v41 = vld [vmem:[#allocation4 + $0x44] ss:$16 sps:$4 sm:$0xff]   ;;  %v3502_v44 = vld [vmem:[#allocation4 + $0x40] ss:$16 sps:$4 sm:$0xff]  }
  0x42   :  { %2010 = vmatpush1.bf16.msra.mxu0 %v3478_v22  ;;  %v3503_v45 = vld [vmem:[#allocation4 + $0x24] ss:$16 sps:$4 sm:$0xff]   ;;  %v3508_v48 = vld [vmem:[#allocation4 + $0x20] ss:$16 sps:$4 sm:$0xff]  }
  0x43   :  { %3085 = vmatmul.mubr.msk.bf16.vlgmr.msra.gmra.mxu1 %vm233_vm0, %v4142_v11  ;;  %2011 = vmatprep.subr.bf16.mxu0 %v3479_v23  ;;  %v3483_v47 = vld [vmem:[#allocation4 + $0x2e4] ss:$16 sps:$4 sm:$0xff]   ;;  %v3481_v50 = vld [vmem:[#allocation4 + $0x2e0] ss:$16 sps:$4 sm:$0xff]  }
  0x44   :  { %293 = vmatpush1.bf16.msra.mxu1 %v3079_v17  ;;  %312 = vmatprep.mubr.bf16.mxu1 %v4075_v0  ;;  %v3509_v49 = vld [vmem:[#allocation4 + $0x4] ss:$16 sps:$4 sm:$0xff]   ;;  %v3514_v52 = vld [vmem:[#allocation4] ss:$16 sps:$4 sm:$0xff]  }
  0x45   :  { %294 = vmatprep.subr.bf16.mxu1 %v3072_v20  ;;  %v3489_v51 = vld [vmem:[#allocation4 + $0x2c4] ss:$16 sps:$4 sm:$0xff]   ;;  %v3487_v54 = vld [vmem:[#allocation4 + $0x2c0] ss:$16 sps:$4 sm:$0xff]  }
  0x46   :  { %2012 = vmatpush1.bf16.msra.mxu0 %v3484_v28  ;;  %v3515_v53 = vld [vmem:[#allocation4 + $0x1e4] ss:$16 sps:$4 sm:$0xff]   ;;  %v3520_v56 = vld [vmem:[#allocation4 + $0x1e0] ss:$16 sps:$4 sm:$0xff]  }
  0x47   :  { %2013 = vmatprep.subr.bf16.mxu0 %v3485_v29  ;;  %v3495_v55 = vld [vmem:[#allocation4 + $0x2a4] ss:$16 sps:$4 sm:$0xff]   ;;  %v3493_v57 = vld [vmem:[#allocation4 + $0x2a0] ss:$16 sps:$4 sm:$0xff]  }
  0x48   :  { %295 = vmatpush1.bf16.msra.mxu1 %v3071_v24  ;;  %v3521_v58 = vld [vmem:[#allocation4 + $0x1c4] ss:$16 sps:$4 sm:$0xff]   ;;  %v3526_v60 = vld [vmem:[#allocation4 + $0x1c0] ss:$16 sps:$4 sm:$0xff]  }
  0x49   :  { %335 = vmatprep.subr.bf16.mxu1 %v3082_v25  ;;  %v3501_v59 = vld [vmem:[#allocation4 + $0x284] ss:$16 sps:$4 sm:$0xff]   ;;  %v3499_v62 = vld [vmem:[#allocation4 + $0x280] ss:$16 sps:$4 sm:$0xff]  }
  0x4a   :  { %2014 = vmatpush1.bf16.msra.mxu0 %v3490_v34  ;;  %v3527_v61 = vld [vmem:[#allocation4 + $0x1a4] ss:$16 sps:$4 sm:$0xff]   ;;  %v3505_v2 = vld [vmem:[#allocation4 + $0x260] ss:$16 sps:$4 sm:$0xff]  }
  0x4b   :  { %3086 = vmatmul.mubr.msk.bf16.vlgmr.msra.gmra.mxu1 %vm233_vm0, %v4142_v11  ;;  %2015 = vmatprep.subr.bf16.mxu0 %v3491_v35  ;;  %v3507_v63 = vld [vmem:[#allocation4 + $0x264] ss:$16 sps:$4 sm:$0xff]   ;;  %v3538_v4 = vld [vmem:[#allocation4 + $0x180] ss:$16 sps:$4 sm:$0xff]  }
  0x4c   :  { %336 = vmatpush1.bf16.msra.mxu1 %v3081_v30  ;;  %355 = vmatprep.mubr.bf16.mxu1 %v4075_v0  ;;  %v3533_v1 = vld [vmem:[#allocation4 + $0x184] ss:$16 sps:$4 sm:$0xff]   ;;  %v3511_v6 = vld [vmem:[#allocation4 + $0x240] ss:$16 sps:$4 sm:$0xff]  }
  0x4d   :  { %337 = vmatprep.subr.bf16.mxu1 %v3074_v32  ;;  %v3513_v3 = vld [vmem:[#allocation4 + $0x244] ss:$16 sps:$4 sm:$0xff]   ;;  %v3517_v8 = vld [vmem:[#allocation4 + $0x220] ss:$16 sps:$4 sm:$0xff]  }
  0x4e   :  { %2016 = vmatpush1.bf16.msra.mxu0 %v3496_v40  ;;  %v3539_v5 = vld [vmem:[#allocation4 + $0x164] ss:$16 sps:$4 sm:$0xff]   ;;  %v3523_v10 = vld [vmem:[#allocation4 + $0x200] ss:$16 sps:$4 sm:$0xff]  }
  0x4f   :  { %2017 = vmatprep.subr.bf16.mxu0 %v3497_v41  ;;  %v3519_v7 = vld [vmem:[#allocation4 + $0x224] ss:$16 sps:$4 sm:$0xff]   ;;  %v3529_v12 = vld [vmem:[#allocation4 + $0x3e0] ss:$16 sps:$4 sm:$0xff]  }
  0x50   :  { %338 = vmatpush1.bf16.msra.mxu1 %v3073_v36  ;;  %v3525_v9 = vld [vmem:[#allocation4 + $0x204] ss:$16 sps:$4 sm:$0xff]   ;;  %v3535_v14 = vld [vmem:[#allocation4 + $0x3c0] ss:$16 sps:$4 sm:$0xff]   ;;  %v108_v36 = vlaneseq }
  0x51   :  { %378 = vmatprep.subr.bf16.mxu1 %v3084_v37  ;;  %v3537_v13 = vld [vmem:[#allocation4 + $0x3c4] ss:$16 sps:$4 sm:$0xff]   ;;  %v3541_v16 = vld [vmem:[#allocation4 + $0x3a0] ss:$16 sps:$4 sm:$0xff]  }
  0x52   :  { %2018 = vmatpush1.bf16.msra.mxu0 %v3502_v44  ;;  %v3543_v15 = vld [vmem:[#allocation4 + $0x3a4] ss:$16 sps:$4 sm:$0xff]   ;;  %v3544_v17 = vld [vmem:[#allocation4 + $0x160] ss:$16 sps:$4 sm:$0xff]   ;;  %v4155_v37 = vshrl.u32 %v108_v36, 7 }
  0x53   :  { %3087 = vmatmul.mubr.msk.bf16.vlgmr.msra.gmra.mxu1 %vm233_vm0, %v4142_v11  ;;  %2019 = vmatprep.subr.bf16.mxu0 %v3503_v45  ;;  %v3545_v18 = vld [vmem:[#allocation4 + $0x144] ss:$16 sps:$4 sm:$0xff]   ;;  %v3547_v20 = vld [vmem:[#allocation4 + $0x380] ss:$16 sps:$4 sm:$0xff]  }
  0x54   :  { %379 = vmatpush1.bf16.msra.mxu1 %v3083_v42  ;;  %398 = vmatprep.mubr.bf16.mxu1 %v4075_v0  ;;  %v3532_v0 = vld [vmem:[#allocation4 + $0x1a0] ss:$16 sps:$4 sm:$0xff]   ;;  %v3549_v19 = vld [vmem:[#allocation4 + $0x384] ss:$16 sps:$4 sm:$0xff]   ;;  %v4158_v38 = vsub.s32 1, %v4155_v37  ;;  %v4161_v39 = vsub.s32 0, %v4155_v37 }
  0x55   :  { %380 = vmatprep.subr.bf16.mxu1 %v3076_v43  ;;  %v3550_v21 = vld [vmem:[#allocation4 + $0x140] ss:$16 sps:$4 sm:$0xff]   ;;  %v3551_v22 = vld [vmem:[#allocation4 + $0x124] ss:$16 sps:$4 sm:$0xff]  }
  0x56   :  { %2020 = vmatpush1.bf16.msra.mxu0 %v3508_v48  ;;  %v3555_v23 = vld [vmem:[#allocation4 + $0x364] ss:$16 sps:$4 sm:$0xff]   ;;  %v3553_v24 = vld [vmem:[#allocation4 + $0x360] ss:$16 sps:$4 sm:$0xff]  }
  0x57   :  { %2021 = vmatprep.subr.bf16.mxu0 %v3509_v49  ;;  %v3556_v25 = vld [vmem:[#allocation4 + $0x120] ss:$16 sps:$4 sm:$0xff]   ;;  %v3557_v26 = vld [vmem:[#allocation4 + $0x104] ss:$16 sps:$4 sm:$0xff]   ;;  %v118_v49 = vsub.s32 2, %v4155_v37 }
  0x58   :  { %381 = vmatpush1.bf16.msra.mxu1 %v3075_v46  ;;  %v3561_v27 = vld [vmem:[#allocation4 + $0x344] ss:$16 sps:$4 sm:$0xff]   ;;  %v3559_v28 = vld [vmem:[#allocation4 + $0x340] ss:$16 sps:$4 sm:$0xff]   ;;  %v122_v46 = vsub.s32 3, %v4155_v37 }
  0x59   :  { %2050 = vmatprep.subr.bf16.mxu1 %v3483_v47  ;;  %v3562_v29 = vld [vmem:[#allocation4 + $0x100] ss:$16 sps:$4 sm:$0xff]   ;;  %v3565_v30 = vld [vmem:[#allocation4 + $0x324] ss:$16 sps:$4 sm:$0xff]  }
  0x5a   :  { %2022 = vmatpush1.bf16.msra.mxu0 %v3514_v52  ;;  %v3568_v31 = vld [vmem:[#allocation4 + $0x4e4] ss:$16 sps:$4 sm:$0xff]   ;;  %v3563_v32 = vld [vmem:[#allocation4 + $0x320] ss:$16 sps:$4 sm:$0xff]  }
  0x5b   :  { %3088 = vmatmul.mubr.msk.bf16.vlgmr.msra.gmra.mxu1 %vm233_vm0, %v4142_v11  ;;  %2023 = vmatprep.subr.bf16.mxu0 %v3515_v53  ;;  %v3531_v11 = vld [vmem:[#allocation4 + $0x3e4] ss:$16 sps:$4 sm:$0xff]   ;;  %v3569_v34 = vld [vmem:[#allocation4 + $0x300] ss:$16 sps:$4 sm:$0xff]  }
  0x5c   :  { %2051 = vmatpush1.bf16.msra.mxu1 %v3481_v50  ;;  %v3571_v33 = vld [vmem:[#allocation4 + $0x304] ss:$16 sps:$4 sm:$0xff]  }
  0x5d   :  { %2052 = vmatprep.subr.bf16.mxu1 %v3489_v51  ;;  %v3580_v35 = vld [vmem:[#allocation4 + $0x6e4] ss:$16 sps:$4 sm:$0xff]  }
  0x5e   :  { %2024 = vmatpush2.bf16.msra.mxu0 %v3520_v56  ;;  %v4166_v40 = vld [vmem:[%s4260_s2] sm:$0xff] }
  0x5f   :  { %2025 = vmatprep.subr.bf16.mxu0 %v3521_v58  ;;  %v115_v41 = vrot.slane %v4166_v40, %v4158_v38  ;;  %v111_v42 = vrot.slane %v4166_v40, %v4161_v39 }
  0x60   :  { %2053 = vmatpush1.bf16.msra.mxu1 %v3487_v54 }
  0x61   :  { %2054 = vmatprep.subr.bf16.mxu1 %v3495_v55  ;;  %v123_v55 = vrot.slane %v4166_v40, %v122_v46 }
  0x62   :  { %2026 = vmatpush2.bf16.msra.mxu0 %v3526_v60 }
  0x63   :  { %2027 = vmatprep.subr.bf16.mxu0 %v3527_v61 }
  0x64   :  { %2055 = vmatpush1.bf16.msra.mxu1 %v3493_v57  ;;  %v119_v57 = vrot.slane %v4166_v40, %v118_v49 }
  0x65   :  { %2056 = vmatprep.subr.bf16.mxu1 %v3501_v59 }
  0x66   :  { %2028 = vmatpush2.bf16.msra.mxu0 %v3532_v0 }
  0x67   :  { %2029 = vmatprep.subr.bf16.mxu0 %v3533_v1  ;;  %v130_v1 = vsub.s32 5, %v4155_v37 }
  0x68   :  { %2057 = vmatpush1.bf16.msra.mxu1 %v3499_v62 }
  0x69   :  { %2058 = vmatprep.subr.bf16.mxu1 %v3507_v63 }
  0x6a   :  { %2030 = vmatpush2.bf16.msra.mxu0 %v3538_v4 }
  0x6b   :  { %2031 = vmatprep.subr.bf16.mxu0 %v3539_v5 }
  0x6c   :  { %2059 = vmatpush1.bf16.msra.mxu1 %v3505_v2 }
  0x6d   :  { %2060 = vmatprep.subr.bf16.mxu1 %v3513_v3 }
  0x6e   :  { %2032 = vmatpush2.bf16.msra.mxu0 %v3544_v17 }
  0x6f   :  { %2033 = vmatprep.subr.bf16.mxu0 %v3545_v18  ;;  %v3572_v18 = vld [vmem:[#allocation4 + $0x4c0] ss:$16 sps:$4 sm:$0xff]  }
  0x70   :  { %2061 = vmatpush1.bf16.msra.mxu1 %v3511_v6 }
  0x71   :  { %2062 = vmatprep.subr.bf16.mxu1 %v3519_v7  ;;  %v3566_v7 = vld [vmem:[#allocation4 + $0x4e0] ss:$16 sps:$4 sm:$0xff]  }
  0x72   :  { %2034 = vmatpush2.bf16.msra.mxu0 %v3550_v21 }
  0x73   :  { %2035 = vmatprep.subr.bf16.mxu0 %v3551_v22 }
  0x74   :  { %2063 = vmatpush1.bf16.msra.mxu1 %v3517_v8 }
  0x75   :  { %2064 = vmatprep.subr.bf16.mxu1 %v3525_v9 }
  0x76   :  { %2036 = vmatpush2.bf16.msra.mxu0 %v3556_v25  ;;  %v138_v25 = vsub.s32 7, %v4155_v37 }
  0x77   :  { %2037 = vmatprep.subr.bf16.mxu0 %v3557_v26 }
  0x78   :  { %2065 = vmatpush1.bf16.msra.mxu1 %v3523_v10  ;;  %v3574_v10 = vld [vmem:[#allocation4 + $0x4c4] ss:$16 sps:$4 sm:$0xff]  }
  0x79   :  { %2066 = vmatprep.subr.bf16.mxu1 %v3531_v11 }
  0x7a   :  { %2038 = vmatpush2.bf16.msra.mxu0 %v3562_v29  ;;  %v3575_v29 = vld [vmem:[#allocation4 + $0x4a0] ss:$16 sps:$4 sm:$0xff]  }
  0x7b   :  { %2093 = vmatprep.subr.bf16.mxu0 %v3568_v31 }
  0x7c   :  { %2067 = vmatpush2.bf16.msra.mxu1 %v3529_v12 }
  0x7d   :  { %2068 = vmatprep.subr.bf16.mxu1 %v3537_v13 }
  0x80   :  { %2069 = vmatpush2.bf16.msra.mxu1 %v3535_v14  ;;  %v131_v14 = vrot.slane %v4166_v40, %v130_v1 }
  0x81   :  { %2070 = vmatprep.subr.bf16.mxu1 %v3543_v15 }
  0x84   :  { %2071 = vmatpush2.bf16.msra.mxu1 %v3541_v16 }
  0x85   :  { %2072 = vmatprep.subr.bf16.mxu1 %v3549_v19 }
  0x88   :  { %2073 = vmatpush2.bf16.msra.mxu1 %v3547_v20  ;;  %v3577_v20 = vld [vmem:[#allocation4 + $0x4a4] ss:$16 sps:$4 sm:$0xff]  }
  0x89   :  { %2074 = vmatprep.subr.bf16.mxu1 %v3555_v23 }
  0x8c   :  { %2075 = vmatpush2.bf16.msra.mxu1 %v3553_v24 }
  0x8d   :  { %2076 = vmatprep.subr.bf16.mxu1 %v3561_v27 }
  0x90   :  { %2077 = vmatpush2.bf16.msra.mxu1 %v3559_v28 }
  0x91   :  { %2078 = vmatprep.subr.bf16.mxu1 %v3565_v30  ;;  %v3578_v30 = vld [vmem:[#allocation4 + $0x6e0] ss:$16 sps:$4 sm:$0xff]  }
  0x94   :  { %2079 = vmatpush2.bf16.msra.mxu1 %v3563_v32 }
  0x95   :  { %2080 = vmatprep.subr.bf16.mxu1 %v3571_v33  ;;  %v3583_v33 = vld [vmem:[#allocation4 + $0x484] ss:$16 sps:$4 sm:$0xff]  }
  0x98   :  { %2081 = vmatpush2.bf16.msra.mxu1 %v3569_v34  ;;  %v3586_v34 = vld [vmem:[#allocation4 + $0x6c4] ss:$16 sps:$4 sm:$0xff]  }
  0x99   :  { %2136 = vmatprep.subr.bf16.mxu1 %v3580_v35 }
 0x103   :  { %v271_v43 = vpop.f32.mrf.mxu1 }
 0x104   :  { %v272_v47 = vadd.f32 %v271_v43, %v111_v42  ;;  %v3581_v43 = vld [vmem:[#allocation4 + $0x480] ss:$16 sps:$4 sm:$0xff]  }
 0x105   :  { %v273_v44 = vpop.f32.mrf.mxu1 }
 0x106   :  { %v274_v45 = vadd.f32 %v273_v44, %v115_v41  ;;  %v409_v56 = vmul.f32 0.2, %v272_v47  ;;  %v3584_v44 = vld [vmem:[#allocation4 + $0x6c0] ss:$16 sps:$4 sm:$0xff]  }
 0x107   :  { %v275_v48 = vpop.f32.mrf.mxu1 }
 0x108   :  { %v276_v50 = vadd.f32 %v275_v48, %v111_v42  ;;  %v410_v52 = vmul.f32 0.2, %v274_v45  ;;  %v425_v2 = vmax.f32 %v272_v47, %v409_v56  ;;  %v3589_v48 = vld [vmem:[#allocation4 + $0x464] ss:$16 sps:$4 sm:$0xff]   ;;  %v3590_v56 = vld [vmem:[#allocation4 + $0x6a0] ss:$16 sps:$4 sm:$0xff]  }
 0x109   :  { %v277_v51 = vpop.f32.mrf.mxu1 }
 0x10a   :  { %v417_v53 = vmul.f32 0.2, %v276_v50  ;;  %v278_v54 = vadd.f32 %v277_v51, %v115_v41  ;;  %v426_v62 = vmax.f32 %v274_v45, %v410_v52  ;;  %v139_v41 = vrot.slane %v4166_v40, %v138_v25  ;;  %v3628_v25 = vld [vmem:[#allocation4 + $0x7e4] ss:$16 sps:$4 sm:$0xff]  }
 0x10b   :  { %v314_v58 = vpop.f32.mrf.mxu1 }
 0x10c   :  { %v418_v59 = vmul.f32 0.2, %v278_v54  ;;  %v433_v60 = vmax.f32 %v276_v50, %v417_v53  ;;  %v315_v3 = vadd.f32 %v314_v58, %v119_v57  ;;  %v3592_v50 = vld [vmem:[#allocation4 + $0x6a4] ss:$16 sps:$4 sm:$0xff]  }
 0x10d   :  { %v316_v61 = vpop.f32.mrf.mxu1 }
 0x10e   :  { %v434_v63 = vmax.f32 %v278_v54, %v418_v59  ;;  %v317_v0 = vadd.f32 %v316_v61, %v123_v55  ;;  %v4183_v9 = vpack.c.bf16 %v433_v60, %v425_v2  ;;  %v411_v15 = vmul.f32 0.2, %v315_v3  ;;  %v3595_v59 = vld [vmem:[#allocation4 + $0x444] ss:$16 sps:$4 sm:$0xff]  }
 0x10f   :  { %v318_v4 = vpop.f32.mrf.mxu1  ;;  %v3598_v60 = vld [vmem:[#allocation4 + $0x684] ss:$16 sps:$4 sm:$0xff]  }
 0x110   :  { %v319_v5 = vadd.f32 %v318_v4, %v119_v57  ;;  %v4181_v6 = vpack.c.bf16 %v434_v63, %v426_v62  ;;  %v412_v11 = vmul.f32 0.2, %v317_v0  ;;  %v427_v26 = vmax.f32 %v315_v3, %v411_v15  ;;  %v3593_v63 = vld [vmem:[#allocation4 + $0x440] ss:$16 sps:$4 sm:$0xff]   ;;  %v3601_v3 = vld [vmem:[#allocation4 + $0x424] ss:$16 sps:$4 sm:$0xff]  }
 0x111   :  { %v320_v8 = vpop.f32.mrf.mxu1  ;;  %v3604_v4 = vld [vmem:[#allocation4 + $0x664] ss:$16 sps:$4 sm:$0xff]  }
 0x112   :  { %v419_v12 = vmul.f32 0.2, %v319_v5  ;;  %v321_v13 = vadd.f32 %v320_v8, %v123_v55  ;;  %2039 = vmatprep.mubr.bf16.mxu0 %v4181_v6  ;;  %v428_v22 = vmax.f32 %v317_v0, %v412_v11  ;;  %v3587_v55 = vld [vmem:[#allocation4 + $0x460] ss:$16 sps:$4 sm:$0xff]   ;;  %v3607_v11 = vld [vmem:[#allocation4 + $0x404] ss:$16 sps:$4 sm:$0xff]  }
 0x113   :  { %2040 = vmatmul.mubr.bf16.vlgmr.msra.gmra.mxu0 %v4183_v9  ;;  %v4188_v16 = vpop.f32.mrf.mxu1  ;;  %v3596_v0 = vld [vmem:[#allocation4 + $0x680] ss:$16 sps:$4 sm:$0xff]   ;;  %v3613_v15 = vld [vmem:[#allocation4 + $0x5e4] ss:$16 sps:$4 sm:$0xff]  }
 0x114   :  { %v420_v17 = vmul.f32 0.2, %v321_v13  ;;  %2094 = vmatpush1.bf16.msra.mxu0 %v3566_v7  ;;  %v435_v19 = vmax.f32 %v319_v5, %v419_v12  ;;  %v3599_v7 = vld [vmem:[#allocation4 + $0x420] ss:$16 sps:$4 sm:$0xff]   ;;  %v3610_v12 = vld [vmem:[#allocation4 + $0x644] ss:$16 sps:$4 sm:$0xff]  }
 0x115   :  { %2095 = vmatprep.subr.bf16.mxu0 %v3574_v10  ;;  %v359_v21 = vpop.f32.mrf.mxu1  ;;  %v3602_v8 = vld [vmem:[#allocation4 + $0x660] ss:$16 sps:$4 sm:$0xff]  }
 0x116   :  { %v436_v23 = vmax.f32 %v321_v13, %v420_v17  ;;  %v360_v24 = vadd.f32 %v359_v21, %v131_v14  ;;  %v4195_v32 = vpack.c.bf16 %v435_v19, %v427_v26  ;;  %v3605_v13 = vld [vmem:[#allocation4 + $0x400] ss:$16 sps:$4 sm:$0xff]   ;;  %v3616_v17 = vld [vmem:[#allocation4 + $0x624] ss:$16 sps:$4 sm:$0xff]  }
 0x117   :  { %v4191_v27 = vpop.f32.mrf.mxu1  ;;  %v3614_v19 = vld [vmem:[#allocation4 + $0x620] ss:$16 sps:$4 sm:$0xff]   ;;  %v3622_v21 = vld [vmem:[#allocation4 + $0x604] ss:$16 sps:$4 sm:$0xff]  }
 0x118   :  { %2096 = vmatpush1.bf16.msra.mxu0 %v3572_v18  ;;  %v4193_v28 = vpack.c.bf16 %v436_v23, %v428_v22  ;;  %v414_v31 = vmul.f32 0.2, %v360_v24  ;;  %v3611_v18 = vld [vmem:[#allocation4 + $0x5e0] ss:$16 sps:$4 sm:$0xff]  }
 0x119   :  { %2097 = vmatprep.subr.bf16.mxu0 %v3577_v20  ;;  %v363_v35 = vpop.f32.mrf.mxu1  ;;  %v3619_v20 = vld [vmem:[#allocation4 + $0x5c4] ss:$16 sps:$4 sm:$0xff]   ;;  %v3617_v22 = vld [vmem:[#allocation4 + $0x5c0] ss:$16 sps:$4 sm:$0xff]  }
 0x11a   :  { %2082 = vmatprep.mubr.bf16.mxu1 %v4193_v28  ;;  %v364_v36 = vadd.f32 %v363_v35, %v131_v14  ;;  %v430_v45 = vmax.f32 %v360_v24, %v414_v31  ;;  %v3608_v14 = vld [vmem:[#allocation4 + $0x640] ss:$16 sps:$4 sm:$0xff]   ;;  %v3625_v24 = vld [vmem:[#allocation4 + $0x5a4] ss:$16 sps:$4 sm:$0xff]  }
 0x11b   :  { %2083 = vmatmul.mubr.bf16.vlgmr.msra.gmra.mxu1 %v4195_v32  ;;  %v4200_v42 = vpop.f32.mrf.mxu1  ;;  %v3620_v23 = vld [vmem:[#allocation4 + $0x600] ss:$16 sps:$4 sm:$0xff]   ;;  %v3634_v31 = vld [vmem:[#allocation4 + $0x7c4] ss:$16 sps:$4 sm:$0xff]  }
 0x11c   :  { %2098 = vmatpush1.bf16.msra.mxu0 %v3575_v29  ;;  %2137 = vmatpush1.bf16.msra.mxu1 %v3578_v30  ;;  %v422_v47 = vmul.f32 0.2, %v364_v36  ;;  %v3623_v26 = vld [vmem:[#allocation4 + $0x5a0] ss:$16 sps:$4 sm:$0xff]   ;;  %v3631_v30 = vld [vmem:[#allocation4 + $0x584] ss:$16 sps:$4 sm:$0xff]  }
 0x11d   :  { %2099 = vmatprep.subr.bf16.mxu0 %v3583_v33  ;;  %2138 = vmatprep.subr.bf16.mxu1 %v3586_v34  ;;  %v402_v51 = vpop.f32.mrf.mxu1  ;;  %v3626_v29 = vld [vmem:[#allocation4 + $0x7e0] ss:$16 sps:$4 sm:$0xff]   ;;  %v126_v33 = vsub.s32 4, %v4155_v37 }
 0x11e   :  { %v438_v52 = vmax.f32 %v364_v36, %v422_v47  ;;  %v403_v53 = vadd.f32 %v402_v51, %v139_v41  ;;  %v3629_v34 = vld [vmem:[#allocation4 + $0x580] ss:$16 sps:$4 sm:$0xff]   ;;  %v3637_v36 = vld [vmem:[#allocation4 + $0x564] ss:$16 sps:$4 sm:$0xff]  }
 0x11f   :  { %v4202_v54 = vpop.f32.mrf.mxu1  ;;  %v3632_v35 = vld [vmem:[#allocation4 + $0x7c0] ss:$16 sps:$4 sm:$0xff]   ;;  %v3643_v47 = vld [vmem:[#allocation4 + $0x544] ss:$16 sps:$4 sm:$0xff]  }
 0x120   :  { %2100 = vmatpush1.bf16.msra.mxu0 %v3581_v43  ;;  %2139 = vmatpush1.bf16.msra.mxu1 %v3584_v44  ;;  %v416_v57 = vmul.f32 0.2, %v403_v53  ;;  %v4204_v58 = vpack.c.bf16 %v438_v52, %v430_v45  ;;  %v127_v43 = vrot.slane %v4166_v40, %v126_v33  ;;  %v3635_v44 = vld [vmem:[#allocation4 + $0x560] ss:$16 sps:$4 sm:$0xff]   ;;  %v3683_v33 = vld [vmem:[#allocation4 + $0x68] ss:$16 sps:$4 sm:$0xff]  }
 0x121   :  { %2101 = vmatprep.subr.bf16.mxu0 %v3589_v48  ;;  %2140 = vmatprep.subr.bf16.mxu1 %v3592_v50  ;;  %v406_v61 = vpop.f32.mrf.mxu1  ;;  %v3638_v45 = vld [vmem:[#allocation4 + $0x7a0] ss:$16 sps:$4 sm:$0xff]   ;;  %v3646_v48 = vld [vmem:[#allocation4 + $0x784] ss:$16 sps:$4 sm:$0xff]  }
 0x122   :  { %v407_v62 = vadd.f32 %v406_v61, %v139_v41  ;;  %2125 = vmatprep.mubr.bf16.mxu0 %v4204_v58  ;;  %v432_v1 = vmax.f32 %v403_v53, %v416_v57  ;;  %v3640_v41 = vld [vmem:[#allocation4 + $0x7a4] ss:$16 sps:$4 sm:$0xff]   ;;  %v358_v50 = vadd.f32 %v4188_v16, %v127_v43  ;;  %v3641_v51 = vld [vmem:[#allocation4 + $0x540] ss:$16 sps:$4 sm:$0xff]   ;;  %v362_v53 = vadd.f32 %v4191_v27, %v127_v43  ;;  %v3692_v43 = vld [vmem:[#allocation4 + $0x288] ss:$16 sps:$4 sm:$0xff]  }
 0x123   :  { %v3644_v52 = vld [vmem:[#allocation4 + $0x780] ss:$16 sps:$4 sm:$0xff]   ;;  %v3652_v57 = vld [vmem:[#allocation4 + $0x764] ss:$16 sps:$4 sm:$0xff]  }
 0x124   :  { %2102 = vmatpush1.bf16.msra.mxu0 %v3587_v55  ;;  %2141 = vmatpush1.bf16.msra.mxu1 %v3590_v56  ;;  %v424_v2 = vmul.f32 0.2, %v407_v62  ;;  %v134_v55 = vsub.s32 6, %v4155_v37  ;;  %v3649_v56 = vld [vmem:[#allocation4 + $0x524] ss:$16 sps:$4 sm:$0xff]  }
 0x125   :  { %2103 = vmatprep.subr.bf16.mxu0 %v3595_v59  ;;  %2142 = vmatprep.subr.bf16.mxu1 %v3598_v60  ;;  %v413_v59 = vmul.f32 0.2, %v358_v50  ;;  %v3647_v60 = vld [vmem:[#allocation4 + $0x520] ss:$16 sps:$4 sm:$0xff]  }
 0x126   :  { %v440_v5 = vmax.f32 %v407_v62, %v424_v2  ;;  %v3650_v61 = vld [vmem:[#allocation4 + $0x760] ss:$16 sps:$4 sm:$0xff]   ;;  %v421_v62 = vmul.f32 0.2, %v362_v53  ;;  %v135_v16 = vrot.slane %v4166_v40, %v134_v55  ;;  %v3712_v55 = vld [vmem:[#allocation4 + $0x22c] ss:$16 sps:$4 sm:$0xff]  }
 0x127   :  { %v3653_v27 = vld [vmem:[#allocation4 + $0x500] ss:$16 sps:$4 sm:$0xff]  }
 0x128   :  { %2104 = vmatpush1.bf16.msra.mxu0 %v3593_v63  ;;  %2143 = vmatpush1.bf16.msra.mxu1 %v3596_v0  ;;  %v4207_v10 = vpack.c.bf16 %v440_v5, %v432_v1  ;;  %v3655_v63 = vld [vmem:[#allocation4 + $0x504] ss:$16 sps:$4 sm:$0xff]   ;;  %v429_v1 = vmax.f32 %v358_v50, %v413_v59  ;;  %v3656_v2 = vld [vmem:[#allocation4 + $0x740] ss:$16 sps:$4 sm:$0xff]   ;;  %v405_v5 = vadd.f32 %v4202_v54, %v135_v16  ;;  %v3668_v54 = vld [vmem:[#allocation4 + $0xc8] ss:$16 sps:$4 sm:$0xff]  }
 0x129   :  { %2105 = vmatprep.subr.bf16.mxu0 %v3601_v3  ;;  %2144 = vmatprep.subr.bf16.mxu1 %v3604_v4  ;;  %v3658_v0 = vld [vmem:[#allocation4 + $0x744] ss:$16 sps:$4 sm:$0xff]   ;;  %v437_v3 = vmax.f32 %v362_v53, %v421_v62  ;;  %v401_v4 = vadd.f32 %v4200_v42, %v135_v16  ;;  %v3659_v40 = vld [vmem:[#allocation4 + $0x720] ss:$16 sps:$4 sm:$0xff]   ;;  %v3706_v50 = vld [vmem:[#allocation4 + $0x24c] ss:$16 sps:$4 sm:$0xff]  }
 0x12a   :  { %2168 = vmatprep.mubr.bf16.mxu1 %v4207_v10  ;;  %v3665_v42 = vld [vmem:[#allocation4 + $0x700] ss:$16 sps:$4 sm:$0xff]   ;;  %v3709_v53 = vld [vmem:[#allocation4 + $0x1ec] ss:$16 sps:$4 sm:$0xff]   ;;  %v3716_v62 = vld [vmem:[#allocation4 + $0x208] ss:$16 sps:$4 sm:$0xff]  }
 0x12b   :  { %v3715_v59 = vld [vmem:[#allocation4 + $0x1cc] ss:$16 sps:$4 sm:$0xff]  }
 0x12c   :  { %2106 = vmatpush1.bf16.msra.mxu0 %v3599_v7  ;;  %2145 = vmatpush1.bf16.msra.mxu1 %v3602_v8  ;;  %v3661_v7 = vld [vmem:[#allocation4 + $0x724] ss:$16 sps:$4 sm:$0xff]   ;;  %v3664_v8 = vld [vmem:[#allocation4 + $0xec] ss:$16 sps:$4 sm:$0xff]  }
 0x12d   :  { %2107 = vmatprep.subr.bf16.mxu0 %v3607_v11  ;;  %2146 = vmatprep.subr.bf16.mxu1 %v3610_v12  ;;  %v3662_v11 = vld [vmem:[#allocation4 + $0xe8] ss:$16 sps:$4 sm:$0xff]   ;;  %v4218_v12 = vpack.c.bf16 %v437_v3, %v429_v1  ;;  %v3721_v16 = vld [vmem:[#allocation4 + $0x1ac] ss:$16 sps:$4 sm:$0xff]  }
 0x12e   :  { %v3722_v1 = vld [vmem:[#allocation4 + $0x3e8] ss:$16 sps:$4 sm:$0xff]  }
 0x12f   :  { %v3725_v3 = vld [vmem:[#allocation4 + $0x188] ss:$16 sps:$4 sm:$0xff]  }
 0x130   :  { %2108 = vmatpush1.bf16.msra.mxu0 %v3605_v13  ;;  %2147 = vmatpush1.bf16.msra.mxu1 %v3608_v14  ;;  %v415_v13 = vmul.f32 0.2, %v401_v4  ;;  %v423_v14 = vmul.f32 0.2, %v405_v5 }
 0x131   :  { %2109 = vmatprep.subr.bf16.mxu0 %v3613_v15  ;;  %2148 = vmatprep.subr.bf16.mxu1 %v3616_v17  ;;  %v3667_v15 = vld [vmem:[#allocation4 + $0x704] ss:$16 sps:$4 sm:$0xff]   ;;  %v3670_v17 = vld [vmem:[#allocation4 + $0xcc] ss:$16 sps:$4 sm:$0xff]  }
 0x134   :  { %2110 = vmatpush2.bf16.msra.mxu0 %v3611_v18  ;;  %2149 = vmatpush1.bf16.msra.mxu1 %v3614_v19  ;;  %v431_v18 = vmax.f32 %v401_v4, %v415_v13  ;;  %v439_v19 = vmax.f32 %v405_v5, %v423_v14  ;;  %v3728_v4 = vld [vmem:[#allocation4 + $0x3c8] ss:$16 sps:$4 sm:$0xff]   ;;  %v3733_v5 = vld [vmem:[#allocation4 + $0x16c] ss:$16 sps:$4 sm:$0xff]  }
 0x135   :  { %2111 = vmatprep.subr.bf16.mxu0 %v3619_v20  ;;  %2150 = vmatprep.subr.bf16.mxu1 %v3622_v21  ;;  %v3673_v20 = vld [vmem:[#allocation4 + $0xac] ss:$16 sps:$4 sm:$0xff]   ;;  %v3737_v14 = vld [vmem:[#allocation4 + $0x148] ss:$16 sps:$4 sm:$0xff]  }
 0x136   :  { %v3676_v21 = vld [vmem:[#allocation4 + $0x2ec] ss:$16 sps:$4 sm:$0xff]  }
 0x137   :  { %v3742_v13 = vld [vmem:[#allocation4 + $0x38c] ss:$16 sps:$4 sm:$0xff]  }
 0x138   :  { %2112 = vmatpush2.bf16.msra.mxu0 %v3617_v22  ;;  %2151 = vmatpush1.bf16.msra.mxu1 %v3620_v23  ;;  %v3671_v22 = vld [vmem:[#allocation4 + $0xa8] ss:$16 sps:$4 sm:$0xff]  }
 0x139   :  { %2113 = vmatprep.subr.bf16.mxu0 %v3625_v24  ;;  %2152 = vmatprep.subr.bf16.mxu1 %v3628_v25  ;;  %v3674_v23 = vld [vmem:[#allocation4 + $0x2e8] ss:$16 sps:$4 sm:$0xff]   ;;  %v4222_v24 = vpack.c.bf16 %v439_v19, %v431_v18  ;;  %v3679_v25 = vld [vmem:[#allocation4 + $0x8c] ss:$16 sps:$4 sm:$0xff]  }
 0x13a   :  { %v3746_v18 = vld [vmem:[#allocation4 + $0x368] ss:$16 sps:$4 sm:$0xff]   ;;  %v3751_v19 = vld [vmem:[#allocation4 + $0x10c] ss:$16 sps:$4 sm:$0xff]  }
 0x13c   :  { %2114 = vmatpush2.bf16.msra.mxu0 %v3623_v26  ;;  %2153 = vmatpush2.bf16.msra.mxu1 %v3626_v29  ;;  %v3682_v26 = vld [vmem:[#allocation4 + $0x2cc] ss:$16 sps:$4 sm:$0xff]   ;;  %v3677_v29 = vld [vmem:[#allocation4 + $0x88] ss:$16 sps:$4 sm:$0xff]  }
 0x13d   :  { %2115 = vmatprep.subr.bf16.mxu0 %v3631_v30  ;;  %2154 = vmatprep.subr.bf16.mxu1 %v3634_v31  ;;  %v3685_v30 = vld [vmem:[#allocation4 + $0x6c] ss:$16 sps:$4 sm:$0xff]  }
 0x13e   :  { %v3688_v31 = vld [vmem:[#allocation4 + $0x2ac] ss:$16 sps:$4 sm:$0xff]  }
 0x140   :  { %2116 = vmatpush2.bf16.msra.mxu0 %v3629_v34  ;;  %2155 = vmatpush2.bf16.msra.mxu1 %v3632_v35  ;;  %v3686_v34 = vld [vmem:[#allocation4 + $0x2a8] ss:$16 sps:$4 sm:$0xff]   ;;  %v3691_v35 = vld [vmem:[#allocation4 + $0x4c] ss:$16 sps:$4 sm:$0xff]  }
 0x141   :  { %2117 = vmatprep.subr.bf16.mxu0 %v3637_v36  ;;  %2156 = vmatprep.subr.bf16.mxu1 %v3640_v41  ;;  %v3694_v36 = vld [vmem:[#allocation4 + $0x28c] ss:$16 sps:$4 sm:$0xff]   ;;  %v3689_v41 = vld [vmem:[#allocation4 + $0x48] ss:$16 sps:$4 sm:$0xff]  }
 0x144   :  { %2118 = vmatpush2.bf16.msra.mxu0 %v3635_v44  ;;  %2157 = vmatpush2.bf16.msra.mxu1 %v3638_v45  ;;  %v3697_v44 = vld [vmem:[#allocation4 + $0x2c] ss:$16 sps:$4 sm:$0xff]   ;;  %v3695_v45 = vld [vmem:[#allocation4 + $0x28] ss:$16 sps:$4 sm:$0xff]  }
 0x145   :  { %2119 = vmatprep.subr.bf16.mxu0 %v3643_v47  ;;  %2158 = vmatprep.subr.bf16.mxu1 %v3646_v48  ;;  %v3698_v47 = vld [vmem:[#allocation4 + $0x268] ss:$16 sps:$4 sm:$0xff]   ;;  %v3703_v48 = vld [vmem:[#allocation4 + $0xc] ss:$16 sps:$4 sm:$0xff]  }
 0x148   :  { %2120 = vmatpush2.bf16.msra.mxu0 %v3641_v51  ;;  %2159 = vmatpush2.bf16.msra.mxu1 %v3644_v52  ;;  %v3701_v51 = vld [vmem:[#allocation4 + $0x8] ss:$16 sps:$4 sm:$0xff]  }
 0x149   :  { %2121 = vmatprep.subr.bf16.mxu0 %v3649_v56  ;;  %2160 = vmatprep.subr.bf16.mxu1 %v3652_v57  ;;  %v3704_v52 = vld [vmem:[#allocation4 + $0x248] ss:$16 sps:$4 sm:$0xff]  }
 0x14a   :  { %v3707_v56 = vld [vmem:[#allocation4 + $0x1e8] ss:$16 sps:$4 sm:$0xff]  }
 0x14b   :  { %v3710_v57 = vld [vmem:[#allocation4 + $0x228] ss:$16 sps:$4 sm:$0xff]  }
 0x14c   :  { %2122 = vmatpush2.bf16.msra.mxu0 %v3647_v60  ;;  %2161 = vmatpush2.bf16.msra.mxu1 %v3650_v61  ;;  %v3718_v60 = vld [vmem:[#allocation4 + $0x20c] ss:$16 sps:$4 sm:$0xff]   ;;  %v3713_v61 = vld [vmem:[#allocation4 + $0x1c8] ss:$16 sps:$4 sm:$0xff]  }
 0x14d   :  { %2123 = vmatprep.subr.bf16.mxu0 %v3655_v63  ;;  %2162 = vmatprep.subr.bf16.mxu1 %v3658_v0  ;;  %v3724_v63 = vld [vmem:[#allocation4 + $0x3ec] ss:$16 sps:$4 sm:$0xff]   ;;  %v3719_v0 = vld [vmem:[#allocation4 + $0x1a8] ss:$16 sps:$4 sm:$0xff]  }
 0x150   :  { %2124 = vmatpush2.bf16.msra.mxu0 %v3653_v27  ;;  %2163 = vmatpush2.bf16.msra.mxu1 %v3656_v2  ;;  %v3727_v27 = vld [vmem:[#allocation4 + $0x18c] ss:$16 sps:$4 sm:$0xff]  }
 0x151   :  { %2164 = vmatprep.subr.bf16.mxu1 %v3661_v7  ;;  %2179 = vmatprep.subr.bf16.mxu0 %v3664_v8  ;;  %v3730_v2 = vld [vmem:[#allocation4 + $0x3cc] ss:$16 sps:$4 sm:$0xff]   ;;  %v3731_v8 = vld [vmem:[#allocation4 + $0x168] ss:$16 sps:$4 sm:$0xff]  }
 0x152   :  { %v3736_v7 = vld [vmem:[#allocation4 + $0x3ac] ss:$16 sps:$4 sm:$0xff]  }
 0x153   :  { %2126 = vmatmul.mubr.bf16.vlgmr.msra.gmra.mxu0 %v4218_v12 }
 0x154   :  { %2165 = vmatpush2.bf16.msra.mxu1 %v3659_v40  ;;  %2180 = vmatpush1.bf16.msra.mxu0 %v3662_v11  ;;  %v3734_v40 = vld [vmem:[#allocation4 + $0x3a8] ss:$16 sps:$4 sm:$0xff]   ;;  %v3739_v11 = vld [vmem:[#allocation4 + $0x14c] ss:$16 sps:$4 sm:$0xff]  }
 0x155   :  { %2211 = vmatprep.mubr.bf16.mxu0 %v4181_v6  ;;  %2166 = vmatprep.subr.bf16.mxu1 %v3667_v15  ;;  %v3680_v6 = vld [vmem:[#allocation4 + $0x2c8] ss:$16 sps:$4 sm:$0xff]  }
 0x156   :  { %2181 = vmatprep.subr.bf16.mxu0 %v3670_v17  ;;  %v3740_v15 = vld [vmem:[#allocation4 + $0x388] ss:$16 sps:$4 sm:$0xff]   ;;  %v3745_v17 = vld [vmem:[#allocation4 + $0x12c] ss:$16 sps:$4 sm:$0xff]  }
 0x158   :  { %2167 = vmatpush2.bf16.msra.mxu1 %v3665_v42  ;;  %2182 = vmatpush1.bf16.msra.mxu0 %v3668_v54  ;;  %v3748_v42 = vld [vmem:[#allocation4 + $0x36c] ss:$16 sps:$4 sm:$0xff]   ;;  %v3743_v54 = vld [vmem:[#allocation4 + $0x128] ss:$16 sps:$4 sm:$0xff]  }
 0x159   :  { %2183 = vmatprep.subr.bf16.mxu0 %v3673_v20  ;;  %2222 = vmatprep.subr.bf16.mxu1 %v3676_v21  ;;  %v3754_v20 = vld [vmem:[#allocation4 + $0x34c] ss:$16 sps:$4 sm:$0xff]   ;;  %v3749_v21 = vld [vmem:[#allocation4 + $0x108] ss:$16 sps:$4 sm:$0xff]  }
 0x15b   :  { %2169 = vmatmul.mubr.bf16.vlgmr.msra.gmra.mxu1 %v4222_v24 }
 0x15c   :  { %2184 = vmatpush1.bf16.msra.mxu0 %v3671_v22  ;;  %2223 = vmatpush1.bf16.msra.mxu1 %v3674_v23  ;;  %v3752_v22 = vld [vmem:[#allocation4 + $0x348] ss:$16 sps:$4 sm:$0xff]   ;;  %v3757_v23 = vld [vmem:[#allocation4 + $0x32c] ss:$16 sps:$4 sm:$0xff]  }
 0x15d   :  { %2254 = vmatprep.mubr.bf16.mxu1 %v4193_v28  ;;  %2185 = vmatprep.subr.bf16.mxu0 %v3679_v25  ;;  %v3700_v28 = vld [vmem:[#allocation4 + $0x26c] ss:$16 sps:$4 sm:$0xff]  }
 0x15e   :  { %2224 = vmatprep.subr.bf16.mxu1 %v3682_v26  ;;  %v3760_v25 = vld [vmem:[#allocation4 + $0x4ec] ss:$16 sps:$4 sm:$0xff]   ;;  %v3755_v26 = vld [vmem:[#allocation4 + $0x328] ss:$16 sps:$4 sm:$0xff]  }
 0x160   :  { %2186 = vmatpush1.bf16.msra.mxu0 %v3677_v29  ;;  %2225 = vmatpush1.bf16.msra.mxu1 %v3680_v6  ;;  %v3758_v29 = vld [vmem:[#allocation4 + $0x4e8] ss:$16 sps:$4 sm:$0xff]   ;;  %v3763_v6 = vld [vmem:[#allocation4 + $0x30c] ss:$16 sps:$4 sm:$0xff]  }
 0x161   :  { %2187 = vmatprep.subr.bf16.mxu0 %v3685_v30  ;;  %2226 = vmatprep.subr.bf16.mxu1 %v3688_v31  ;;  %v3766_v30 = vld [vmem:[#allocation4 + $0x4cc] ss:$16 sps:$4 sm:$0xff]   ;;  %v3761_v31 = vld [vmem:[#allocation4 + $0x308] ss:$16 sps:$4 sm:$0xff]  }
 0x164   :  { %2188 = vmatpush1.bf16.msra.mxu0 %v3683_v33  ;;  %2227 = vmatpush1.bf16.msra.mxu1 %v3686_v34  ;;  %v3764_v33 = vld [vmem:[#allocation4 + $0x4c8] ss:$16 sps:$4 sm:$0xff]   ;;  %v3769_v34 = vld [vmem:[#allocation4 + $0x4ac] ss:$16 sps:$4 sm:$0xff]  }
 0x165   :  { %2189 = vmatprep.subr.bf16.mxu0 %v3691_v35  ;;  %2228 = vmatprep.subr.bf16.mxu1 %v3694_v36  ;;  %v3772_v35 = vld [vmem:[#allocation4 + $0x6ec] ss:$16 sps:$4 sm:$0xff]   ;;  %v3767_v36 = vld [vmem:[#allocation4 + $0x4a8] ss:$16 sps:$4 sm:$0xff]  }
 0x168   :  { %2190 = vmatpush1.bf16.msra.mxu0 %v3689_v41  ;;  %2229 = vmatpush1.bf16.msra.mxu1 %v3692_v43  ;;  %v3770_v41 = vld [vmem:[#allocation4 + $0x6e8] ss:$16 sps:$4 sm:$0xff]   ;;  %v3775_v43 = vld [vmem:[#allocation4 + $0x48c] ss:$16 sps:$4 sm:$0xff]  }
 0x169   :  { %2191 = vmatprep.subr.bf16.mxu0 %v3697_v44  ;;  %2230 = vmatprep.subr.bf16.mxu1 %v3700_v28  ;;  %v3778_v44 = vld [vmem:[#allocation4 + $0x6cc] ss:$16 sps:$4 sm:$0xff]   ;;  %v3776_v28 = vld [vmem:[#allocation4 + $0x6c8] ss:$16 sps:$4 sm:$0xff]  }
 0x16c   :  { %2192 = vmatpush1.bf16.msra.mxu0 %v3695_v45  ;;  %2231 = vmatpush1.bf16.msra.mxu1 %v3698_v47  ;;  %v3784_v45 = vld [vmem:[#allocation4 + $0x6ac] ss:$16 sps:$4 sm:$0xff]   ;;  %v3779_v47 = vld [vmem:[#allocation4 + $0x468] ss:$16 sps:$4 sm:$0xff]  }
 0x16d   :  { %2193 = vmatprep.subr.bf16.mxu0 %v3703_v48  ;;  %2232 = vmatprep.subr.bf16.mxu1 %v3706_v50  ;;  %v3782_v48 = vld [vmem:[#allocation4 + $0x6a8] ss:$16 sps:$4 sm:$0xff]   ;;  %v3787_v50 = vld [vmem:[#allocation4 + $0x44c] ss:$16 sps:$4 sm:$0xff]  }
 0x170   :  { %2194 = vmatpush1.bf16.msra.mxu0 %v3701_v51  ;;  %2233 = vmatpush1.bf16.msra.mxu1 %v3704_v52  ;;  %v3790_v51 = vld [vmem:[#allocation4 + $0x68c] ss:$16 sps:$4 sm:$0xff]   ;;  %v3788_v52 = vld [vmem:[#allocation4 + $0x688] ss:$16 sps:$4 sm:$0xff]  }
 0x171   :  { %2195 = vmatprep.subr.bf16.mxu0 %v3709_v53  ;;  %2234 = vmatprep.subr.bf16.mxu1 %v3712_v55  ;;  %v3793_v53 = vld [vmem:[#allocation4 + $0x42c] ss:$16 sps:$4 sm:$0xff]   ;;  %v3791_v55 = vld [vmem:[#allocation4 + $0x428] ss:$16 sps:$4 sm:$0xff]  }
 0x174   :  { %2196 = vmatpush2.bf16.msra.mxu0 %v3707_v56  ;;  %2235 = vmatpush1.bf16.msra.mxu1 %v3710_v57  ;;  %v3794_v56 = vld [vmem:[#allocation4 + $0x668] ss:$16 sps:$4 sm:$0xff]   ;;  %v3799_v57 = vld [vmem:[#allocation4 + $0x40c] ss:$16 sps:$4 sm:$0xff]  }
 0x175   :  { %2197 = vmatprep.subr.bf16.mxu0 %v3715_v59  ;;  %2236 = vmatprep.subr.bf16.mxu1 %v3718_v60  ;;  %v3802_v59 = vld [vmem:[#allocation4 + $0x64c] ss:$16 sps:$4 sm:$0xff]   ;;  %v3797_v60 = vld [vmem:[#allocation4 + $0x408] ss:$16 sps:$4 sm:$0xff]  }
 0x178   :  { %2198 = vmatpush2.bf16.msra.mxu0 %v3713_v61  ;;  %2237 = vmatpush1.bf16.msra.mxu1 %v3716_v62  ;;  %v3800_v61 = vld [vmem:[#allocation4 + $0x648] ss:$16 sps:$4 sm:$0xff]   ;;  %v3805_v62 = vld [vmem:[#allocation4 + $0x5ec] ss:$16 sps:$4 sm:$0xff]  }
 0x179   :  { %2199 = vmatprep.subr.bf16.mxu0 %v3721_v16  ;;  %2238 = vmatprep.subr.bf16.mxu1 %v3724_v63  ;;  %v3808_v16 = vld [vmem:[#allocation4 + $0x62c] ss:$16 sps:$4 sm:$0xff]   ;;  %v3803_v63 = vld [vmem:[#allocation4 + $0x5e8] ss:$16 sps:$4 sm:$0xff]  }
 0x17c   :  { %2200 = vmatpush2.bf16.msra.mxu0 %v3719_v0  ;;  %2239 = vmatpush2.bf16.msra.mxu1 %v3722_v1  ;;  %v3806_v0 = vld [vmem:[#allocation4 + $0x628] ss:$16 sps:$4 sm:$0xff]   ;;  %v3811_v1 = vld [vmem:[#allocation4 + $0x5cc] ss:$16 sps:$4 sm:$0xff]  }
 0x17d   :  { %2201 = vmatprep.subr.bf16.mxu0 %v3727_v27  ;;  %2240 = vmatprep.subr.bf16.mxu1 %v3730_v2  ;;  %v3814_v27 = vld [vmem:[#allocation4 + $0x60c] ss:$16 sps:$4 sm:$0xff]   ;;  %v3809_v2 = vld [vmem:[#allocation4 + $0x5c8] ss:$16 sps:$4 sm:$0xff]  }
 0x180   :  { %2202 = vmatpush2.bf16.msra.mxu0 %v3725_v3  ;;  %2241 = vmatpush2.bf16.msra.mxu1 %v3728_v4  ;;  %v3812_v3 = vld [vmem:[#allocation4 + $0x608] ss:$16 sps:$4 sm:$0xff]   ;;  %v3817_v4 = vld [vmem:[#allocation4 + $0x5ac] ss:$16 sps:$4 sm:$0xff]  }
 0x181   :  { %2203 = vmatprep.subr.bf16.mxu0 %v3733_v5  ;;  %2242 = vmatprep.subr.bf16.mxu1 %v3736_v7  ;;  %v3820_v5 = vld [vmem:[#allocation4 + $0x7ec] ss:$16 sps:$4 sm:$0xff]   ;;  %v3815_v7 = vld [vmem:[#allocation4 + $0x5a8] ss:$16 sps:$4 sm:$0xff]  }
 0x184   :  { %2204 = vmatpush2.bf16.msra.mxu0 %v3731_v8  ;;  %2243 = vmatpush2.bf16.msra.mxu1 %v3734_v40  ;;  %v3818_v8 = vld [vmem:[#allocation4 + $0x7e8] ss:$16 sps:$4 sm:$0xff]   ;;  %v3823_v40 = vld [vmem:[#allocation4 + $0x58c] ss:$16 sps:$4 sm:$0xff]  }
 0x185   :  { %2205 = vmatprep.subr.bf16.mxu0 %v3739_v11  ;;  %2244 = vmatprep.subr.bf16.mxu1 %v3742_v13  ;;  %v3826_v11 = vld [vmem:[#allocation4 + $0x7cc] ss:$16 sps:$4 sm:$0xff]   ;;  %v3821_v13 = vld [vmem:[#allocation4 + $0x588] ss:$16 sps:$4 sm:$0xff]  }
 0x188   :  { %2206 = vmatpush2.bf16.msra.mxu0 %v3737_v14  ;;  %2245 = vmatpush2.bf16.msra.mxu1 %v3740_v15  ;;  %v3824_v14 = vld [vmem:[#allocation4 + $0x7c8] ss:$16 sps:$4 sm:$0xff]   ;;  %v3829_v15 = vld [vmem:[#allocation4 + $0x56c] ss:$16 sps:$4 sm:$0xff]  }
 0x189   :  { %2207 = vmatprep.subr.bf16.mxu0 %v3745_v17  ;;  %2246 = vmatprep.subr.bf16.mxu1 %v3748_v42  ;;  %v3832_v17 = vld [vmem:[#allocation4 + $0x7ac] ss:$16 sps:$4 sm:$0xff]   ;;  %v3827_v42 = vld [vmem:[#allocation4 + $0x568] ss:$16 sps:$4 sm:$0xff]  }
 0x18c   :  { %2208 = vmatpush2.bf16.msra.mxu0 %v3743_v54  ;;  %2247 = vmatpush2.bf16.msra.mxu1 %v3746_v18  ;;  %v3830_v54 = vld [vmem:[#allocation4 + $0x7a8] ss:$16 sps:$4 sm:$0xff]   ;;  %v3835_v18 = vld [vmem:[#allocation4 + $0x54c] ss:$16 sps:$4 sm:$0xff]  }
 0x18d   :  { %2209 = vmatprep.subr.bf16.mxu0 %v3751_v19  ;;  %2248 = vmatprep.subr.bf16.mxu1 %v3754_v20  ;;  %v3838_v19 = vld [vmem:[#allocation4 + $0x78c] ss:$16 sps:$4 sm:$0xff]   ;;  %v3833_v20 = vld [vmem:[#allocation4 + $0x548] ss:$16 sps:$4 sm:$0xff]  }
 0x190   :  { %2210 = vmatpush2.bf16.msra.mxu0 %v3749_v21  ;;  %2249 = vmatpush2.bf16.msra.mxu1 %v3752_v22  ;;  %v3836_v21 = vld [vmem:[#allocation4 + $0x788] ss:$16 sps:$4 sm:$0xff]   ;;  %v3841_v22 = vld [vmem:[#allocation4 + $0x52c] ss:$16 sps:$4 sm:$0xff]  }
 0x191   :  { %2250 = vmatprep.subr.bf16.mxu1 %v3757_v23  ;;  %2265 = vmatprep.subr.bf16.mxu0 %v3760_v25  ;;  %v3844_v23 = vld [vmem:[#allocation4 + $0x76c] ss:$16 sps:$4 sm:$0xff]   ;;  %v3839_v25 = vld [vmem:[#allocation4 + $0x528] ss:$16 sps:$4 sm:$0xff]  }
 0x193   :  { %2212 = vmatmul.mubr.bf16.vlgmr.msra.gmra.mxu0 %v4183_v9  ;;  %v3773_v9 = vld [vmem:[#allocation4 + $0x488] ss:$16 sps:$4 sm:$0xff]  }
 0x194   :  { %2251 = vmatpush2.bf16.msra.mxu1 %v3755_v26  ;;  %2266 = vmatpush1.bf16.msra.mxu0 %v3758_v29  ;;  %v3842_v26 = vld [vmem:[#allocation4 + $0x768] ss:$16 sps:$4 sm:$0xff]   ;;  %v3847_v29 = vld [vmem:[#allocation4 + $0x50c] ss:$16 sps:$4 sm:$0xff]  }
 0x195   :  { %2297 = vmatprep.mubr.bf16.mxu0 %v4204_v58  ;;  %2252 = vmatprep.subr.bf16.mxu1 %v3763_v6  ;;  %v3781_v58 = vld [vmem:[#allocation4 + $0x46c] ss:$16 sps:$4 sm:$0xff]  }
 0x196   :  { %2267 = vmatprep.subr.bf16.mxu0 %v3766_v30  ;;  %v3850_v6 = vld [vmem:[#allocation4 + $0x74c] ss:$16 sps:$4 sm:$0xff]   ;;  %v3845_v30 = vld [vmem:[#allocation4 + $0x508] ss:$16 sps:$4 sm:$0xff]  }
 0x198   :  { %2253 = vmatpush2.bf16.msra.mxu1 %v3761_v31  ;;  %2268 = vmatpush1.bf16.msra.mxu0 %v3764_v33  ;;  %v3848_v31 = vld [vmem:[#allocation4 + $0x748] ss:$16 sps:$4 sm:$0xff]   ;;  %v3853_v33 = vld [vmem:[#allocation4 + $0x72c] ss:$16 sps:$4 sm:$0xff]  }
 0x199   :  { %2269 = vmatprep.subr.bf16.mxu0 %v3769_v34  ;;  %2308 = vmatprep.subr.bf16.mxu1 %v3772_v35  ;;  %v3859_v34 = vld [vmem:[#allocation6 + $0x74] ss:$8 sps:$4 sm:$0xff]   ;;  %v3851_v35 = vld [vmem:[#allocation4 + $0x728] ss:$16 sps:$4 sm:$0xff]  }
 0x19b   :  { %2255 = vmatmul.mubr.bf16.vlgmr.msra.gmra.mxu1 %v4195_v32  ;;  %v3785_v32 = vld [vmem:[#allocation4 + $0x448] ss:$16 sps:$4 sm:$0xff]  }
 0x19c   :  { %2270 = vmatpush1.bf16.msra.mxu0 %v3767_v36  ;;  %2309 = vmatpush1.bf16.msra.mxu1 %v3770_v41  ;;  %v3857_v36 = vld [vmem:[#allocation6 + $0x70] ss:$8 sps:$4 sm:$0xff]   ;;  %v3856_v41 = vld [vmem:[#allocation4 + $0x70c] ss:$16 sps:$4 sm:$0xff]  }
 0x19d   :  { %2340 = vmatprep.mubr.bf16.mxu1 %v4207_v10  ;;  %2271 = vmatprep.subr.bf16.mxu0 %v3775_v43  ;;  %v3796_v10 = vld [vmem:[#allocation4 + $0x66c] ss:$16 sps:$4 sm:$0xff]  }
 0x19e   :  { %2310 = vmatprep.subr.bf16.mxu1 %v3778_v44  ;;  %v3862_v43 = vld [vmem:[#allocation6 + $0x64] ss:$8 sps:$4 sm:$0xff]   ;;  %v3854_v44 = vld [vmem:[#allocation4 + $0x708] ss:$16 sps:$4 sm:$0xff]  }
 0x1a0   :  { %2272 = vmatpush1.bf16.msra.mxu0 %v3773_v9  ;;  %2311 = vmatpush1.bf16.msra.mxu1 %v3776_v28  ;;  %v3860_v9 = vld [vmem:[#allocation6 + $0x60] ss:$8 sps:$4 sm:$0xff]   ;;  %v3865_v28 = vld [vmem:[#allocation6 + $0x54] ss:$8 sps:$4 sm:$0xff]  }
 0x1a1   :  { %2273 = vmatprep.subr.bf16.mxu0 %v3781_v58  ;;  %2312 = vmatprep.subr.bf16.mxu1 %v3784_v45  ;;  %v3863_v58 = vld [vmem:[#allocation6 + $0x50] ss:$8 sps:$4 sm:$0xff]   ;;  %v3868_v45 = vld [vmem:[#allocation6 + $0x44] ss:$8 sps:$4 sm:$0xff]  }
 0x1a4   :  { %2274 = vmatpush1.bf16.msra.mxu0 %v3779_v47  ;;  %2313 = vmatpush1.bf16.msra.mxu1 %v3782_v48  ;;  %v3866_v47 = vld [vmem:[#allocation6 + $0x40] ss:$8 sps:$4 sm:$0xff]   ;;  %v3871_v48 = vld [vmem:[#allocation6 + $0x34] ss:$8 sps:$4 sm:$0xff]  }
 0x1a5   :  { %2275 = vmatprep.subr.bf16.mxu0 %v3787_v50  ;;  %2314 = vmatprep.subr.bf16.mxu1 %v3790_v51  ;;  %v3874_v50 = vld [vmem:[#allocation6 + $0x24] ss:$8 sps:$4 sm:$0xff]   ;;  %v3905_v51 = vld [vmem:[#allocation6 + $0x170] ss:$8 sps:$4 sm:$0xff]  }
 0x1a8   :  { %2276 = vmatpush1.bf16.msra.mxu0 %v3785_v32  ;;  %2315 = vmatpush1.bf16.msra.mxu1 %v3788_v52  ;;  %v3907_v32 = vld [vmem:[#allocation6 + $0x174] ss:$8 sps:$4 sm:$0xff]   ;;  %v3910_v52 = vld [vmem:[#allocation6 + $0x164] ss:$8 sps:$4 sm:$0xff]  }
 0x1a9   :  { %2277 = vmatprep.subr.bf16.mxu0 %v3793_v53  ;;  %2316 = vmatprep.subr.bf16.mxu1 %v3796_v10  ;;  %v3872_v53 = vld [vmem:[#allocation6 + $0x20] ss:$8 sps:$4 sm:$0xff]   ;;  %v3877_v10 = vld [vmem:[#allocation6 + $0x14] ss:$8 sps:$4 sm:$0xff]  }
 0x1ac   :  { %2278 = vmatpush1.bf16.msra.mxu0 %v3791_v55  ;;  %2317 = vmatpush1.bf16.msra.mxu1 %v3794_v56  ;;  %v3908_v55 = vld [vmem:[#allocation6 + $0x160] ss:$8 sps:$4 sm:$0xff]   ;;  %v3875_v56 = vld [vmem:[#allocation6 + $0x10] ss:$8 sps:$4 sm:$0xff]  }
 0x1ad   :  { %2279 = vmatprep.subr.bf16.mxu0 %v3799_v57  ;;  %2318 = vmatprep.subr.bf16.mxu1 %v3802_v59  ;;  %v3880_v57 = vld [vmem:[#allocation6 + $0x4] ss:$8 sps:$4 sm:$0xff]   ;;  %v3911_v59 = vld [vmem:[#allocation6 + $0x150] ss:$8 sps:$4 sm:$0xff]  }
 0x1b0   :  { %2280 = vmatpush1.bf16.msra.mxu0 %v3797_v60  ;;  %2319 = vmatpush1.bf16.msra.mxu1 %v3800_v61  ;;  %v3916_v60 = vld [vmem:[#allocation6 + $0x144] ss:$8 sps:$4 sm:$0xff]   ;;  %v3878_v61 = vld [vmem:[#allocation6] ss:$8 sps:$4 sm:$0xff]  }
 0x1b1   :  { %2281 = vmatprep.subr.bf16.mxu0 %v3805_v62  ;;  %2320 = vmatprep.subr.bf16.mxu1 %v3808_v16  ;;  %v3883_v62 = vld [vmem:[#allocation6 + $0xf4] ss:$8 sps:$4 sm:$0xff]   ;;  %v3914_v16 = vld [vmem:[#allocation6 + $0x140] ss:$8 sps:$4 sm:$0xff]  }
 0x1b4   :  { %2282 = vmatpush2.bf16.msra.mxu0 %v3803_v63  ;;  %2321 = vmatpush1.bf16.msra.mxu1 %v3806_v0  ;;  %v3919_v63 = vld [vmem:[#allocation6 + $0x134] ss:$8 sps:$4 sm:$0xff]   ;;  %v3881_v0 = vld [vmem:[#allocation6 + $0xf0] ss:$8 sps:$4 sm:$0xff]  }
 0x1b5   :  { %2283 = vmatprep.subr.bf16.mxu0 %v3811_v1  ;;  %2322 = vmatprep.subr.bf16.mxu1 %v3814_v27  ;;  %v3886_v1 = vld [vmem:[#allocation6 + $0xe4] ss:$8 sps:$4 sm:$0xff]   ;;  %v3917_v27 = vld [vmem:[#allocation6 + $0x130] ss:$8 sps:$4 sm:$0xff]  }
 0x1b8   :  { %2284 = vmatpush2.bf16.msra.mxu0 %v3809_v2  ;;  %2323 = vmatpush1.bf16.msra.mxu1 %v3812_v3  ;;  %v3922_v2 = vld [vmem:[#allocation6 + $0x124] ss:$8 sps:$4 sm:$0xff]   ;;  %v3884_v3 = vld [vmem:[#allocation6 + $0xe0] ss:$8 sps:$4 sm:$0xff]  }
 0x1b9   :  { %2285 = vmatprep.subr.bf16.mxu0 %v3817_v4  ;;  %2324 = vmatprep.subr.bf16.mxu1 %v3820_v5  ;;  %v3889_v4 = vld [vmem:[#allocation6 + $0xd4] ss:$8 sps:$4 sm:$0xff]   ;;  %v3920_v5 = vld [vmem:[#allocation6 + $0x120] ss:$8 sps:$4 sm:$0xff]  }
 0x1bc   :  { %2286 = vmatpush2.bf16.msra.mxu0 %v3815_v7  ;;  %2325 = vmatpush2.bf16.msra.mxu1 %v3818_v8  ;;  %v3925_v7 = vld [vmem:[#allocation6 + $0x114] ss:$8 sps:$4 sm:$0xff]   ;;  %v3887_v8 = vld [vmem:[#allocation6 + $0xd0] ss:$8 sps:$4 sm:$0xff]  }
 0x1bd   :  { %2287 = vmatprep.subr.bf16.mxu0 %v3823_v40  ;;  %2326 = vmatprep.subr.bf16.mxu1 %v3826_v11  ;;  %v3892_v40 = vld [vmem:[#allocation6 + $0xc4] ss:$8 sps:$4 sm:$0xff]   ;;  %v3923_v11 = vld [vmem:[#allocation6 + $0x110] ss:$8 sps:$4 sm:$0xff]  }
 0x1c0   :  { %2288 = vmatpush2.bf16.msra.mxu0 %v3821_v13  ;;  %2327 = vmatpush2.bf16.msra.mxu1 %v3824_v14  ;;  %v3928_v13 = vld [vmem:[#allocation6 + $0x104] ss:$8 sps:$4 sm:$0xff]   ;;  %v3890_v14 = vld [vmem:[#allocation6 + $0xc0] ss:$8 sps:$4 sm:$0xff]  }
 0x1c1   :  { %2289 = vmatprep.subr.bf16.mxu0 %v3829_v15  ;;  %2328 = vmatprep.subr.bf16.mxu1 %v3832_v17  ;;  %v3895_v15 = vld [vmem:[#allocation6 + $0xb4] ss:$8 sps:$4 sm:$0xff]   ;;  %v3926_v17 = vld [vmem:[#allocation6 + $0x100] ss:$8 sps:$4 sm:$0xff]  }
 0x1c4   :  { %2290 = vmatpush2.bf16.msra.mxu0 %v3827_v42  ;;  %2329 = vmatpush2.bf16.msra.mxu1 %v3830_v54  ;;  %v3931_v42 = vld [vmem:[#allocation6 + $0x1f4] ss:$8 sps:$4 sm:$0xff]   ;;  %v3893_v54 = vld [vmem:[#allocation6 + $0xb0] ss:$8 sps:$4 sm:$0xff]  }
 0x1c5   :  { %2291 = vmatprep.subr.bf16.mxu0 %v3835_v18  ;;  %2330 = vmatprep.subr.bf16.mxu1 %v3838_v19  ;;  %v3898_v18 = vld [vmem:[#allocation6 + $0xa4] ss:$8 sps:$4 sm:$0xff]   ;;  %v3929_v19 = vld [vmem:[#allocation6 + $0x1f0] ss:$8 sps:$4 sm:$0xff]  }
 0x1c8   :  { %2292 = vmatpush2.bf16.msra.mxu0 %v3833_v20  ;;  %2331 = vmatpush2.bf16.msra.mxu1 %v3836_v21  ;;  %v3934_v20 = vld [vmem:[#allocation6 + $0x1e4] ss:$8 sps:$4 sm:$0xff]   ;;  %v3896_v21 = vld [vmem:[#allocation6 + $0xa0] ss:$8 sps:$4 sm:$0xff]  }
 0x1c9   :  { %2293 = vmatprep.subr.bf16.mxu0 %v3841_v22  ;;  %2332 = vmatprep.subr.bf16.mxu1 %v3844_v23  ;;  %v3901_v23 = vld [vmem:[#allocation6 + $0x94] ss:$8 sps:$4 sm:$0xff]  }
 0x1cc   :  { %2294 = vmatpush2.bf16.msra.mxu0 %v3839_v25  ;;  %2333 = vmatpush2.bf16.msra.mxu1 %v3842_v26  ;;  %v3932_v25 = vld [vmem:[#allocation6 + $0x1e0] ss:$8 sps:$4 sm:$0xff]   ;;  %v3899_v26 = vld [vmem:[#allocation6 + $0x90] ss:$8 sps:$4 sm:$0xff]  }
 0x1cd   :  { %2295 = vmatprep.subr.bf16.mxu0 %v3847_v29  ;;  %2334 = vmatprep.subr.bf16.mxu1 %v3850_v6  ;;  %v3904_v6 = vld [vmem:[#allocation6 + $0x84] ss:$8 sps:$4 sm:$0xff]  }
 0x1d0   :  { %2296 = vmatpush2.bf16.msra.mxu0 %v3845_v30  ;;  %2335 = vmatpush2.bf16.msra.mxu1 %v3848_v31  ;;  %v3902_v30 = vld [vmem:[#allocation6 + $0x80] ss:$8 sps:$4 sm:$0xff]  }
 0x1d1   :  { %2336 = vmatprep.subr.bf16.mxu1 %v3853_v33  ;;  %2767 = vmatprep.subr.bf16.mxu0 %v3859_v34 }
 0x1d3   :  { %2298 = vmatmul.mubr.bf16.vlgmr.msra.gmra.mxu0 %v4218_v12  ;;  %v3869_v12 = vld [vmem:[#allocation6 + $0x30] ss:$8 sps:$4 sm:$0xff]   ;;  %v2041_v22 = vpop.f32.mrf.mxu0 }
 0x1d4   :  { %2337 = vmatpush2.bf16.msra.mxu1 %v3851_v35  ;;  %2768 = vmatpush1.bf16.msra.mxu0 %v3857_v36  ;;  %v4235_v36 = vld [vmem:[%s4262_s4] sm:$0xf] }
 0x1d5   :  { %2338 = vmatprep.subr.bf16.mxu1 %v3856_v41  ;;  %2769 = vmatprep.subr.bf16.mxu0 %v3862_v43  ;;  %v2043_v29 = vpop.f32.mrf.mxu0  ;;  %v3937_v41 = vld [vmem:[#allocation6 + $0x1d4] ss:$8 sps:$4 sm:$0xff]  }
 0x1d7   :  { %v2045_v31 = vpop.f32.mrf.mxu0 }
 0x1d8   :  { %2339 = vmatpush2.bf16.msra.mxu1 %v3854_v44  ;;  %2770 = vmatpush1.bf16.msra.mxu0 %v3860_v9  ;;  %v3935_v44 = vld [vmem:[#allocation6 + $0x1d0] ss:$8 sps:$4 sm:$0xff]   ;;  %v714_v9 = vrot.slane %v4235_v36, %v4158_v38 }
 0x1d9   :  { %2771 = vmatprep.subr.bf16.mxu0 %v3865_v28  ;;  %2810 = vmatprep.subr.bf16.mxu1 %v3907_v32  ;;  %v2047_v34 = vpop.f32.mrf.mxu0  ;;  %v710_v28 = vrot.slane %v4235_v36, %v4161_v39 }
 0x1db   :  { %2341 = vmatmul.mubr.bf16.vlgmr.msra.gmra.mxu1 %v4222_v24  ;;  %v3913_v24 = vld [vmem:[#allocation6 + $0x154] ss:$8 sps:$4 sm:$0xff]   ;;  %v2084_v33 = vpop.f32.mrf.mxu1 }
 0x1dc   :  { %2772 = vmatpush1.bf16.msra.mxu0 %v3863_v58  ;;  %2811 = vmatpush1.bf16.msra.mxu1 %v3905_v51 }
 0x1dd   :  { %2773 = vmatprep.subr.bf16.mxu0 %v3868_v45  ;;  %2812 = vmatprep.subr.bf16.mxu1 %v3910_v52  ;;  %v2086_v35 = vpop.f32.mrf.mxu1  ;;  %v2046_v52 = vadd.f32 %v2045_v31, %v710_v28  ;;  %v3957_v31 = vld [vmem:[#allocation7 + $0x68] sm:$0xff]  }
 0x1df   :  { %v2088_v58 = vpop.f32.mrf.mxu1 }
 0x1e0   :  { %2774 = vmatpush1.bf16.msra.mxu0 %v3866_v47  ;;  %2813 = vmatpush1.bf16.msra.mxu1 %v3908_v55  ;;  %v3940_v47 = vld [vmem:[#allocation6 + $0x1c4] ss:$8 sps:$4 sm:$0xff]  }
 0x1e1   :  { %2775 = vmatprep.subr.bf16.mxu0 %v3871_v48  ;;  %2814 = vmatprep.subr.bf16.mxu1 %v3913_v24  ;;  %v3938_v48 = vld [vmem:[#allocation6 + $0x1c0] ss:$8 sps:$4 sm:$0xff]   ;;  %v2090_v51 = vpop.f32.mrf.mxu1 }
 0x1e4   :  { %2776 = vmatpush1.bf16.msra.mxu0 %v3869_v12  ;;  %2815 = vmatpush1.bf16.msra.mxu1 %v3911_v59  ;;  %v2044_v12 = vadd.f32 %v2043_v29, %v714_v9  ;;  %v2089_v59 = vadd.f32 %v2088_v58, %v2046_v52  ;;  %v3954_v29 = vld [vmem:[#allocation7 + $0x38] sm:$0xff]  }
 0x1e5   :  { %2777 = vmatprep.subr.bf16.mxu0 %v3874_v50  ;;  %2816 = vmatprep.subr.bf16.mxu1 %v3916_v60  ;;  %v2042_v50 = vadd.f32 %v2041_v22, %v710_v28 }
 0x1e7   :  { %v2085_v55 = vadd.f32 %v2084_v33, %v2042_v50  ;;  %v3958_v33 = vld [vmem:[#allocation7 + $0x28] sm:$0xff]  }
 0x1e8   :  { %2778 = vmatpush1.bf16.msra.mxu0 %v3872_v53  ;;  %2817 = vmatpush1.bf16.msra.mxu1 %v3914_v16  ;;  %v2087_v53 = vadd.f32 %v2086_v35, %v2044_v12  ;;  %v3960_v35 = vld [vmem:[#allocation7 + $0x20] sm:$0xff]  }
 0x1e9   :  { %2779 = vmatprep.subr.bf16.mxu0 %v3877_v10  ;;  %2818 = vmatprep.subr.bf16.mxu1 %v3919_v63  ;;  %v3943_v10 = vld [vmem:[#allocation6 + $0x1b4] ss:$8 sps:$4 sm:$0xff]  }
 0x1ec   :  { %2780 = vmatpush1.bf16.msra.mxu0 %v3875_v56  ;;  %2819 = vmatpush1.bf16.msra.mxu1 %v3917_v27  ;;  %v3941_v56 = vld [vmem:[#allocation6 + $0x1b0] ss:$8 sps:$4 sm:$0xff]   ;;  %v3946_v27 = vld [vmem:[#allocation6 + $0x1a4] ss:$8 sps:$4 sm:$0xff]  }
 0x1ed   :  { %2781 = vmatprep.subr.bf16.mxu0 %v3880_v57  ;;  %2820 = vmatprep.subr.bf16.mxu1 %v3922_v2  ;;  %v2048_v57 = vadd.f32 %v2047_v34, %v714_v9  ;;  %v3959_v34 = vld [vmem:[#allocation7 + $0x60] sm:$0xff]  }
 0x1ef   :  { %v2091_v63 = vadd.f32 %v2090_v51, %v2048_v57 }
 0x1f0   :  { %2782 = vmatpush1.bf16.msra.mxu0 %v3878_v61  ;;  %2821 = vmatpush1.bf16.msra.mxu1 %v3920_v5 }
 0x1f1   :  { %2783 = vmatprep.subr.bf16.mxu0 %v3883_v62  ;;  %2822 = vmatprep.subr.bf16.mxu1 %v3925_v7 }
 0x1f4   :  { %2784 = vmatpush2.bf16.msra.mxu0 %v3881_v0  ;;  %2823 = vmatpush1.bf16.msra.mxu1 %v3923_v11 }
 0x1f5   :  { %2785 = vmatprep.subr.bf16.mxu0 %v3886_v1  ;;  %2824 = vmatprep.subr.bf16.mxu1 %v3928_v13 }
 0x1f8   :  { %2786 = vmatpush2.bf16.msra.mxu0 %v3884_v3  ;;  %2825 = vmatpush1.bf16.msra.mxu1 %v3926_v17  ;;  %v3947_v17 = vld [vmem:[#allocation6 + $0x190] ss:$8 sps:$4 sm:$0xff]  }
 0x1f9   :  { %2787 = vmatprep.subr.bf16.mxu0 %v3889_v4  ;;  %2826 = vmatprep.subr.bf16.mxu1 %v3931_v42  ;;  %v3944_v4 = vld [vmem:[#allocation6 + $0x1a0] ss:$8 sps:$4 sm:$0xff]  }
 0x1fc   :  { %2788 = vmatpush2.bf16.msra.mxu0 %v3887_v8  ;;  %2827 = vmatpush2.bf16.msra.mxu1 %v3929_v19 }
 0x1fd   :  { %2789 = vmatprep.subr.bf16.mxu0 %v3892_v40  ;;  %2828 = vmatprep.subr.bf16.mxu1 %v3934_v20  ;;  %v3950_v20 = vld [vmem:[#allocation6 + $0x180] ss:$8 sps:$4 sm:$0xff]  }
 0x200   :  { %2790 = vmatpush2.bf16.msra.mxu0 %v3890_v14  ;;  %2829 = vmatpush2.bf16.msra.mxu1 %v3932_v25  ;;  %v3949_v14 = vld [vmem:[#allocation6 + $0x194] ss:$8 sps:$4 sm:$0xff]  }
 0x201   :  { %2791 = vmatprep.subr.bf16.mxu0 %v3895_v15  ;;  %2830 = vmatprep.subr.bf16.mxu1 %v3937_v41 }
 0x204   :  { %2792 = vmatpush2.bf16.msra.mxu0 %v3893_v54  ;;  %2831 = vmatpush2.bf16.msra.mxu1 %v3935_v44 }
 0x205   :  { %2793 = vmatprep.subr.bf16.mxu0 %v3898_v18  ;;  %2832 = vmatprep.subr.bf16.mxu1 %v3940_v47  ;;  %v722_v47 = vrot.slane %v4235_v36, %v122_v46 }
 0x208   :  { %2794 = vmatpush2.bf16.msra.mxu0 %v3896_v21  ;;  %2833 = vmatpush2.bf16.msra.mxu1 %v3938_v48  ;;  %v3952_v21 = vld [vmem:[#allocation6 + $0x184] ss:$8 sps:$4 sm:$0xff]   ;;  %v718_v48 = vrot.slane %v4235_v36, %v118_v49 }
 0x209   :  { %2795 = vmatprep.subr.bf16.mxu0 %v3901_v23  ;;  %2834 = vmatprep.subr.bf16.mxu1 %v3943_v10 }
 0x20c   :  { %2796 = vmatpush2.bf16.msra.mxu0 %v3899_v26  ;;  %2835 = vmatpush2.bf16.msra.mxu1 %v3941_v56  ;;  %v3953_v26 = vld [vmem:[#allocation7 + $0x78] sm:$0xff]  }
 0x20d   :  { %2797 = vmatprep.subr.bf16.mxu0 %v3904_v6  ;;  %2836 = vmatprep.subr.bf16.mxu1 %v3946_v27  ;;  %v3955_v6 = vld [vmem:[#allocation7 + $0x70] sm:$0xff]  }
 0x210   :  { %2798 = vmatpush2.bf16.msra.mxu0 %v3902_v30  ;;  %2837 = vmatpush2.bf16.msra.mxu1 %v3944_v4  ;;  %v3956_v30 = vld [vmem:[#allocation7 + $0x30] sm:$0xff]  }
 0x211   :  { %2838 = vmatprep.subr.bf16.mxu1 %v3949_v14  ;;  %3437 = vmatprep.subr.bf16.mxu0 %v3953_v26  ;;  %v2435_v26 = vld [vmem:[%s4264_s6] sm:$0x3] }
 0x213   :  { %v2127_v43 = vpop.f32.mrf.mxu0 }
 0x214   :  { %v2128_v61 = vadd.f32 %v2127_v43, %v2085_v55  ;;  %2839 = vmatpush2.bf16.msra.mxu1 %v3947_v17  ;;  %v3961_v17 = vld [vmem:[#allocation7 + $0x58] sm:$0xff]  }
 0x215   :  { %v2129_v45 = vpop.f32.mrf.mxu0  ;;  %2840 = vmatprep.subr.bf16.mxu1 %v3952_v21  ;;  %v3967_v21 = vld [vmem:[#allocation7 + $0x40] sm:$0xff]  }
 0x216   :  { %v2130_v60 = vadd.f32 %v2129_v45, %v2087_v53 }
 0x217   :  { %v2131_v32 = vpop.f32.mrf.mxu0 }
 0x218   :  { %v2132_v0 = vadd.f32 %v2131_v32, %v2089_v59  ;;  %2841 = vmatpush2.bf16.msra.mxu1 %v3950_v20  ;;  %v3966_v20 = vld [vmem:[#allocation7 + $0x8] sm:$0xff]  }
 0x219   :  { %v2133_v62 = vpop.f32.mrf.mxu0 }
 0x21a   :  { %v2134_v5 = vadd.f32 %v2133_v62, %v2091_v63 }
 0x21b   :  { %v2170_v24 = vpop.f32.mrf.mxu1 }
 0x21c   :  { %v2171_v2 = vadd.f32 %v2170_v24, %v2128_v61 }
 0x21d   :  { %v2172_v16 = vpop.f32.mrf.mxu1 }
 0x21e   :  { %v2173_v1 = vadd.f32 %v2172_v16, %v2130_v60  ;;  %v2351_v15 = vmul.f32 0.2, %v2171_v2 }
 0x21f   :  { %v2174_v3 = vpop.f32.mrf.mxu1 }
 0x220   :  { %v2175_v7 = vadd.f32 %v2174_v3, %v2132_v0  ;;  %v2352_v40 = vmul.f32 0.2, %v2173_v1  ;;  %v2359_v22 = vmax.f32 %v2171_v2, %v2351_v15 }
 0x221   :  { %v2176_v8 = vpop.f32.mrf.mxu1 }
 0x222   :  { %v2355_v11 = vmul.f32 0.2, %v2175_v7  ;;  %v2177_v13 = vadd.f32 %v2176_v8, %v2134_v5  ;;  %v2360_v18 = vmax.f32 %v2173_v1, %v2352_v40 }
 0x224   :  { %v2356_v42 = vmul.f32 0.2, %v2177_v13  ;;  %v2363_v54 = vmax.f32 %v2175_v7, %v2355_v11 }
 0x226   :  { %v2364_v19 = vmax.f32 %v2177_v13, %v2356_v42  ;;  %v2367_v25 = vpack.c.bf16 %v2363_v54, %v2359_v22  ;;  %v3962_v42 = vld [vmem:[#allocation7 + $0x18] sm:$0xff]   ;;  %v3963_v54 = vld [vmem:[#allocation7 + $0x50] sm:$0xff]   ;;  %v3968_v22 = vld [vmem:[#allocation7] sm:$0xff]  }
 0x228   :  { %v2368_v23 = vpack.c.bf16 %v2364_v19, %v2360_v18  ;;  %v3964_v18 = vld [vmem:[#allocation7 + $0x10] sm:$0xff]   ;;  %v3965_v19 = vld [vmem:[#allocation7 + $0x48] sm:$0xff]  }
 0x22a   :  { %2799 = vmatprep.mubr.bf16.mxu0 %v2368_v23 }
 0x22b   :  { %2800 = vmatmul.mubr.bf16.vlgmr.msra.gmra.mxu0 %v2367_v25 }
 0x22c   :  { %3438 = vmatpush3.bf16.msra.mxu0 %v3954_v29  ;;  %v2444_v29 = vrot.slane %v2435_v26, %v4158_v38 }
 0x22d   :  { %3439 = vmatprep.subr.bf16.mxu0 %v3955_v6  ;;  %v2440_v6 = vrot.slane %v2435_v26, %v4161_v39 }
 0x230   :  { %3440 = vmatpush3.bf16.msra.mxu0 %v3956_v30 }
 0x231   :  { %3441 = vmatprep.subr.bf16.mxu0 %v3957_v31 }
 0x234   :  { %3442 = vmatpush3.bf16.msra.mxu0 %v3958_v33 }
 0x235   :  { %3443 = vmatprep.subr.bf16.mxu0 %v3959_v34 }
 0x238   :  { %3444 = vmatpush3.bf16.msra.mxu0 %v3960_v35 }
 0x239   :  { %3445 = vmatprep.subr.bf16.mxu0 %v3961_v17 }
 0x23c   :  { %3446 = vmatpush3.bf16.msra.mxu0 %v3962_v42 }
 0x23d   :  { %3447 = vmatprep.subr.bf16.mxu0 %v3963_v54 }
 0x240   :  { %3448 = vmatpush3.bf16.msra.mxu0 %v3964_v18 }
 0x241   :  { %3449 = vmatprep.subr.bf16.mxu0 %v3965_v19 }
 0x244   :  { %3450 = vmatpush3.bf16.msra.mxu0 %v3966_v20 }
 0x245   :  { %3451 = vmatprep.subr.bf16.mxu0 %v3967_v21 }
 0x248   :  { %3452 = vmatpush3.bf16.msra.mxu0 %v3968_v22 }
 0x253   :  { %v2213_v41 = vpop.f32.mrf.mxu0 }
 0x254   :  { %v2214_v32 = vadd.f32 %v2213_v41, %v718_v48 }
 0x255   :  { %v2215_v43 = vpop.f32.mrf.mxu0 }
 0x256   :  { %v2216_v51 = vadd.f32 %v2215_v43, %v722_v47 }
 0x257   :  { %v2217_v44 = vpop.f32.mrf.mxu0 }
 0x258   :  { %v2218_v10 = vadd.f32 %v2217_v44, %v718_v48 }
 0x259   :  { %v2219_v28 = vpop.f32.mrf.mxu0 }
 0x25a   :  { %v2220_v57 = vadd.f32 %v2219_v28, %v722_v47 }
 0x25b   :  { %v2256_v9 = vpop.f32.mrf.mxu1 }
 0x25c   :  { %v2257_v24 = vadd.f32 %v2256_v9, %v2214_v32 }
 0x25d   :  { %v2258_v58 = vpop.f32.mrf.mxu1 }
 0x25e   :  { %v2259_v55 = vadd.f32 %v2258_v58, %v2216_v51 }
 0x25f   :  { %v2260_v12 = vpop.f32.mrf.mxu1 }
 0x260   :  { %v2261_v59 = vadd.f32 %v2260_v12, %v2218_v10 }
 0x261   :  { %v2262_v52 = vpop.f32.mrf.mxu1 }
 0x262   :  { %v2263_v16 = vadd.f32 %v2262_v52, %v2220_v57 }
 0x293   :  { %v2299_v45 = vpop.f32.mrf.mxu0 }
 0x294   :  { %v2300_v61 = vadd.f32 %v2299_v45, %v2257_v24 }
 0x295   :  { %v2301_v50 = vpop.f32.mrf.mxu0 }
 0x296   :  { %v2302_v60 = vadd.f32 %v2301_v50, %v2259_v55 }
 0x297   :  { %v2303_v53 = vpop.f32.mrf.mxu0 }
 0x298   :  { %v2304_v37 = vadd.f32 %v2303_v53, %v2261_v59 }
 0x299   :  { %v2305_v62 = vpop.f32.mrf.mxu0 }
 0x29a   :  { %v2306_v0 = vadd.f32 %v2305_v62, %v2263_v16 }
 0x29b   :  { %v2342_v56 = vpop.f32.mrf.mxu1 }
 0x29c   :  { %v2343_v49 = vadd.f32 %v2342_v56, %v2300_v61  ;;  %v3409_v56 = vld [vmem:[%s4266_s8] ss:$0 sm:$0xff] }
 0x29d   :  { %v2344_v46 = vpop.f32.mrf.mxu1 }
 0x29e   :  { %v2345_v63 = vadd.f32 %v2344_v46, %v2302_v60  ;;  %v2353_v5 = vmul.f32 0.2, %v2343_v49 }
 0x29f   :  { %v2346_v36 = vpop.f32.mrf.mxu1 }
 0x2a0   :  { %v2347_v1 = vadd.f32 %v2346_v36, %v2304_v37  ;;  %v2354_v2 = vmul.f32 0.2, %v2345_v63  ;;  %v2361_v13 = vmax.f32 %v2343_v49, %v2353_v5 }
 0x2a1   :  { %v2348_v27 = vpop.f32.mrf.mxu1 }
 0x2a2   :  { %v2357_v3 = vmul.f32 0.2, %v2347_v1  ;;  %v2349_v4 = vadd.f32 %v2348_v27, %v2306_v0  ;;  %v2362_v40 = vmax.f32 %v2345_v63, %v2354_v2 }
 0x2a4   :  { %v2358_v7 = vmul.f32 0.2, %v2349_v4  ;;  %v2365_v8 = vmax.f32 %v2347_v1, %v2357_v3 }
 0x2a6   :  { %v2366_v11 = vmax.f32 %v2349_v4, %v2358_v7  ;;  %v2369_v15 = vpack.c.bf16 %v2365_v8, %v2361_v13 }
 0x2a8   :  { %v2370_v14 = vpack.c.bf16 %v2366_v11, %v2362_v40 }
 0x2aa   :  { %2842 = vmatprep.mubr.bf16.mxu1 %v2370_v14 }
 0x2ab   :  { %2843 = vmatmul.mubr.bf16.vlgmr.msra.gmra.mxu1 %v2369_v15 }
 0x2eb   :  { %v2801_v23 = vpop.f32.mrf.mxu0 }
 0x2ec   :  { %v2802_v34 = vadd.f32 %v2801_v23, %v2440_v6 }
 0x2ed   :  { %v2803_v25 = vpop.f32.mrf.mxu0 }
 0x2ee   :  { %v2804_v33 = vadd.f32 %v2803_v25, %v2444_v29 }
 0x2ef   :  { %v2805_v30 = vpop.f32.mrf.mxu0 }
 0x2f0   :  { %v2806_v43 = vadd.f32 %v2805_v30, %v2440_v6 }
 0x2f1   :  { %v2807_v35 = vpop.f32.mrf.mxu0 }
 0x2f2   :  { %v2808_v58 = vadd.f32 %v2807_v35, %v2444_v29 }
 0x36b   :  { %v2844_v31 = vpop.f32.mrf.mxu1 }
 0x36c   :  { %v2845_v9 = vadd.f32 %v2844_v31, %v2802_v34 }
 0x36d   :  { %v2846_v41 = vpop.f32.mrf.mxu1 }
 0x36e   :  { %v2847_v44 = vadd.f32 %v2846_v41, %v2804_v33  ;;  %v2853_v51 = vmul.f32 0.2, %v2845_v9 }
 0x36f   :  { %v2848_v28 = vpop.f32.mrf.mxu1 }
 0x370   :  { %v2849_v45 = vadd.f32 %v2848_v28, %v2806_v43  ;;  %v2854_v48 = vmul.f32 0.2, %v2847_v44  ;;  %v2857_v53 = vmax.f32 %v2845_v9, %v2853_v51 }
 0x371   :  { %v2850_v47 = vpop.f32.mrf.mxu1 }
 0x372   :  { %v2855_v12 = vmul.f32 0.2, %v2849_v45  ;;  %v2851_v50 = vadd.f32 %v2850_v47, %v2808_v58  ;;  %v2858_v39 = vmax.f32 %v2847_v44, %v2854_v48 }
 0x374   :  { %v2856_v38 = vmul.f32 0.2, %v2851_v50  ;;  %v2859_v32 = vmax.f32 %v2849_v45, %v2855_v12 }
 0x376   :  { %v2860_v52 = vmax.f32 %v2851_v50, %v2856_v38  ;;  %v2861_v55 = vpack.c.bf16 %v2859_v32, %v2857_v53 }
 0x378   :  { %v2862_v10 = vpack.c.bf16 %v2860_v52, %v2858_v39 }
 0x37a   :  { %3030 = vmatprep.mubr.bf16.mxu0 %v2862_v10 }
 0x37b   :  { %3031 = vmatmul.mubr.bf16.vlgmr.msra.gmra.mxu0 %v2861_v55 }
 0x43b   :  { %v3453_v24 = vpop.f32.mrf.mxu0 }
 0x43d   :  { %v3454_v57 = vpop.f32.mrf.mxu0 }
 0x43e   :  { %v3455_v59 = vadd.f32 %v3454_v57, %v3453_v24 }
 0x43f   :  { %v3456_v60 = vpop.f32.mrf.mxu0 }
 0x440   :  { %v3033_v61 = vadd.f32 %v3455_v59, %v3409_v56 }
 0x441   :  { %v3457_v62 = vpop.f32.mrf.mxu0 }
 0x442   :  { %v3426_v46 = vmul.f32 -1.442695, %v3033_v61  ;;  %v3458_v16 = vadd.f32 %v3457_v62, %v3456_v60 }
 0x444   :  { %3969 = vpow2.f32 %v3426_v46  ;;  %v3036_v37 = vadd.f32 %v3458_v16, %v3409_v56 }
 0x446   :  { %v3427_v63 = vmul.f32 -1.442695, %v3036_v37 }
 0x448   :  { %3971 = vpow2.f32 %v3427_v63 }
 0x451   :  { %v3970_v49 = vpop.eup %3969 }
 0x452   :  { %v3045_v36 = vadd.f32 1.0, %v3970_v49 }
 0x454   :  { %3973 = vrcp.f32 %v3045_v36 }
 0x455   :  { %v3972_v0 = vpop.eup %3971 }
 0x456   :  { %v3046_v1 = vadd.f32 1.0, %v3972_v0 }
 0x458   :  { %3975 = vrcp.f32 %v3046_v1 }
 0x461   :  { %v3974_v27 = vpop.eup %3973 }
 0x465   :  { %v3976_v2 = vpop.eup %3975 }
 0x466   :  { %v3435_v3 = vpack.c.bf16 %v3976_v2, %v3974_v27 }
 0x468   :  { %3436 = vst [vmem:[%s4267_s9] sm:$0xff] %v3435_v3  }
 0x469   :  { %3065 = vsyncpa [#allocation3], 1 }
 0x46a   :  { %3066 = vsyncpa [#allocation5], 1 }
 0x46b   :  { %3067 = vsyncpa [#allocation8], 1 }

</bundles_post_ra>
